<compile_context>
chip_gen: v6e
topology: v6e:2x2x1
jax: 0.10.0
libtpu: 0.0.40
codegen_flags: <defaults>
</compile_context>

<pallas_src>
import functools

import jax
import jax.numpy as jnp
from jax import lax
from jax.experimental import pallas as pl
from jax.experimental.pallas import tpu as pltpu

N_FEATS = 32          # must be >= CA_REDUCTION (CALayer uses channel // 16)
N_BLOCKS = 2
RES_SCALE = 0.1
CA_REDUCTION = 16

_PARAM_ORDER = ("w3a", "b3a", "w3b", "b3b", "wc1", "bc1", "wc2", "bc2",
                "wa1", "ba1", "wa2t", "ba2")


# --------------------------------------------------------------------------
# Pallas kernel: full SSPN (all SSB blocks + residual).
# Activations live as (C, HW) with HW in lanes.
# --------------------------------------------------------------------------
def _sspn_kernel(x_ref,
                 w3a_ref, b3a_ref, w3b_ref, b3b_ref,      # spa: two 3x3 convs (kx-grouped)
                 wc1_ref, bc1_ref, wc2_ref, bc2_ref,       # spc: two 1x1 convs
                 wa1_ref, ba1_ref, wa2t_ref, ba2_ref,      # CALayer
                 o_ref,
                 *, width, n_blocks, res_scale, bpg):
    C = x_ref.shape[1]
    HW = x_ref.shape[2]
    W = width

    # Tap-validity masks: built once at full (C, HW) and reused by every conv
    # in every block (hoisted -- JAX does not CSE broadcast_in_dim).
    pos = lax.broadcasted_iota(jnp.int32, (C, HW), 1)
    col = pos % W
    left_ok = (col != 0).astype(jnp.float32)         # output lane-shift by -1 valid
    right_ok = (col != W - 1).astype(jnp.float32)    # output lane-shift by +1 valid
    row_up_ok = (pos >= W).astype(jnp.float32)       # input tap at p - W valid
    row_dn_ok = (pos < HW - W).astype(jnp.float32)   # input tap at p + W valid

    def shift(x, d):
        # y[:, p] = x[:, (p + d) mod HW]; wrapped positions are zeroed by the
        # masks above.  Static shift -> XLU lane rotate, no vld/vst traffic.
        if d == 0:
            return x
        return pltpu.roll(x, shift=(-d) % HW, axis=1)

    def conv3x3(inp, w_ref, b_ref, blk):
        # 'SAME' 3x3 conv, taps grouped by kx:
        #   * one (3C, HW) row-shifted patch (ky = 0,1,2), zeroed at top/bottom
        #   * three (C,3C)x(3C,HW) MXU dots (one per kx column of taps)
        #   * lane-shift the kx=+-1 partial outputs, mask the column edges, add.
        # Matmul operands bf16, f32 accumulation.
        up = (shift(inp, -W) * row_up_ok).astype(jnp.bfloat16)
        mid = inp.astype(jnp.bfloat16)
        dn = (shift(inp, W) * row_dn_ok).astype(jnp.bfloat16)
        patch = jnp.concatenate([up, mid, dn], axis=0)            # (3C, HW) bf16
        s0 = jnp.dot(w_ref[blk, 0], patch, preferred_element_type=jnp.float32)
        s1 = jnp.dot(w_ref[blk, 1], patch, preferred_element_type=jnp.float32)
        s2 = jnp.dot(w_ref[blk, 2], patch, preferred_element_type=jnp.float32)
        out = s1 + left_ok * shift(s0, -1) + right_ok * shift(s2, 1)
        return out + b_ref[blk]

    for n in range(bpg):                      # static per-step batch loop
        x_in = x_ref[n]                       # (C, HW) f32, HW in lanes
        res = x_in
        for blk in range(n_blocks):
            # ---- spa: ResBlock(conv3x3 -> ReLU -> conv3x3)*res_scale + res ----
            t = jnp.maximum(conv3x3(res, w3a_ref, b3a_ref, blk), 0.0)
            spa = res + res_scale * conv3x3(t, w3b_ref, b3b_ref, blk)

            # ---- spc: ResAttentionBlock(1x1 -> ReLU -> 1x1 -> CALayer) ----
            t2 = jnp.maximum(
                jnp.dot(wc1_ref[blk], spa.astype(jnp.bfloat16),
                        preferred_element_type=jnp.float32) + bc1_ref[blk], 0.0)
            y = (jnp.dot(wc2_ref[blk], t2.astype(jnp.bfloat16),
                         preferred_element_type=jnp.float32) + bc2_ref[blk])

            # CALayer: GAP -> 1x1 -> ReLU -> 1x1 -> sigmoid -> scale.
            # Tiny (Cr = C // 16): stays off the MXU, f32 throughout.
            pooled = jnp.mean(y, axis=1, keepdims=True)              # (C, 1)
            a = jnp.sum(wa1_ref[blk] * pooled, axis=0, keepdims=True) + ba1_ref[blk]
            a = jnp.maximum(a, 0.0)                                  # (1, Cr)
            z = jnp.sum(wa2t_ref[blk] * a, axis=1, keepdims=True) + ba2_ref[blk]
            att = pl.reciprocal(1.0 + jnp.exp(-z), approx=True)      # sigmoid (C, 1)

            res = spa + res_scale * (y * att)

        # SSPN final residual add, fused into the same kernel.
        o_ref[n] = (res + x_in).astype(o_ref.dtype)


# --------------------------------------------------------------------------
# Weight packing + wrappers
# --------------------------------------------------------------------------
def _prepare_kernel_params(params, n_feats):
    """Stack per-block weights, reorient for (C, HW), bf16 matmul weights."""
    C = n_feats

    def stack(fn, dtype=None):
        a = jnp.stack([fn(p) for p in params])
        return a.astype(dtype) if dtype is not None else a

    def kx_grouped(w):
        # (kH, kW, Cin, Cout) HWIO -> (3, Cout, 3*Cin): one (C, 3C) matrix per
        # kx tap column; the 3C axis is ky-major (up, mid, down) to match the
        # row-shifted patch layout in the kernel.
        wt = jnp.transpose(w, (3, 0, 1, 2))                       # (Cout, ky, kx, Cin)
        return jnp.stack([wt[:, :, g, :].reshape(C, 3 * C) for g in range(3)])

    return dict(
        w3a=stack(lambda p: kx_grouped(p["w1"]), jnp.bfloat16),
        b3a=stack(lambda p: p["b1"].reshape(C, 1)),
        w3b=stack(lambda p: kx_grouped(p["w2"]), jnp.bfloat16),
        b3b=stack(lambda p: p["b2"].reshape(C, 1)),
        # 1x1 convs: (Cin, Cout) -> (Cout, Cin), bf16
        wc1=stack(lambda p: p["wc1"].T, jnp.bfloat16),
        bc1=stack(lambda p: p["bc1"].reshape(C, 1)),
        wc2=stack(lambda p: p["wc2"].T, jnp.bfloat16),
        bc2=stack(lambda p: p["bc2"].reshape(C, 1)),
        # CALayer (tiny): f32
        wa1=stack(lambda p: p["wa1"]),                 # (C, Cr)
        ba1=stack(lambda p: p["ba1"].reshape(1, -1)),  # (1, Cr)
        wa2t=stack(lambda p: p["wa2"].T),              # (C, Cr)
        ba2=stack(lambda p: p["ba2"].reshape(C, 1)),   # (C, 1)
    )


def _grid_steps(n_batch):
    """One grid step per batch element on multi-TensorCore chips (v7x / megacore
    v4/v5p); a single step on single-TC v5e/v6e (amortize ~0.35us/step)."""
    try:
        kind = jax.devices()[0].device_kind.lower()
    except Exception:
        return n_batch
    single_tc = any(t in kind for t in ("v5 lite", "v5e", "v6 lite", "v6e"))
    return 1 if single_tc else n_batch


def make_sspn(params, *, height, width, res_scale=RES_SCALE):
    """Pack weights once; return a jitted SSPN forward (N,C,H,W)->(N,C,H,W)."""
    C = params[0]["wc1"].shape[0]
    NB = len(params)
    HW = height * width
    kp = _prepare_kernel_params(params, C)

    # VMEM footprint at (C=32, HW=256, NB=2): ~0.3 MiB activations/masks +
    # ~0.1 MiB weights -- far under every generation's limit (v7x: 64 MiB).
    # TODO(synk): if H*W stops being a multiple of 128 or grows past a few
    # thousand pixels, tile H with a 1-row halo and set vmem_limit_bytes.

    @jax.jit
    def apply(x_nchw):
        N = x_nchw.shape[0]
        G = _grid_steps(N)
        if N % G != 0:
            G = N
        bpg = N // G
        x = x_nchw.reshape(N, C, HW)           # contiguous reshape only

        kernel = functools.partial(_sspn_kernel, width=width, n_blocks=NB,
                                   res_scale=res_scale, bpg=bpg)

        def wspec(arr):
            nd = arr.ndim
            return pl.BlockSpec(arr.shape, lambda b, nd=nd: (0,) * nd)

        out = pl.pallas_call(
            kernel,
            out_shape=jax.ShapeDtypeStruct((N, C, HW), x.dtype),
            grid_spec=pltpu.PrefetchScalarGridSpec(
                num_scalar_prefetch=0,
                grid=(G,),
                in_specs=[pl.BlockSpec((bpg, C, HW), lambda b: (b, 0, 0))]
                         + [wspec(kp[k]) for k in _PARAM_ORDER],
                out_specs=pl.BlockSpec((bpg, C, HW), lambda b: (b, 0, 0)),
            ),
            compiler_params=pltpu.CompilerParams(
                dimension_semantics=("parallel",)),
        )(x, *[kp[k] for k in _PARAM_ORDER])

        return out.reshape(N, C, height, width)

    return apply


# --------------------------------------------------------------------------
# Pure-JAX reference (sanity check only)
# --------------------------------------------------------------------------
def _conv3x3_ref(x, w, b):
    out = jax.lax.conv_general_dilated(
        x, w, window_strides=(1, 1), padding="SAME",
        dimension_numbers=("NHWC", "HWIO", "NHWC"))
    return out + b


def _ssb_ref(x, p):
    t = jax.nn.relu(_conv3x3_ref(x, p["w1"], p["b1"]))
    spa = x + RES_SCALE * _conv3x3_ref(t, p["w2"], p["b2"])
    t2 = jax.nn.relu(jnp.einsum("nhwc,cd->nhwd", spa, p["wc1"]) + p["bc1"])
    y = jnp.einsum("nhwc,cd->nhwd", t2, p["wc2"]) + p["bc2"]
    pooled = jnp.mean(y, axis=(1, 2), keepdims=True)
    a = jax.nn.relu(jnp.einsum("nhwc,cd->nhwd", pooled, p["wa1"]) + p["ba1"])
    a = jnp.einsum("nhwc,cd->nhwd", a, p["wa2"]) + p["ba2"]
    att = jax.nn.sigmoid(a)
    return spa + RES_SCALE * y * att


def sspn_ref(x_nchw, params):
    x = jnp.transpose(x_nchw, (0, 2, 3, 1))
    res = x
    for p in params:
        res = _ssb_ref(res, p)
    res = res + x
    return jnp.transpose(res, (0, 3, 1, 2))


# --------------------------------------------------------------------------
# Deterministic parameter init (synthetic; shapes follow the PyTorch module)
# --------------------------------------------------------------------------
def init_params(key, n_feats, n_blocks, reduction):
    cr = n_feats // reduction
    params = []
    for _ in range(n_blocks):
        key, *ks = jax.random.split(key, 13)

        def nrm(k, shape, scale):
            return jax.random.normal(k, shape, jnp.float32) * scale

        params.append(dict(
            # spa (ResBlock): two 3x3 convs, weights stored as (kH, kW, Cin, Cout)
            w1=nrm(ks[0], (3, 3, n_feats, n_feats), 0.05),
            b1=nrm(ks[1], (1, n_feats), 0.01),
            w2=nrm(ks[2], (3, 3, n_feats, n_feats), 0.05),
            b2=nrm(ks[3], (1, n_feats), 0.01),
            # spc (ResAttentionBlock): two 1x1 convs as (Cin, Cout) matrices
            wc1=nrm(ks[4], (n_feats, n_feats), 0.05),
            bc1=nrm(ks[5], (1, n_feats), 0.01),
            wc2=nrm(ks[6], (n_feats, n_feats), 0.05),
            bc2=nrm(ks[7], (1, n_feats), 0.01),
            # CALayer 1x1 convs
            wa1=nrm(ks[8], (n_feats, cr), 0.1),
            ba1=nrm(ks[9], (1, cr), 0.01),
            wa2=nrm(ks[10], (cr, n_feats), 0.1),
            ba2=nrm(ks[11], (1, n_feats), 0.01),
        ))
    return params


if __name__ == "__main__":
    key = jax.random.PRNGKey(0)
    kx_, kp_ = jax.random.split(key)

    N, C, H, W = 2, N_FEATS, 16, 16          # NCHW, as the PyTorch module expects
    x_nchw = jax.random.normal(kx_, (N, C, H, W), jnp.float32)
    params = init_params(kp_, N_FEATS, N_BLOCKS, CA_REDUCTION)

    sspn = make_sspn(params, height=H, width=W)
    out = jax.block_until_ready(sspn(x_nchw))

    ref = sspn_ref(x_nchw, params)
    assert out.shape == x_nchw.shape and out.dtype == jnp.float32
    max_err = float(jnp.max(jnp.abs(out - ref)))
    assert max_err < 5e-2, f"mismatch vs reference: {max_err}"

    print("KERNEL_OK")
</pallas_src>

<mosaic_0001>
module attributes {stable_mosaic.version = 11 : i64} {
  func.func @_sspn_kernel(%arg0: i32, %arg1: memref<1x32x256xf32, #tpu.memory_space<vmem>>, %arg2: memref<2x3x32x96xbf16, #tpu.memory_space<vmem>>, %arg3: memref<2x32x1xf32, #tpu.memory_space<vmem>>, %arg4: memref<2x3x32x96xbf16, #tpu.memory_space<vmem>>, %arg5: memref<2x32x1xf32, #tpu.memory_space<vmem>>, %arg6: memref<2x32x32xbf16, #tpu.memory_space<vmem>>, %arg7: memref<2x32x1xf32, #tpu.memory_space<vmem>>, %arg8: memref<2x32x32xbf16, #tpu.memory_space<vmem>>, %arg9: memref<2x32x1xf32, #tpu.memory_space<vmem>>, %arg10: memref<2x32x2xf32, #tpu.memory_space<vmem>>, %arg11: memref<2x1x2xf32, #tpu.memory_space<vmem>>, %arg12: memref<2x32x2xf32, #tpu.memory_space<vmem>>, %arg13: memref<2x32x1xf32, #tpu.memory_space<vmem>>, %arg14: memref<1x32x256xf32, #tpu.memory_space<vmem>>) attributes {dimension_semantics = [#tpu.dimension_semantics<parallel>], iteration_bounds = array<i64: 2>, scalar_prefetch = 0 : i64, scratch_operands = 0 : i64, tpu.core_type = #tpu.core_type<tc>, window_params = [{transform_indices = @transform_0, window_bounds = array<i64: 1, 32, 256>}, {pipeline_mode = #tpu.pipeline_mode<synchronous>, transform_indices = @transform_1, window_bounds = array<i64: 2, 3, 32, 96>}, {pipeline_mode = #tpu.pipeline_mode<synchronous>, transform_indices = @transform_2, window_bounds = array<i64: 2, 32, 1>}, {pipeline_mode = #tpu.pipeline_mode<synchronous>, transform_indices = @transform_3, window_bounds = array<i64: 2, 3, 32, 96>}, {pipeline_mode = #tpu.pipeline_mode<synchronous>, transform_indices = @transform_4, window_bounds = array<i64: 2, 32, 1>}, {pipeline_mode = #tpu.pipeline_mode<synchronous>, transform_indices = @transform_5, window_bounds = array<i64: 2, 32, 32>}, {pipeline_mode = #tpu.pipeline_mode<synchronous>, transform_indices = @transform_6, window_bounds = array<i64: 2, 32, 1>}, {pipeline_mode = #tpu.pipeline_mode<synchronous>, transform_indices = @transform_7, window_bounds = array<i64: 2, 32, 32>}, {pipeline_mode = #tpu.pipeline_mode<synchronous>, transform_indices = @transform_8, window_bounds = array<i64: 2, 32, 1>}, {pipeline_mode = #tpu.pipeline_mode<synchronous>, transform_indices = @transform_9, window_bounds = array<i64: 2, 32, 2>}, {pipeline_mode = #tpu.pipeline_mode<synchronous>, transform_indices = @transform_10, window_bounds = array<i64: 2, 1, 2>}, {pipeline_mode = #tpu.pipeline_mode<synchronous>, transform_indices = @transform_11, window_bounds = array<i64: 2, 32, 2>}, {pipeline_mode = #tpu.pipeline_mode<synchronous>, transform_indices = @transform_12, window_bounds = array<i64: 2, 32, 1>}, {transform_indices = @transform_13, window_bounds = array<i64: 1, 32, 256>}]} {
    %0 = tpu.iota {dimensions = array<i32: 1>} : vector<32x256xi32>
    %c16_i32 = arith.constant 16 : i32
    %c0_i32 = arith.constant 0 : i32
    %1 = arith.cmpi eq, %c16_i32, %c0_i32 : i32
    %c1_i32 = arith.constant 1 : i32
    %2 = arith.select %1, %c1_i32, %c16_i32 : i32
    %3 = vector.broadcast %2 : i32 to vector<32x256xi32>
    %4 = arith.remsi %0, %3 : vector<32x256xi32>
    %c0_i32_0 = arith.constant 0 : i32
    %5 = vector.broadcast %c0_i32_0 : i32 to vector<32x256xi32>
    %6 = arith.cmpi ne, %4, %5 : vector<32x256xi32>
    %c0_i32_1 = arith.constant 0 : i32
    %7 = vector.broadcast %c0_i32_1 : i32 to vector<32x256xi32>
    %8 = arith.cmpi slt, %4, %7 : vector<32x256xi32>
    %c0_i32_2 = arith.constant 0 : i32
    %9 = arith.cmpi slt, %2, %c0_i32_2 : i32
    %10 = vector.broadcast %9 : i1 to vector<32x256xi1>
    %11 = vector.broadcast %10 : vector<32x256xi1> to vector<32x256xi1>
    %12 = arith.xori %8, %11 : vector<32x256xi1>
    %13 = arith.andi %12, %6 : vector<32x256xi1>
    %14 = vector.broadcast %2 : i32 to vector<32x256xi32>
    %15 = arith.addi %4, %14 : vector<32x256xi32>
    %16 = arith.select %13, %15, %4 : vector<32x256xi1>, vector<32x256xi32>
    %c0_i32_3 = arith.constant 0 : i32
    %17 = vector.broadcast %c0_i32_3 : i32 to vector<32x256xi32>
    %18 = arith.cmpi ne, %16, %17 : vector<32x256xi32>
    %19 = arith.extui %18 : vector<32x256xi1> to vector<32x256xi32>
    %20 = arith.sitofp %19 : vector<32x256xi32> to vector<32x256xf32>
    %c15_i32 = arith.constant 15 : i32
    %21 = vector.broadcast %c15_i32 : i32 to vector<32x256xi32>
    %22 = arith.cmpi ne, %16, %21 : vector<32x256xi32>
    %23 = arith.extui %22 : vector<32x256xi1> to vector<32x256xi32>
    %24 = arith.sitofp %23 : vector<32x256xi32> to vector<32x256xf32>
    %c16_i32_4 = arith.constant 16 : i32
    %25 = vector.broadcast %c16_i32_4 : i32 to vector<32x256xi32>
    %26 = arith.cmpi sge, %0, %25 : vector<32x256xi32>
    %27 = arith.extui %26 : vector<32x256xi1> to vector<32x256xi32>
    %28 = arith.sitofp %27 : vector<32x256xi32> to vector<32x256xf32>
    %c240_i32 = arith.constant 240 : i32
    %29 = vector.broadcast %c240_i32 : i32 to vector<32x256xi32>
    %30 = arith.cmpi slt, %0, %29 : vector<32x256xi32>
    %31 = arith.extui %30 : vector<32x256xi1> to vector<32x256xi32>
    %32 = arith.sitofp %31 : vector<32x256xi32> to vector<32x256xf32>
    %c0 = arith.constant 0 : index
    %c0_5 = arith.constant 0 : index
    %c0_6 = arith.constant 0 : index
    %33 = vector.load %arg1[%c0, %c0_5, %c0_6] : memref<1x32x256xf32, #tpu.memory_space<vmem>>, vector<1x32x256xf32>
    %34 = vector.shape_cast %33 : vector<1x32x256xf32> to vector<32x256xf32>
    %c16_i32_7 = arith.constant 16 : i32
    %35 = tpu.dynamic_rotate %34 by %c16_i32_7 dim 1 : vector<32x256xf32>, i32 -> vector<32x256xf32>
    %36 = arith.mulf %35, %28 : vector<32x256xf32>
    %37 = arith.truncf %36 : vector<32x256xf32> to vector<32x256xbf16>
    %38 = arith.truncf %34 : vector<32x256xf32> to vector<32x256xbf16>
    %c240_i32_8 = arith.constant 240 : i32
    %39 = tpu.dynamic_rotate %34 by %c240_i32_8 dim 1 : vector<32x256xf32>, i32 -> vector<32x256xf32>
    %40 = arith.mulf %39, %32 : vector<32x256xf32>
    %41 = arith.truncf %40 : vector<32x256xf32> to vector<32x256xbf16>
    %42 = tpu.concatenate %37, %38, %41 in 0 : vector<32x256xbf16>, vector<32x256xbf16>, vector<32x256xbf16> -> vector<96x256xbf16>
    %c0_9 = arith.constant 0 : index
    %c0_10 = arith.constant 0 : index
    %c0_11 = arith.constant 0 : index
    %c0_12 = arith.constant 0 : index
    %43 = vector.load %arg2[%c0_9, %c0_10, %c0_11, %c0_12] : memref<2x3x32x96xbf16, #tpu.memory_space<vmem>>, vector<1x1x32x96xbf16>
    %44 = vector.shape_cast %43 : vector<1x1x32x96xbf16> to vector<32x96xbf16>
    %cst = arith.constant dense<0.000000e+00> : vector<32x256xf32>
    %45 = tpu.matmul %44, %42, %cst {dimension_numbers = #tpu.dot_dimension_numbers<[1], [0], [0], [1], [0, 0, 1, 1], [], []>} : vector<32x96xbf16>, vector<96x256xbf16>, vector<32x256xf32> -> vector<32x256xf32>
    %c0_13 = arith.constant 0 : index
    %c1 = arith.constant 1 : index
    %c0_14 = arith.constant 0 : index
    %c0_15 = arith.constant 0 : index
    %46 = vector.load %arg2[%c0_13, %c1, %c0_14, %c0_15] : memref<2x3x32x96xbf16, #tpu.memory_space<vmem>>, vector<1x1x32x96xbf16>
    %47 = vector.shape_cast %46 : vector<1x1x32x96xbf16> to vector<32x96xbf16>
    %cst_16 = arith.constant dense<0.000000e+00> : vector<32x256xf32>
    %48 = tpu.matmul %47, %42, %cst_16 {dimension_numbers = #tpu.dot_dimension_numbers<[1], [0], [0], [1], [0, 0, 1, 1], [], []>} : vector<32x96xbf16>, vector<96x256xbf16>, vector<32x256xf32> -> vector<32x256xf32>
    %c0_17 = arith.constant 0 : index
    %c2 = arith.constant 2 : index
    %c0_18 = arith.constant 0 : index
    %c0_19 = arith.constant 0 : index
    %49 = vector.load %arg2[%c0_17, %c2, %c0_18, %c0_19] : memref<2x3x32x96xbf16, #tpu.memory_space<vmem>>, vector<1x1x32x96xbf16>
    %50 = vector.shape_cast %49 : vector<1x1x32x96xbf16> to vector<32x96xbf16>
    %cst_20 = arith.constant dense<0.000000e+00> : vector<32x256xf32>
    %51 = tpu.matmul %50, %42, %cst_20 {dimension_numbers = #tpu.dot_dimension_numbers<[1], [0], [0], [1], [0, 0, 1, 1], [], []>} : vector<32x96xbf16>, vector<96x256xbf16>, vector<32x256xf32> -> vector<32x256xf32>
    %c1_i32_21 = arith.constant 1 : i32
    %52 = tpu.dynamic_rotate %45 by %c1_i32_21 dim 1 : vector<32x256xf32>, i32 -> vector<32x256xf32>
    %53 = arith.mulf %20, %52 : vector<32x256xf32>
    %54 = arith.addf %48, %53 : vector<32x256xf32>
    %c255_i32 = arith.constant 255 : i32
    %55 = tpu.dynamic_rotate %51 by %c255_i32 dim 1 : vector<32x256xf32>, i32 -> vector<32x256xf32>
    %56 = arith.mulf %24, %55 : vector<32x256xf32>
    %57 = arith.addf %54, %56 : vector<32x256xf32>
    %c0_22 = arith.constant 0 : index
    %c0_23 = arith.constant 0 : index
    %c0_24 = arith.constant 0 : index
    %58 = vector.load %arg3[%c0_22, %c0_23, %c0_24] : memref<2x32x1xf32, #tpu.memory_space<vmem>>, vector<1x32x1xf32>
    %59 = vector.shape_cast %58 : vector<1x32x1xf32> to vector<32x1xf32>
    %60 = vector.broadcast %59 : vector<32x1xf32> to vector<32x256xf32>
    %61 = arith.addf %57, %60 : vector<32x256xf32>
    %cst_25 = arith.constant 0.000000e+00 : f32
    %62 = vector.broadcast %cst_25 : f32 to vector<32x256xf32>
    %63 = arith.maximumf %61, %62 : vector<32x256xf32>
    %c16_i32_26 = arith.constant 16 : i32
    %64 = tpu.dynamic_rotate %63 by %c16_i32_26 dim 1 : vector<32x256xf32>, i32 -> vector<32x256xf32>
    %65 = arith.mulf %64, %28 : vector<32x256xf32>
    %66 = arith.truncf %65 : vector<32x256xf32> to vector<32x256xbf16>
    %67 = arith.truncf %63 : vector<32x256xf32> to vector<32x256xbf16>
    %c240_i32_27 = arith.constant 240 : i32
    %68 = tpu.dynamic_rotate %63 by %c240_i32_27 dim 1 : vector<32x256xf32>, i32 -> vector<32x256xf32>
    %69 = arith.mulf %68, %32 : vector<32x256xf32>
    %70 = arith.truncf %69 : vector<32x256xf32> to vector<32x256xbf16>
    %71 = tpu.concatenate %66, %67, %70 in 0 : vector<32x256xbf16>, vector<32x256xbf16>, vector<32x256xbf16> -> vector<96x256xbf16>
    %c0_28 = arith.constant 0 : index
    %c0_29 = arith.constant 0 : index
    %c0_30 = arith.constant 0 : index
    %c0_31 = arith.constant 0 : index
    %72 = vector.load %arg4[%c0_28, %c0_29, %c0_30, %c0_31] : memref<2x3x32x96xbf16, #tpu.memory_space<vmem>>, vector<1x1x32x96xbf16>
    %73 = vector.shape_cast %72 : vector<1x1x32x96xbf16> to vector<32x96xbf16>
    %cst_32 = arith.constant dense<0.000000e+00> : vector<32x256xf32>
    %74 = tpu.matmul %73, %71, %cst_32 {dimension_numbers = #tpu.dot_dimension_numbers<[1], [0], [0], [1], [0, 0, 1, 1], [], []>} : vector<32x96xbf16>, vector<96x256xbf16>, vector<32x256xf32> -> vector<32x256xf32>
    %c0_33 = arith.constant 0 : index
    %c1_34 = arith.constant 1 : index
    %c0_35 = arith.constant 0 : index
    %c0_36 = arith.constant 0 : index
    %75 = vector.load %arg4[%c0_33, %c1_34, %c0_35, %c0_36] : memref<2x3x32x96xbf16, #tpu.memory_space<vmem>>, vector<1x1x32x96xbf16>
    %76 = vector.shape_cast %75 : vector<1x1x32x96xbf16> to vector<32x96xbf16>
    %cst_37 = arith.constant dense<0.000000e+00> : vector<32x256xf32>
    %77 = tpu.matmul %76, %71, %cst_37 {dimension_numbers = #tpu.dot_dimension_numbers<[1], [0], [0], [1], [0, 0, 1, 1], [], []>} : vector<32x96xbf16>, vector<96x256xbf16>, vector<32x256xf32> -> vector<32x256xf32>
    %c0_38 = arith.constant 0 : index
    %c2_39 = arith.constant 2 : index
    %c0_40 = arith.constant 0 : index
    %c0_41 = arith.constant 0 : index
    %78 = vector.load %arg4[%c0_38, %c2_39, %c0_40, %c0_41] : memref<2x3x32x96xbf16, #tpu.memory_space<vmem>>, vector<1x1x32x96xbf16>
    %79 = vector.shape_cast %78 : vector<1x1x32x96xbf16> to vector<32x96xbf16>
    %cst_42 = arith.constant dense<0.000000e+00> : vector<32x256xf32>
    %80 = tpu.matmul %79, %71, %cst_42 {dimension_numbers = #tpu.dot_dimension_numbers<[1], [0], [0], [1], [0, 0, 1, 1], [], []>} : vector<32x96xbf16>, vector<96x256xbf16>, vector<32x256xf32> -> vector<32x256xf32>
    %c1_i32_43 = arith.constant 1 : i32
    %81 = tpu.dynamic_rotate %74 by %c1_i32_43 dim 1 : vector<32x256xf32>, i32 -> vector<32x256xf32>
    %82 = arith.mulf %20, %81 : vector<32x256xf32>
    %83 = arith.addf %77, %82 : vector<32x256xf32>
    %c255_i32_44 = arith.constant 255 : i32
    %84 = tpu.dynamic_rotate %80 by %c255_i32_44 dim 1 : vector<32x256xf32>, i32 -> vector<32x256xf32>
    %85 = arith.mulf %24, %84 : vector<32x256xf32>
    %86 = arith.addf %83, %85 : vector<32x256xf32>
    %c0_45 = arith.constant 0 : index
    %c0_46 = arith.constant 0 : index
    %c0_47 = arith.constant 0 : index
    %87 = vector.load %arg5[%c0_45, %c0_46, %c0_47] : memref<2x32x1xf32, #tpu.memory_space<vmem>>, vector<1x32x1xf32>
    %88 = vector.shape_cast %87 : vector<1x32x1xf32> to vector<32x1xf32>
    %89 = vector.broadcast %88 : vector<32x1xf32> to vector<32x256xf32>
    %90 = arith.addf %86, %89 : vector<32x256xf32>
    %cst_48 = arith.constant 1.000000e-01 : f32
    %91 = vector.broadcast %cst_48 : f32 to vector<32x256xf32>
    %92 = arith.mulf %91, %90 : vector<32x256xf32>
    %93 = arith.addf %34, %92 : vector<32x256xf32>
    %c0_49 = arith.constant 0 : index
    %c0_50 = arith.constant 0 : index
    %c0_51 = arith.constant 0 : index
    %94 = vector.load %arg6[%c0_49, %c0_50, %c0_51] : memref<2x32x32xbf16, #tpu.memory_space<vmem>>, vector<1x32x32xbf16>
    %95 = vector.shape_cast %94 : vector<1x32x32xbf16> to vector<32x32xbf16>
    %96 = arith.truncf %93 : vector<32x256xf32> to vector<32x256xbf16>
    %cst_52 = arith.constant dense<0.000000e+00> : vector<32x256xf32>
    %97 = tpu.matmul %95, %96, %cst_52 {dimension_numbers = #tpu.dot_dimension_numbers<[1], [0], [0], [1], [0, 0, 1, 1], [], []>} : vector<32x32xbf16>, vector<32x256xbf16>, vector<32x256xf32> -> vector<32x256xf32>
    %c0_53 = arith.constant 0 : index
    %c0_54 = arith.constant 0 : index
    %c0_55 = arith.constant 0 : index
    %98 = vector.load %arg7[%c0_53, %c0_54, %c0_55] : memref<2x32x1xf32, #tpu.memory_space<vmem>>, vector<1x32x1xf32>
    %99 = vector.shape_cast %98 : vector<1x32x1xf32> to vector<32x1xf32>
    %100 = vector.broadcast %99 : vector<32x1xf32> to vector<32x256xf32>
    %101 = arith.addf %97, %100 : vector<32x256xf32>
    %cst_56 = arith.constant 0.000000e+00 : f32
    %102 = vector.broadcast %cst_56 : f32 to vector<32x256xf32>
    %103 = arith.maximumf %101, %102 : vector<32x256xf32>
    %c0_57 = arith.constant 0 : index
    %c0_58 = arith.constant 0 : index
    %c0_59 = arith.constant 0 : index
    %104 = vector.load %arg8[%c0_57, %c0_58, %c0_59] : memref<2x32x32xbf16, #tpu.memory_space<vmem>>, vector<1x32x32xbf16>
    %105 = vector.shape_cast %104 : vector<1x32x32xbf16> to vector<32x32xbf16>
    %106 = arith.truncf %103 : vector<32x256xf32> to vector<32x256xbf16>
    %cst_60 = arith.constant dense<0.000000e+00> : vector<32x256xf32>
    %107 = tpu.matmul %105, %106, %cst_60 {dimension_numbers = #tpu.dot_dimension_numbers<[1], [0], [0], [1], [0, 0, 1, 1], [], []>} : vector<32x32xbf16>, vector<32x256xbf16>, vector<32x256xf32> -> vector<32x256xf32>
    %c0_61 = arith.constant 0 : index
    %c0_62 = arith.constant 0 : index
    %c0_63 = arith.constant 0 : index
    %108 = vector.load %arg9[%c0_61, %c0_62, %c0_63] : memref<2x32x1xf32, #tpu.memory_space<vmem>>, vector<1x32x1xf32>
    %109 = vector.shape_cast %108 : vector<1x32x1xf32> to vector<32x1xf32>
    %110 = vector.broadcast %109 : vector<32x1xf32> to vector<32x256xf32>
    %111 = arith.addf %107, %110 : vector<32x256xf32>
    %cst_64 = arith.constant dense<0.000000e+00> : vector<32xf32>
    %112 = vector.multi_reduction <add>, %111, %cst_64 [1] : vector<32x256xf32> to vector<32xf32>
    %113 = vector.shape_cast %112 : vector<32xf32> to vector<32x1xf32>
    %cst_65 = arith.constant 2.560000e+02 : f32
    %114 = vector.broadcast %cst_65 : f32 to vector<32x1xf32>
    %115 = arith.divf %113, %114 : vector<32x1xf32>
    %c0_66 = arith.constant 0 : index
    %c0_67 = arith.constant 0 : index
    %c0_68 = arith.constant 0 : index
    %116 = vector.load %arg10[%c0_66, %c0_67, %c0_68] : memref<2x32x2xf32, #tpu.memory_space<vmem>>, vector<1x32x2xf32>
    %117 = vector.shape_cast %116 : vector<1x32x2xf32> to vector<32x2xf32>
    %118 = vector.broadcast %115 : vector<32x1xf32> to vector<32x2xf32>
    %119 = arith.mulf %117, %118 : vector<32x2xf32>
    %cst_69 = arith.constant dense<0.000000e+00> : vector<2xf32>
    %120 = vector.multi_reduction <add>, %119, %cst_69 [0] : vector<32x2xf32> to vector<2xf32>
    %121 = vector.shape_cast %120 : vector<2xf32> to vector<1x2xf32>
    %c0_70 = arith.constant 0 : index
    %c0_71 = arith.constant 0 : index
    %c0_72 = arith.constant 0 : index
    %122 = vector.load %arg11[%c0_70, %c0_71, %c0_72] : memref<2x1x2xf32, #tpu.memory_space<vmem>>, vector<1x1x2xf32>
    %123 = vector.shape_cast %122 : vector<1x1x2xf32> to vector<1x2xf32>
    %124 = arith.addf %121, %123 : vector<1x2xf32>
    %cst_73 = arith.constant 0.000000e+00 : f32
    %125 = vector.broadcast %cst_73 : f32 to vector<1x2xf32>
    %126 = arith.maximumf %124, %125 : vector<1x2xf32>
    %c0_74 = arith.constant 0 : index
    %c0_75 = arith.constant 0 : index
    %c0_76 = arith.constant 0 : index
    %127 = vector.load %arg12[%c0_74, %c0_75, %c0_76] : memref<2x32x2xf32, #tpu.memory_space<vmem>>, vector<1x32x2xf32>
    %128 = vector.shape_cast %127 : vector<1x32x2xf32> to vector<32x2xf32>
    %129 = vector.broadcast %126 : vector<1x2xf32> to vector<32x2xf32>
    %130 = arith.mulf %128, %129 : vector<32x2xf32>
    %cst_77 = arith.constant dense<0.000000e+00> : vector<32xf32>
    %131 = vector.multi_reduction <add>, %130, %cst_77 [1] : vector<32x2xf32> to vector<32xf32>
    %132 = vector.shape_cast %131 : vector<32xf32> to vector<32x1xf32>
    %c0_78 = arith.constant 0 : index
    %c0_79 = arith.constant 0 : index
    %c0_80 = arith.constant 0 : index
    %133 = vector.load %arg13[%c0_78, %c0_79, %c0_80] : memref<2x32x1xf32, #tpu.memory_space<vmem>>, vector<1x32x1xf32>
    %134 = vector.shape_cast %133 : vector<1x32x1xf32> to vector<32x1xf32>
    %135 = arith.addf %132, %134 : vector<32x1xf32>
    %cst_81 = arith.constant 0.000000e+00 : f32
    %136 = vector.broadcast %cst_81 : f32 to vector<32x1xf32>
    %137 = arith.subf %136, %135 : vector<32x1xf32>
    %138 = math.exp %137 : vector<32x1xf32>
    %cst_82 = arith.constant 1.000000e+00 : f32
    %139 = vector.broadcast %cst_82 : f32 to vector<32x1xf32>
    %140 = arith.addf %139, %138 : vector<32x1xf32>
    %141 = tpu.reciprocal %140 {approx = true} : vector<32x1xf32> -> vector<32x1xf32>
    %142 = vector.broadcast %141 : vector<32x1xf32> to vector<32x256xf32>
    %143 = arith.mulf %111, %142 : vector<32x256xf32>
    %cst_83 = arith.constant 1.000000e-01 : f32
    %144 = vector.broadcast %cst_83 : f32 to vector<32x256xf32>
    %145 = arith.mulf %144, %143 : vector<32x256xf32>
    %146 = arith.addf %93, %145 : vector<32x256xf32>
    %c16_i32_84 = arith.constant 16 : i32
    %147 = tpu.dynamic_rotate %146 by %c16_i32_84 dim 1 : vector<32x256xf32>, i32 -> vector<32x256xf32>
    %148 = arith.mulf %147, %28 : vector<32x256xf32>
    %149 = arith.truncf %148 : vector<32x256xf32> to vector<32x256xbf16>
    %150 = arith.truncf %146 : vector<32x256xf32> to vector<32x256xbf16>
    %c240_i32_85 = arith.constant 240 : i32
    %151 = tpu.dynamic_rotate %146 by %c240_i32_85 dim 1 : vector<32x256xf32>, i32 -> vector<32x256xf32>
    %152 = arith.mulf %151, %32 : vector<32x256xf32>
    %153 = arith.truncf %152 : vector<32x256xf32> to vector<32x256xbf16>
    %154 = tpu.concatenate %149, %150, %153 in 0 : vector<32x256xbf16>, vector<32x256xbf16>, vector<32x256xbf16> -> vector<96x256xbf16>
    %c1_86 = arith.constant 1 : index
    %c0_87 = arith.constant 0 : index
    %c0_88 = arith.constant 0 : index
    %c0_89 = arith.constant 0 : index
    %155 = vector.load %arg2[%c1_86, %c0_87, %c0_88, %c0_89] : memref<2x3x32x96xbf16, #tpu.memory_space<vmem>>, vector<1x1x32x96xbf16>
    %156 = vector.shape_cast %155 : vector<1x1x32x96xbf16> to vector<32x96xbf16>
    %cst_90 = arith.constant dense<0.000000e+00> : vector<32x256xf32>
    %157 = tpu.matmul %156, %154, %cst_90 {dimension_numbers = #tpu.dot_dimension_numbers<[1], [0], [0], [1], [0, 0, 1, 1], [], []>} : vector<32x96xbf16>, vector<96x256xbf16>, vector<32x256xf32> -> vector<32x256xf32>
    %c1_91 = arith.constant 1 : index
    %c1_92 = arith.constant 1 : index
    %c0_93 = arith.constant 0 : index
    %c0_94 = arith.constant 0 : index
    %158 = vector.load %arg2[%c1_91, %c1_92, %c0_93, %c0_94] : memref<2x3x32x96xbf16, #tpu.memory_space<vmem>>, vector<1x1x32x96xbf16>
    %159 = vector.shape_cast %158 : vector<1x1x32x96xbf16> to vector<32x96xbf16>
    %cst_95 = arith.constant dense<0.000000e+00> : vector<32x256xf32>
    %160 = tpu.matmul %159, %154, %cst_95 {dimension_numbers = #tpu.dot_dimension_numbers<[1], [0], [0], [1], [0, 0, 1, 1], [], []>} : vector<32x96xbf16>, vector<96x256xbf16>, vector<32x256xf32> -> vector<32x256xf32>
    %c1_96 = arith.constant 1 : index
    %c2_97 = arith.constant 2 : index
    %c0_98 = arith.constant 0 : index
    %c0_99 = arith.constant 0 : index
    %161 = vector.load %arg2[%c1_96, %c2_97, %c0_98, %c0_99] : memref<2x3x32x96xbf16, #tpu.memory_space<vmem>>, vector<1x1x32x96xbf16>
    %162 = vector.shape_cast %161 : vector<1x1x32x96xbf16> to vector<32x96xbf16>
    %cst_100 = arith.constant dense<0.000000e+00> : vector<32x256xf32>
    %163 = tpu.matmul %162, %154, %cst_100 {dimension_numbers = #tpu.dot_dimension_numbers<[1], [0], [0], [1], [0, 0, 1, 1], [], []>} : vector<32x96xbf16>, vector<96x256xbf16>, vector<32x256xf32> -> vector<32x256xf32>
    %c1_i32_101 = arith.constant 1 : i32
    %164 = tpu.dynamic_rotate %157 by %c1_i32_101 dim 1 : vector<32x256xf32>, i32 -> vector<32x256xf32>
    %165 = arith.mulf %20, %164 : vector<32x256xf32>
    %166 = arith.addf %160, %165 : vector<32x256xf32>
    %c255_i32_102 = arith.constant 255 : i32
    %167 = tpu.dynamic_rotate %163 by %c255_i32_102 dim 1 : vector<32x256xf32>, i32 -> vector<32x256xf32>
    %168 = arith.mulf %24, %167 : vector<32x256xf32>
    %169 = arith.addf %166, %168 : vector<32x256xf32>
    %c1_103 = arith.constant 1 : index
    %c0_104 = arith.constant 0 : index
    %c0_105 = arith.constant 0 : index
    %170 = vector.load %arg3[%c1_103, %c0_104, %c0_105] : memref<2x32x1xf32, #tpu.memory_space<vmem>>, vector<1x32x1xf32>
    %171 = vector.shape_cast %170 : vector<1x32x1xf32> to vector<32x1xf32>
    %172 = vector.broadcast %171 : vector<32x1xf32> to vector<32x256xf32>
    %173 = arith.addf %169, %172 : vector<32x256xf32>
    %cst_106 = arith.constant 0.000000e+00 : f32
    %174 = vector.broadcast %cst_106 : f32 to vector<32x256xf32>
    %175 = arith.maximumf %173, %174 : vector<32x256xf32>
    %c16_i32_107 = arith.constant 16 : i32
    %176 = tpu.dynamic_rotate %175 by %c16_i32_107 dim 1 : vector<32x256xf32>, i32 -> vector<32x256xf32>
    %177 = arith.mulf %176, %28 : vector<32x256xf32>
    %178 = arith.truncf %177 : vector<32x256xf32> to vector<32x256xbf16>
    %179 = arith.truncf %175 : vector<32x256xf32> to vector<32x256xbf16>
    %c240_i32_108 = arith.constant 240 : i32
    %180 = tpu.dynamic_rotate %175 by %c240_i32_108 dim 1 : vector<32x256xf32>, i32 -> vector<32x256xf32>
    %181 = arith.mulf %180, %32 : vector<32x256xf32>
    %182 = arith.truncf %181 : vector<32x256xf32> to vector<32x256xbf16>
    %183 = tpu.concatenate %178, %179, %182 in 0 : vector<32x256xbf16>, vector<32x256xbf16>, vector<32x256xbf16> -> vector<96x256xbf16>
    %c1_109 = arith.constant 1 : index
    %c0_110 = arith.constant 0 : index
    %c0_111 = arith.constant 0 : index
    %c0_112 = arith.constant 0 : index
    %184 = vector.load %arg4[%c1_109, %c0_110, %c0_111, %c0_112] : memref<2x3x32x96xbf16, #tpu.memory_space<vmem>>, vector<1x1x32x96xbf16>
    %185 = vector.shape_cast %184 : vector<1x1x32x96xbf16> to vector<32x96xbf16>
    %cst_113 = arith.constant dense<0.000000e+00> : vector<32x256xf32>
    %186 = tpu.matmul %185, %183, %cst_113 {dimension_numbers = #tpu.dot_dimension_numbers<[1], [0], [0], [1], [0, 0, 1, 1], [], []>} : vector<32x96xbf16>, vector<96x256xbf16>, vector<32x256xf32> -> vector<32x256xf32>
    %c1_114 = arith.constant 1 : index
    %c1_115 = arith.constant 1 : index
    %c0_116 = arith.constant 0 : index
    %c0_117 = arith.constant 0 : index
    %187 = vector.load %arg4[%c1_114, %c1_115, %c0_116, %c0_117] : memref<2x3x32x96xbf16, #tpu.memory_space<vmem>>, vector<1x1x32x96xbf16>
    %188 = vector.shape_cast %187 : vector<1x1x32x96xbf16> to vector<32x96xbf16>
    %cst_118 = arith.constant dense<0.000000e+00> : vector<32x256xf32>
    %189 = tpu.matmul %188, %183, %cst_118 {dimension_numbers = #tpu.dot_dimension_numbers<[1], [0], [0], [1], [0, 0, 1, 1], [], []>} : vector<32x96xbf16>, vector<96x256xbf16>, vector<32x256xf32> -> vector<32x256xf32>
    %c1_119 = arith.constant 1 : index
    %c2_120 = arith.constant 2 : index
    %c0_121 = arith.constant 0 : index
    %c0_122 = arith.constant 0 : index
    %190 = vector.load %arg4[%c1_119, %c2_120, %c0_121, %c0_122] : memref<2x3x32x96xbf16, #tpu.memory_space<vmem>>, vector<1x1x32x96xbf16>
    %191 = vector.shape_cast %190 : vector<1x1x32x96xbf16> to vector<32x96xbf16>
    %cst_123 = arith.constant dense<0.000000e+00> : vector<32x256xf32>
    %192 = tpu.matmul %191, %183, %cst_123 {dimension_numbers = #tpu.dot_dimension_numbers<[1], [0], [0], [1], [0, 0, 1, 1], [], []>} : vector<32x96xbf16>, vector<96x256xbf16>, vector<32x256xf32> -> vector<32x256xf32>
    %c1_i32_124 = arith.constant 1 : i32
    %193 = tpu.dynamic_rotate %186 by %c1_i32_124 dim 1 : vector<32x256xf32>, i32 -> vector<32x256xf32>
    %194 = arith.mulf %20, %193 : vector<32x256xf32>
    %195 = arith.addf %189, %194 : vector<32x256xf32>
    %c255_i32_125 = arith.constant 255 : i32
    %196 = tpu.dynamic_rotate %192 by %c255_i32_125 dim 1 : vector<32x256xf32>, i32 -> vector<32x256xf32>
    %197 = arith.mulf %24, %196 : vector<32x256xf32>
    %198 = arith.addf %195, %197 : vector<32x256xf32>
    %c1_126 = arith.constant 1 : index
    %c0_127 = arith.constant 0 : index
    %c0_128 = arith.constant 0 : index
    %199 = vector.load %arg5[%c1_126, %c0_127, %c0_128] : memref<2x32x1xf32, #tpu.memory_space<vmem>>, vector<1x32x1xf32>
    %200 = vector.shape_cast %199 : vector<1x32x1xf32> to vector<32x1xf32>
    %201 = vector.broadcast %200 : vector<32x1xf32> to vector<32x256xf32>
    %202 = arith.addf %198, %201 : vector<32x256xf32>
    %cst_129 = arith.constant 1.000000e-01 : f32
    %203 = vector.broadcast %cst_129 : f32 to vector<32x256xf32>
    %204 = arith.mulf %203, %202 : vector<32x256xf32>
    %205 = arith.addf %146, %204 : vector<32x256xf32>
    %c1_130 = arith.constant 1 : index
    %c0_131 = arith.constant 0 : index
    %c0_132 = arith.constant 0 : index
    %206 = vector.load %arg6[%c1_130, %c0_131, %c0_132] : memref<2x32x32xbf16, #tpu.memory_space<vmem>>, vector<1x32x32xbf16>
    %207 = vector.shape_cast %206 : vector<1x32x32xbf16> to vector<32x32xbf16>
    %208 = arith.truncf %205 : vector<32x256xf32> to vector<32x256xbf16>
    %cst_133 = arith.constant dense<0.000000e+00> : vector<32x256xf32>
    %209 = tpu.matmul %207, %208, %cst_133 {dimension_numbers = #tpu.dot_dimension_numbers<[1], [0], [0], [1], [0, 0, 1, 1], [], []>} : vector<32x32xbf16>, vector<32x256xbf16>, vector<32x256xf32> -> vector<32x256xf32>
    %c1_134 = arith.constant 1 : index
    %c0_135 = arith.constant 0 : index
    %c0_136 = arith.constant 0 : index
    %210 = vector.load %arg7[%c1_134, %c0_135, %c0_136] : memref<2x32x1xf32, #tpu.memory_space<vmem>>, vector<1x32x1xf32>
    %211 = vector.shape_cast %210 : vector<1x32x1xf32> to vector<32x1xf32>
    %212 = vector.broadcast %211 : vector<32x1xf32> to vector<32x256xf32>
    %213 = arith.addf %209, %212 : vector<32x256xf32>
    %cst_137 = arith.constant 0.000000e+00 : f32
    %214 = vector.broadcast %cst_137 : f32 to vector<32x256xf32>
    %215 = arith.maximumf %213, %214 : vector<32x256xf32>
    %c1_138 = arith.constant 1 : index
    %c0_139 = arith.constant 0 : index
    %c0_140 = arith.constant 0 : index
    %216 = vector.load %arg8[%c1_138, %c0_139, %c0_140] : memref<2x32x32xbf16, #tpu.memory_space<vmem>>, vector<1x32x32xbf16>
    %217 = vector.shape_cast %216 : vector<1x32x32xbf16> to vector<32x32xbf16>
    %218 = arith.truncf %215 : vector<32x256xf32> to vector<32x256xbf16>
    %cst_141 = arith.constant dense<0.000000e+00> : vector<32x256xf32>
    %219 = tpu.matmul %217, %218, %cst_141 {dimension_numbers = #tpu.dot_dimension_numbers<[1], [0], [0], [1], [0, 0, 1, 1], [], []>} : vector<32x32xbf16>, vector<32x256xbf16>, vector<32x256xf32> -> vector<32x256xf32>
    %c1_142 = arith.constant 1 : index
    %c0_143 = arith.constant 0 : index
    %c0_144 = arith.constant 0 : index
    %220 = vector.load %arg9[%c1_142, %c0_143, %c0_144] : memref<2x32x1xf32, #tpu.memory_space<vmem>>, vector<1x32x1xf32>
    %221 = vector.shape_cast %220 : vector<1x32x1xf32> to vector<32x1xf32>
    %222 = vector.broadcast %221 : vector<32x1xf32> to vector<32x256xf32>
    %223 = arith.addf %219, %222 : vector<32x256xf32>
    %cst_145 = arith.constant dense<0.000000e+00> : vector<32xf32>
    %224 = vector.multi_reduction <add>, %223, %cst_145 [1] : vector<32x256xf32> to vector<32xf32>
    %225 = vector.shape_cast %224 : vector<32xf32> to vector<32x1xf32>
    %cst_146 = arith.constant 2.560000e+02 : f32
    %226 = vector.broadcast %cst_146 : f32 to vector<32x1xf32>
    %227 = arith.divf %225, %226 : vector<32x1xf32>
    %c1_147 = arith.constant 1 : index
    %c0_148 = arith.constant 0 : index
    %c0_149 = arith.constant 0 : index
    %228 = vector.load %arg10[%c1_147, %c0_148, %c0_149] : memref<2x32x2xf32, #tpu.memory_space<vmem>>, vector<1x32x2xf32>
    %229 = vector.shape_cast %228 : vector<1x32x2xf32> to vector<32x2xf32>
    %230 = vector.broadcast %227 : vector<32x1xf32> to vector<32x2xf32>
    %231 = arith.mulf %229, %230 : vector<32x2xf32>
    %cst_150 = arith.constant dense<0.000000e+00> : vector<2xf32>
    %232 = vector.multi_reduction <add>, %231, %cst_150 [0] : vector<32x2xf32> to vector<2xf32>
    %233 = vector.shape_cast %232 : vector<2xf32> to vector<1x2xf32>
    %c1_151 = arith.constant 1 : index
    %c0_152 = arith.constant 0 : index
    %c0_153 = arith.constant 0 : index
    %234 = vector.load %arg11[%c1_151, %c0_152, %c0_153] : memref<2x1x2xf32, #tpu.memory_space<vmem>>, vector<1x1x2xf32>
    %235 = vector.shape_cast %234 : vector<1x1x2xf32> to vector<1x2xf32>
    %236 = arith.addf %233, %235 : vector<1x2xf32>
    %cst_154 = arith.constant 0.000000e+00 : f32
    %237 = vector.broadcast %cst_154 : f32 to vector<1x2xf32>
    %238 = arith.maximumf %236, %237 : vector<1x2xf32>
    %c1_155 = arith.constant 1 : index
    %c0_156 = arith.constant 0 : index
    %c0_157 = arith.constant 0 : index
    %239 = vector.load %arg12[%c1_155, %c0_156, %c0_157] : memref<2x32x2xf32, #tpu.memory_space<vmem>>, vector<1x32x2xf32>
    %240 = vector.shape_cast %239 : vector<1x32x2xf32> to vector<32x2xf32>
    %241 = vector.broadcast %238 : vector<1x2xf32> to vector<32x2xf32>
    %242 = arith.mulf %240, %241 : vector<32x2xf32>
    %cst_158 = arith.constant dense<0.000000e+00> : vector<32xf32>
    %243 = vector.multi_reduction <add>, %242, %cst_158 [1] : vector<32x2xf32> to vector<32xf32>
    %244 = vector.shape_cast %243 : vector<32xf32> to vector<32x1xf32>
    %c1_159 = arith.constant 1 : index
    %c0_160 = arith.constant 0 : index
    %c0_161 = arith.constant 0 : index
    %245 = vector.load %arg13[%c1_159, %c0_160, %c0_161] : memref<2x32x1xf32, #tpu.memory_space<vmem>>, vector<1x32x1xf32>
    %246 = vector.shape_cast %245 : vector<1x32x1xf32> to vector<32x1xf32>
    %247 = arith.addf %244, %246 : vector<32x1xf32>
    %cst_162 = arith.constant 0.000000e+00 : f32
    %248 = vector.broadcast %cst_162 : f32 to vector<32x1xf32>
    %249 = arith.subf %248, %247 : vector<32x1xf32>
    %250 = math.exp %249 : vector<32x1xf32>
    %cst_163 = arith.constant 1.000000e+00 : f32
    %251 = vector.broadcast %cst_163 : f32 to vector<32x1xf32>
    %252 = arith.addf %251, %250 : vector<32x1xf32>
    %253 = tpu.reciprocal %252 {approx = true} : vector<32x1xf32> -> vector<32x1xf32>
    %254 = vector.broadcast %253 : vector<32x1xf32> to vector<32x256xf32>
    %255 = arith.mulf %223, %254 : vector<32x256xf32>
    %cst_164 = arith.constant 1.000000e-01 : f32
    %256 = vector.broadcast %cst_164 : f32 to vector<32x256xf32>
    %257 = arith.mulf %256, %255 : vector<32x256xf32>
    %258 = arith.addf %205, %257 : vector<32x256xf32>
    %259 = arith.addf %258, %34 : vector<32x256xf32>
    %c0_165 = arith.constant 0 : index
    %c0_166 = arith.constant 0 : index
    %c0_167 = arith.constant 0 : index
    %260 = vector.load %arg14[%c0_165, %c0_166, %c0_167] : memref<1x32x256xf32, #tpu.memory_space<vmem>>, vector<1x32x256xf32>
    %261 = vector.shape_cast %260 : vector<1x32x256xf32> to vector<32x256xf32>
    %262 = vector.shape_cast %259 : vector<32x256xf32> to vector<1x32x256xf32>
    tpu.vector_store %arg14[%c0_165, %c0_166, %c0_167], %262 {strides = array<i32>} : memref<1x32x256xf32, #tpu.memory_space<vmem>>, vector<1x32x256xf32>,
    return
  }
  func.func @transform_0(%arg0: i32) -> (i32, i32, i32) {
    %c0_i32 = arith.constant 0 : i32
    %c0_i32_0 = arith.constant 0 : i32
    %c0_i32_1 = arith.constant 0 : i32
    return %arg0, %c0_i32, %c0_i32_0 : i32, i32, i32
  }
  func.func @transform_1(%arg0: i32) -> (i32, i32, i32, i32) {
    %c0_i32 = arith.constant 0 : i32
    %c0_i32_0 = arith.constant 0 : i32
    %c0_i32_1 = arith.constant 0 : i32
    %c0_i32_2 = arith.constant 0 : i32
    %c0_i32_3 = arith.constant 0 : i32
    return %c0_i32, %c0_i32_0, %c0_i32_1, %c0_i32_2 : i32, i32, i32, i32
  }
  func.func @transform_2(%arg0: i32) -> (i32, i32, i32) {
    %c0_i32 = arith.constant 0 : i32
    %c0_i32_0 = arith.constant 0 : i32
    %c0_i32_1 = arith.constant 0 : i32
    %c0_i32_2 = arith.constant 0 : i32
    return %c0_i32, %c0_i32_0, %c0_i32_1 : i32, i32, i32
  }
  func.func @transform_3(%arg0: i32) -> (i32, i32, i32, i32) {
    %c0_i32 = arith.constant 0 : i32
    %c0_i32_0 = arith.constant 0 : i32
    %c0_i32_1 = arith.constant 0 : i32
    %c0_i32_2 = arith.constant 0 : i32
    %c0_i32_3 = arith.constant 0 : i32
    return %c0_i32, %c0_i32_0, %c0_i32_1, %c0_i32_2 : i32, i32, i32, i32
  }
  func.func @transform_4(%arg0: i32) -> (i32, i32, i32) {
    %c0_i32 = arith.constant 0 : i32
    %c0_i32_0 = arith.constant 0 : i32
    %c0_i32_1 = arith.constant 0 : i32
    %c0_i32_2 = arith.constant 0 : i32
    return %c0_i32, %c0_i32_0, %c0_i32_1 : i32, i32, i32
  }
  func.func @transform_5(%arg0: i32) -> (i32, i32, i32) {
    %c0_i32 = arith.constant 0 : i32
    %c0_i32_0 = arith.constant 0 : i32
    %c0_i32_1 = arith.constant 0 : i32
    %c0_i32_2 = arith.constant 0 : i32
    return %c0_i32, %c0_i32_0, %c0_i32_1 : i32, i32, i32
  }
  func.func @transform_6(%arg0: i32) -> (i32, i32, i32) {
    %c0_i32 = arith.constant 0 : i32
    %c0_i32_0 = arith.constant 0 : i32
    %c0_i32_1 = arith.constant 0 : i32
    %c0_i32_2 = arith.constant 0 : i32
    return %c0_i32, %c0_i32_0, %c0_i32_1 : i32, i32, i32
  }
  func.func @transform_7(%arg0: i32) -> (i32, i32, i32) {
    %c0_i32 = arith.constant 0 : i32
    %c0_i32_0 = arith.constant 0 : i32
    %c0_i32_1 = arith.constant 0 : i32
    %c0_i32_2 = arith.constant 0 : i32
    return %c0_i32, %c0_i32_0, %c0_i32_1 : i32, i32, i32
  }
  func.func @transform_8(%arg0: i32) -> (i32, i32, i32) {
    %c0_i32 = arith.constant 0 : i32
    %c0_i32_0 = arith.constant 0 : i32
    %c0_i32_1 = arith.constant 0 : i32
    %c0_i32_2 = arith.constant 0 : i32
    return %c0_i32, %c0_i32_0, %c0_i32_1 : i32, i32, i32
  }
  func.func @transform_9(%arg0: i32) -> (i32, i32, i32) {
    %c0_i32 = arith.constant 0 : i32
    %c0_i32_0 = arith.constant 0 : i32
    %c0_i32_1 = arith.constant 0 : i32
    %c0_i32_2 = arith.constant 0 : i32
    return %c0_i32, %c0_i32_0, %c0_i32_1 : i32, i32, i32
  }
  func.func @transform_10(%arg0: i32) -> (i32, i32, i32) {
    %c0_i32 = arith.constant 0 : i32
    %c0_i32_0 = arith.constant 0 : i32
    %c0_i32_1 = arith.constant 0 : i32
    %c0_i32_2 = arith.constant 0 : i32
    return %c0_i32, %c0_i32_0, %c0_i32_1 : i32, i32, i32
  }
  func.func @transform_11(%arg0: i32) -> (i32, i32, i32) {
    %c0_i32 = arith.constant 0 : i32
    %c0_i32_0 = arith.constant 0 : i32
    %c0_i32_1 = arith.constant 0 : i32
    %c0_i32_2 = arith.constant 0 : i32
    return %c0_i32, %c0_i32_0, %c0_i32_1 : i32, i32, i32
  }
  func.func @transform_12(%arg0: i32) -> (i32, i32, i32) {
    %c0_i32 = arith.constant 0 : i32
    %c0_i32_0 = arith.constant 0 : i32
    %c0_i32_1 = arith.constant 0 : i32
    %c0_i32_2 = arith.constant 0 : i32
    return %c0_i32, %c0_i32_0, %c0_i32_1 : i32, i32, i32
  }
  func.func @transform_13(%arg0: i32) -> (i32, i32, i32) {
    %c0_i32 = arith.constant 0 : i32
    %c0_i32_0 = arith.constant 0 : i32
    %c0_i32_1 = arith.constant 0 : i32
    return %arg0, %c0_i32, %c0_i32_0 : i32, i32, i32
  }
}

</mosaic_0001>

<bundles_post_ra>
// kernel: apply.1
= control target key start
LH: loop header
LB: loop body
LE: loop exit
PB: predicated region body
PF: predicated region fallthrough
CT: control target
= control target key end

     0   :  { %18 = vsyncpa [#allocation3], 0  ;;  %s4694_s0 = inlined_call_operand.vmem [shape: f32[2,32,256], index: 0, kind: input, shape index: {}]   ;;  %s4695_s1 = inlined_call_operand.vmem [shape: bf16[2,3,32,96], index: 1, kind: input, shape index: {}]   ;;  %s4696_s2 = inlined_call_operand.vmem [shape: f32[2,32,1], index: 2, kind: input, shape index: {}]   ;;  %s4697_s3 = inlined_call_operand.vmem [shape: bf16[2,3,32,96], index: 3, kind: input, shape index: {}]   ;;  %s4698_s4 = inlined_call_operand.vmem [shape: f32[2,32,1], index: 4, kind: input, shape index: {}]   ;;  %s4699_s5 = inlined_call_operand.hbm [shape: bf16[2,32,32], index: 5, kind: input, shape index: {}]   ;;  %s4700_s6 = inlined_call_operand.vmem [shape: f32[2,32,1], index: 6, kind: input, shape index: {}]   ;;  %s4701_s7 = inlined_call_operand.hbm [shape: bf16[2,32,32], index: 7, kind: input, shape index: {}]   ;;  %s4702_s8 = inlined_call_operand.vmem [shape: f32[2,32,1], index: 8, kind: input, shape index: {}]   ;;  %s4703_s9 = inlined_call_operand.vmem [shape: f32[2,32,2], index: 9, kind: input, shape index: {}]   ;;  %s4704_s10 = inlined_call_operand.vmem [shape: f32[2,1,2], index: 10, kind: input, shape index: {}]   ;;  %s4705_s11 = inlined_call_operand.vmem [shape: f32[2,32,2], index: 11, kind: input, shape index: {}]   ;;  %s4706_s12 = inlined_call_operand.vmem [shape: f32[2,32,1], index: 12, kind: input, shape index: {}]   ;;  %s4707_s13 = inlined_call_operand.vmem [shape: f32[2,32,256], index: 13, kind: output, shape index: {}]  }
   0x1   :  { %19 = vsyncpa [#allocation5], 0  ;;  %s3411_s25 = smov 0  }
   0x2 LB: > { %s3417_s26 = sadd.s32 4294967295, %s3329_s25   ;;  %p2990_p0 = scmp.ge.s32.totalorder %s3329_s25, 1  ;;  %s3329_s25 = sphi %s3411_s25, %s25_s25  }
   0x3   : > { %p334_p1 = scmp.lt.s32.totalorder %s3329_s25, 3  ;;  %s3331_s27 = smov [#allocation2]  }
   0x4   : > { %s358_s28 = sshll.u32 %s3331_s27, 4  ;;  %p3159_p3 = scmp.eq.s32.totalorder %s3417_s26, 0  ;;  %s359_s28 = int_to_ptr.vmem [resolvable:$true] %s358_s28 }
   0x5   : > { %p3421_p2 = pnand %p2990_p0, %p334_p1  ;;  %s3332_s30 = smov [#allocation4]  }
   0x6   : > { %s374_s14 = sshll.u32 %s3332_s30, 4  ;;  %s3274_s16 = scalar_lea.vmem %s359_s28, 512  ;;  %s375_s14 = int_to_ptr.vmem [resolvable:$true] %s374_s14 }
   0x7   : > { %p3152_p4 = pneg %p3421_p2  ;;  %p3275_p7 = scmp.ne.s32.totalorder %s359_s28, %s3274_s16 }
   0x8   : > { %p3282_p10 = scmp.lt.s32.totalorder %s359_s28, %s359_s28  ;;  %p3283_p11 = scmp.lt.s32.totalorder %s3274_s16, %s3274_s16 }
   0x9   : > { %p3430_p5 = pnand %p3159_p3, %p3152_p4 }
   0xa   : > { %p3284_p12 = por %p3283_p11, %p3282_p10 }
   0xb   : > { %p3265_p6 = pneg %p3430_p5 }
   0xd   : > { %p3277_p8 = pnand %p3275_p7, %p3265_p6 }
   0xf   : > { %p3278_p9 = pneg %p3277_p8 }
  0x11   : > { %p3285_p13 = pnand %p3284_p12, %p3278_p9 }
  0x13   : > { %3288 = shalt.err (!%p3285_p13)
}
  0x14   : > { %s3333_s17 = smov 64   ;;  %s3334_s18 = smov 4  }
  0x15   : > { %3155 = dma.hbm_to_vmem [thread:$0]  (!%p3430_p5), %s4699_s5, 512, %s359_s28, [#allocation3], %s3333_s17, %s3333_s17, %s3334_s18  }
  0x16   : > { %s3300_s21 = scalar_lea.vmem %s375_s14, 512  ;;  %p3308_p7 = scmp.lt.s32.totalorder %s375_s14, %s375_s14 }
  0x17   : > { %p3301_p0 = scmp.ne.s32.totalorder %s375_s14, %s3300_s21  ;;  %p3309_p8 = scmp.lt.s32.totalorder %s3300_s21, %s3300_s21 }
  0x19   : > { %p3303_p1 = pnand %p3301_p0, %p3265_p6  ;;  %p3310_p10 = por %p3309_p8, %p3308_p7 }
  0x1b   : > { %p3304_p4 = pneg %p3303_p1 }
  0x1d   : > { %p3311_p9 = pnand %p3310_p10, %p3304_p4 }
  0x1f   : > { %3314 = shalt.err (!%p3311_p9)
}
  0x20   : > { %3158 = dma.hbm_to_vmem [thread:$0]  (!%p3430_p5), %s4701_s7, 512, %s375_s14, [#allocation5], %s3333_s17, %s3333_s17, %s3334_s18  }
  0x21   : > { %413 = sbr.rel (%p3421_p2) target bundleno = 3913 (0xf49), region = 72 }
  0x26   : > { %3320 = dma.done.wait (%p3159_p3), [#allocation3], 512  }
  0x27   : > { %3322 = vsyncadd (%p3159_p3), [#allocation3], 4294966784 }
  0x28   : > { %3324 = dma.done.wait (%p3159_p3), [#allocation5], 512  }
  0x29   : > { %3326 = vsyncadd (%p3159_p3), [#allocation5], 4294966784  ;;  %p461_p6 = scmp.lt.s32.totalorder %s3417_s26, 1  ;;  %s3335_s30 = smov 112   ;;  %v3337_v8 = vmov 0   ;;  %v908_v9 = vld [vmem:[%s4696_s2 + $0x18] sm:$0xff]  ;;  %v472_v11 = vlaneseq }
  0x2a   : > { %s3336_s14 = smov 16   ;;  %662 = vmatprep.mubr.bf16.mxu0 %v3337_v8  ;;  %741 = vmatprep.mubr.bf16.mxu1 %v3337_v8  ;;  %v907_v10 = vld [vmem:[%s4696_s2 + $0x10] sm:$0xff]  ;;  %v3338_v16 = vmov 0.0   ;;  %vm623_vm4 = vcmask 785408   ;;  %s3339_s20 = smov 1   ;;  %vm1404_vm11 = vcmask 261120  }
  0x2b   : > { %s4713_s26 = smov (!%p461_p6, %s3417_s26), 1  ;;  %3182 = vset.pattern.permute.xlu1 %v3337_v8  ;;  %3181 = vset.pattern.permute.xlu0 %v3337_v8  ;;  %v3541_v12 = vand.u32 127, %v472_v11  ;;  %s3340_s21 = smov 127   ;;  %vm1598_vm12 = vcmask 15360  }
  0x2c   : > { %s4708_s24 = sshll.u32 %s4713_s26, 6  ;;  %s4711_s15 = sshll.u32 %s4713_s26, 6 }
  0x2d   : > { %s3472_s29 = scalar_lea.vmem %s4694_s0, %s4708_s24  ;;  %v3544_v13 = vadd.s32 128, %v3541_v12  ;;  %vm588_vm1 = vcmp.lt.s32.totalorder %v3541_v12, 112  ;;  %vm547_vm2 = vcmp.lt.s32.totalorder %v3541_v12, 16  ;;  %vm511_vm3 = vcmp.ge.s32.totalorder %v3541_v12, 16 }
  0x2e   : > { %v3475_v0 = vld [vmem:[%s3472_s29 + $0x28] sm:$0xff]  ;;  %v3478_v1 = vld [vmem:[%s3472_s29 + $0x20] sm:$0xff]  ;;  %v3485_v2 = vld [vmem:[%s3472_s29 + $0x38] sm:$0xff]  ;;  %v3588_v47 = vsel %vm511_vm3, 1.0, %v3338_v16  ;;  %vm778_vm7 = vcmp.lt.s32.totalorder %v3541_v12, 1  ;;  %vm880_vm10 = vcmp.lt.s32.totalorder %v3541_v12, 127 }
  0x2f   : > { %584 = vrot.lane.b32.xlu1 %v3475_v0, %s3335_s30  ;;  %576 = vrot.lane.b32.xlu0 %v3478_v1, %s3335_s30  ;;  %v3488_v3 = vld [vmem:[%s3472_s29 + $0x30] sm:$0xff]  ;;  %v3498_v5 = vld [vmem:[%s3472_s29] sm:$0xff]  ;;  %vm518_vm0 = vcmp.lt.s32.totalorder %v3544_v13, 240  ;;  %v571_v41 = vpack.c.bf16 %v3485_v2, %v3475_v0 }
  0x30   : > { %v3491_v4 = vld [vmem:[%s3472_s29 + $0x10] sm:$0xff]  ;;  %v3501_v6 = vld [vmem:[%s3472_s29 + $0x18] sm:$0xff]  ;;  %v3504_v7 = vld [vmem:[%s3472_s29 + $0x8] sm:$0xff]  ;;  %v3549_v17 = vsel %vm518_vm0, 1.0, %v3338_v16  ;;  %v570_v43 = vpack.c.bf16 %v3488_v3, %v3478_v1 }
  0x31   : > { %v569_v46 = vpack.c.bf16 %v3501_v6, %v3504_v7  ;;  %v568_v52 = vpack.c.bf16 %v3491_v4, %v3498_v5 }
  0x33   : > { %586 = vrot.lane.b32.xlu1 %v3485_v2, %s3335_s30  ;;  %578 = vrot.lane.b32.xlu0 %v3488_v3, %s3335_s30 }
  0x37   : > { %574 = vrot.lane.b32.xlu1 %v3491_v4, %s3335_s30  ;;  %572 = vrot.lane.b32.xlu0 %v3498_v5, %s3335_s30 }
  0x3b   : > { %582 = vrot.lane.b32.xlu1 %v3501_v6, %s3335_s30  ;;  %580 = vrot.lane.b32.xlu0 %v3504_v7, %s3335_s30 }
  0x3f   : > { %537 = vrot.lane.b32.xlu1 %v3488_v3, %s3336_s14  ;;  %535 = vrot.lane.b32.xlu0 %v3478_v1, %s3336_s14 }
  0x43   : > { %545 = vrot.lane.b32.xlu1 %v3485_v2, %s3336_s14  ;;  %543 = vrot.lane.b32.xlu0 %v3475_v0, %s3336_s14 }
  0x47   : > { %533 = vrot.lane.b32.xlu1 %v3491_v4, %s3336_s14  ;;  %531 = vrot.lane.b32.xlu0 %v3498_v5, %s3336_s14  ;;  %v3183_v5 = vld [vmem:[%s4695_s1] sm:$0xff]  }
  0x4b   : > { %541 = vrot.lane.b32.xlu1 %v3501_v6, %s3336_s14  ;;  %539 = vrot.lane.b32.xlu0 %v3504_v7, %s3336_s14  ;;  %v3184_v6 = vld [vmem:[%s4695_s1 + $0x20] sm:$0xff]   ;;  %v3185_v7 = vld [vmem:[%s4695_s1 + $0x8] sm:$0xff]  }
  0x4f   : > { %926 = vperm.xlu1 %3182, %v908_v9   ;;  %921 = vperm.xlu0 %3181, %v907_v10   ;;  %v3186_v9 = vld [vmem:[%s4695_s1 + $0x28] sm:$0xff]   ;;  %v3187_v10 = vld [vmem:[%s4695_s1 + $0x10] sm:$0xff]  }
  0xa1   : > { %v585_v14 = vpop.permute.xlu1 %584  ;;  %v577_v15 = vpop.permute.xlu0 %576 }
  0xa2   : > { %v595_v18 = vsel %vm588_vm1, %v585_v14, %v577_v15  ;;  %v591_v25 = vsel %vm588_vm1, %v577_v15, %v585_v14  ;;  %v3188_v14 = vld [vmem:[%s4695_s1 + $0x18] sm:$0xff]  }
  0xa3   : > { %v602_v22 = vmul.f32 %v3549_v17, %v595_v18 }
  0xa5   : > { %v587_v19 = vpop.permute.xlu1 %586  ;;  %v579_v20 = vpop.permute.xlu0 %578 }
  0xa6   : > { %v596_v21 = vsel %vm588_vm1, %v587_v19, %v579_v20  ;;  %v592_v23 = vsel %vm588_vm1, %v579_v20, %v587_v19 }
  0xa7   : > { %v604_v24 = vmul.f32 %v3549_v17, %v596_v21  ;;  %v3563_v29 = vpack.c.bf16 %v592_v23, %v591_v25 }
  0xa9   : > { %v575_v26 = vpop.permute.xlu1 %574  ;;  %v573_v27 = vpop.permute.xlu0 %572  ;;  %v3561_v28 = vpack.c.bf16 %v604_v24, %v602_v22 }
  0xab   : > { %634 = vmatprep.subr.bf16.mxu0 %v3561_v28  ;;  %713 = vmatprep.subr.bf16.mxu1 %v3561_v28 }
  0xac   : > { %635 = vmatpush1.bf16.msra.mxu0 %v3563_v29  ;;  %714 = vmatpush1.bf16.msra.mxu1 %v3563_v29 }
  0xad   : > { %v583_v30 = vpop.permute.xlu1 %582  ;;  %v581_v31 = vpop.permute.xlu0 %580 }
  0xae   : > { %v594_v32 = vsel %vm588_vm1, %v583_v30, %v575_v26  ;;  %v593_v33 = vsel %vm588_vm1, %v581_v31, %v573_v27  ;;  %v590_v34 = vsel %vm588_vm1, %v575_v26, %v583_v30  ;;  %v589_v36 = vsel %vm588_vm1, %v573_v27, %v581_v31 }
  0xaf   : > { %v600_v35 = vmul.f32 %v3549_v17, %v594_v32  ;;  %v598_v37 = vmul.f32 %v3549_v17, %v593_v33  ;;  %v605_v42 = vpack.c.bf16 %v590_v34, %v589_v36  ;;  %v905_v33 = vld [vmem:[%s4696_s2] sm:$0xff]  ;;  %v906_v34 = vld [vmem:[%s4696_s2 + $0x8] sm:$0xff] }
  0xb1   : > { %v538_v38 = vpop.permute.xlu1 %537  ;;  %v536_v39 = vpop.permute.xlu0 %535  ;;  %v606_v40 = vpack.c.bf16 %v600_v35, %v598_v37 }
  0xb3   : > { %636 = vmatprep.subr.bf16.mxu0 %v606_v40  ;;  %715 = vmatprep.subr.bf16.mxu1 %v606_v40 }
  0xb4   : > { %637 = vmatpush1.bf16.msra.mxu0 %v605_v42  ;;  %716 = vmatpush1.bf16.msra.mxu1 %v605_v42 }
  0xb5   : > { %v546_v44 = vpop.permute.xlu1 %545  ;;  %v544_v45 = vpop.permute.xlu0 %543  ;;  %638 = vmatprep.subr.bf16.mxu0 %v571_v41  ;;  %717 = vmatprep.subr.bf16.mxu1 %v571_v41 }
  0xb6   : > { %v555_v48 = vsel %vm547_vm2, %v546_v44, %v538_v38  ;;  %v554_v49 = vsel %vm547_vm2, %v544_v45, %v536_v39  ;;  %v551_v50 = vsel %vm547_vm2, %v538_v38, %v546_v44  ;;  %v550_v51 = vsel %vm547_vm2, %v536_v39, %v544_v45 }
  0xb7   : > { %v562_v53 = vmul.f32 %v3588_v47, %v555_v48  ;;  %v560_v54 = vmul.f32 %v3588_v47, %v554_v49  ;;  %v567_v57 = vpack.c.bf16 %v551_v50, %v550_v51 }
  0xb8   : > { %639 = vmatpush1.bf16.msra.mxu0 %v570_v43  ;;  %718 = vmatpush1.bf16.msra.mxu1 %v570_v43 }
  0xb9   : > { %v534_v55 = vpop.permute.xlu1 %533  ;;  %v532_v56 = vpop.permute.xlu0 %531  ;;  %640 = vmatprep.subr.bf16.mxu0 %v569_v46  ;;  %719 = vmatprep.subr.bf16.mxu1 %v569_v46  ;;  %v566_v60 = vpack.c.bf16 %v562_v53, %v560_v54  ;;  %v479_v53 = vand.u32 15, %v3541_v12  ;;  %v486_v54 = vand.u32 15, %v3544_v13 }
  0xbb   : > { %vm499_vm5 = vcmp.ne.s32.totalorder %v479_v53, 0  ;;  %vm500_vm6 = vcmp.ne.s32.totalorder %v486_v54, 0  ;;  %vm505_vm8 = vcmp.ne.s32.totalorder %v479_v53, 15  ;;  %vm506_vm9 = vcmp.ne.s32.totalorder %v486_v54, 15 }
  0xbc   : > { %641 = vmatpush1.bf16.msra.mxu0 %v568_v52  ;;  %720 = vmatpush1.bf16.msra.mxu1 %v568_v52 }
  0xbd   : > { %v542_v58 = vpop.permute.xlu1 %541  ;;  %v540_v59 = vpop.permute.xlu0 %539  ;;  %642 = vmatprep.subr.bf16.mxu0 %v567_v57  ;;  %721 = vmatprep.subr.bf16.mxu1 %v567_v57 }
  0xbe   : > { %v549_v61 = vsel %vm547_vm2, %v534_v55, %v542_v58  ;;  %v553_v62 = vsel %vm547_vm2, %v542_v58, %v534_v55  ;;  %v548_v63 = vsel %vm547_vm2, %v532_v56, %v540_v59  ;;  %v552_v0 = vsel %vm547_vm2, %v540_v59, %v532_v56 }
  0xbf   : > { %v558_v1 = vmul.f32 %v3588_v47, %v553_v62  ;;  %v556_v2 = vmul.f32 %v3588_v47, %v552_v0  ;;  %v565_v3 = vpack.c.bf16 %v549_v61, %v548_v63  ;;  %v3687_v61 = vsel %vm500_vm6, 1.0, %v3338_v16 }
  0xc0   : > { %643 = vmatpush1.bf16.msra.mxu0 %v566_v60  ;;  %722 = vmatpush1.bf16.msra.mxu1 %v566_v60 }
  0xc1   : > { %644 = vmatprep.subr.bf16.mxu0 %v565_v3  ;;  %723 = vmatprep.subr.bf16.mxu1 %v565_v3  ;;  %v564_v4 = vpack.c.bf16 %v558_v1, %v556_v2  ;;  %v3697_v2 = vsel %vm505_vm8, 1.0, %v3338_v16 }
  0xc4   : > { %645 = vmatpush1.bf16.msra.mxu0 %v564_v4  ;;  %724 = vmatpush1.bf16.msra.mxu1 %v564_v4 }
  0xc5   : > { %815 = vmatprep.subr.bf16.mxu0 %v3561_v28 }
  0xc7   : > { %3009 = vmatmul.mubr.msk.bf16.vlgmr.msra.gmra.mxu0 %vm623_vm4, %v3183_v5  ;;  %3021 = vmatmul.mubr.msk.bf16.vlgmr.msra.gmra.mxu1 %vm623_vm4, %v3184_v6 }
  0xc8   : > { %816 = vmatpush1.bf16.msra.mxu0 %v3563_v29  ;;  %672 = vmatprep.mubr.bf16.mxu0 %v3337_v8 }
  0xc9   : > { %817 = vmatprep.subr.bf16.mxu0 %v606_v40  ;;  %751 = vmatprep.mubr.bf16.mxu1 %v3337_v8 }
  0xca   : > { %v3666_v35 = vpop.permute.xlu1 %926  ;;  %v3668_v36 = vpop.permute.xlu0 %921 }
  0xcc   : > { %818 = vmatpush1.bf16.msra.mxu0 %v605_v42 }
  0xcd   : > { %819 = vmatprep.subr.bf16.mxu0 %v571_v41 }
  0xcf   : > { %3010 = vmatmul.mubr.msk.bf16.gmra.mxu0 %vm623_vm4, %v3185_v7  ;;  %3022 = vmatmul.mubr.msk.bf16.gmra.mxu1 %vm623_vm4, %v3186_v9 }
  0xd0   : > { %820 = vmatpush1.bf16.msra.mxu0 %v570_v43  ;;  %843 = vmatprep.mubr.bf16.mxu0 %v3337_v8 }
  0xd1   : > { %821 = vmatprep.subr.bf16.mxu0 %v569_v46  ;;  %1073 = vmatprep.mubr.bf16.mxu1 %v3337_v8 }
  0xd4   : > { %822 = vmatpush1.bf16.msra.mxu0 %v568_v52 }
  0xd5   : > { %823 = vmatprep.subr.bf16.mxu0 %v567_v57 }
  0xd8   : > { %824 = vmatpush1.bf16.msra.mxu0 %v566_v60  ;;  %v3684_v60 = vsel %vm499_vm5, 1.0, %v3338_v16 }
  0xd9   : > { %825 = vmatprep.subr.bf16.mxu0 %v565_v3  ;;  %v3700_v3 = vsel %vm506_vm9, 1.0, %v3338_v16 }
  0xdc   : > { %826 = vmatpush1.bf16.msra.mxu0 %v564_v4 }
  0xdf   : > { %3025 = vmatmul.mubr.msk.bf16.vlgmr.msra.gmra.mxu0 %vm623_vm4, %v3187_v10 }
  0xe0   : > { %853 = vmatprep.mubr.bf16.mxu0 %v3337_v8 }
  0xe7   : > { %3026 = vmatmul.mubr.msk.bf16.gmra.mxu0 %vm623_vm4, %v3188_v14 }
  0xe8   : > { %1152 = vmatprep.mubr.bf16.mxu0 %v3337_v8 }
 0x187   : > { %v664_v15 = vpop.f32.mrf.mxu0  ;;  %v743_v18 = vpop.f32.mrf.mxu1 }
 0x188   : > { %762 = vrot.lane.b32.xlu1 %v664_v15, %s3339_s20 }
 0x189   : > { %v666_v19 = vpop.f32.mrf.mxu0  ;;  %v745_v20 = vpop.f32.mrf.mxu1 }
 0x18b   : > { %v668_v21 = vpop.f32.mrf.mxu0  ;;  %v747_v22 = vpop.f32.mrf.mxu1 }
 0x18c   : > { %864 = vrot.lane.b32.xlu1 %v743_v18, %s3340_s21  ;;  %764 = vrot.lane.b32.xlu0 %v668_v21, %s3339_s20 }
 0x18d   : > { %v670_v23 = vpop.f32.mrf.mxu0  ;;  %v749_v25 = vpop.f32.mrf.mxu1 }
 0x18f   : > { %v674_v24 = vpop.f32.mrf.mxu0  ;;  %v753_v27 = vpop.f32.mrf.mxu1 }
 0x190   : > { %770 = vrot.lane.b32.xlu1 %v666_v19, %s3339_s20  ;;  %866 = vrot.lane.b32.xlu0 %v747_v22, %s3340_s21 }
 0x191   : > { %v676_v26 = vpop.f32.mrf.mxu0  ;;  %v755_v29 = vpop.f32.mrf.mxu1 }
 0x193   : > { %v678_v28 = vpop.f32.mrf.mxu0  ;;  %v757_v30 = vpop.f32.mrf.mxu1 }
 0x194   : > { %872 = vrot.lane.b32.xlu1 %v745_v20, %s3340_s21  ;;  %772 = vrot.lane.b32.xlu0 %v670_v23, %s3339_s20 }
 0x195   : > { %v680_v31 = vpop.f32.mrf.mxu0  ;;  %v759_v32 = vpop.f32.mrf.mxu1 }
 0x198   : > { %874 = vrot.lane.b32.xlu0 %v749_v25, %s3340_s21  ;;  %768 = vrot.lane.b32.xlu1 %v678_v28, %s3339_s20 }
 0x19c   : > { %766 = vrot.lane.b32.xlu0 %v674_v24, %s3339_s20  ;;  %870 = vrot.lane.b32.xlu1 %v757_v30, %s3340_s21 }
 0x19f   : > { %v3670_v37 = vpop.f32.mrf.mxu0 }
 0x1a0   : > { %868 = vrot.lane.b32.xlu0 %v753_v27, %s3340_s21  ;;  %776 = vrot.lane.b32.xlu1 %v680_v31, %s3339_s20 }
 0x1a1   : > { %v3672_v39 = vpop.f32.mrf.mxu0 }
 0x1a3   : > { %v3676_v42 = vpop.f32.mrf.mxu0 }
 0x1a4   : > { %774 = vrot.lane.b32.xlu0 %v676_v26, %s3339_s20  ;;  %878 = vrot.lane.b32.xlu1 %v759_v32, %s3340_s21 }
 0x1a5   : > { %v3678_v45 = vpop.f32.mrf.mxu0 }
 0x1a7   : > { %v855_v49 = vpop.f32.mrf.mxu0 }
 0x1a8   : > { %876 = vrot.lane.b32.xlu0 %v755_v29, %s3340_s21  ;;  %911 = vperm.xlu1 %3182, %v905_v33  }
 0x1a9   : > { %v857_v52 = vpop.f32.mrf.mxu0 }
 0x1ab   : > { %v859_v57 = vpop.f32.mrf.mxu0 }
 0x1ac   : > { %916 = vperm.xlu0 %3181, %v906_v34  }
 0x1ad   : > { %v861_v63 = vpop.f32.mrf.mxu0 }
 0x1fa   : > { %v763_v38 = vpop.permute.xlu1 %762 }
 0x1fe   : > { %v3674_v40 = vpop.permute.xlu1 %864  ;;  %v765_v41 = vpop.permute.xlu0 %764 }
 0x202   : > { %v771_v43 = vpop.permute.xlu1 %770  ;;  %v867_v44 = vpop.permute.xlu0 %866 }
 0x203   : > { %v783_v4 = vsel %vm778_vm7, %v771_v43, %v763_v38  ;;  %v779_v5 = vsel %vm778_vm7, %v763_v38, %v771_v43 }
 0x204   : > { %v787_v23 = vmul.f32 %v3684_v60, %v783_v4  ;;  %v788_v24 = vmul.f32 %v3687_v61, %v779_v5 }
 0x206   : > { %v873_v46 = vpop.permute.xlu1 %872  ;;  %v773_v48 = vpop.permute.xlu0 %772 }
 0x207   : > { %v881_v25 = vsel %vm880_vm10, %v3674_v40, %v873_v46  ;;  %v784_v29 = vsel %vm778_vm7, %v773_v48, %v765_v41  ;;  %v780_v30 = vsel %vm778_vm7, %v765_v41, %v773_v48 }
 0x208   : > { %v889_v53 = vmul.f32 %v3697_v2, %v881_v25 }
 0x20a   : > { %v875_v50 = vpop.permute.xlu0 %874  ;;  %v769_v51 = vpop.permute.xlu1 %768 }
 0x20b   : > { %v882_v41 = vsel %vm880_vm10, %v867_v44, %v875_v50  ;;  %v886_v48 = vsel %vm880_vm10, %v875_v50, %v867_v44  ;;  %v848_v44 = vadd.f32 %v3672_v39, %v788_v24  ;;  %v1317_v24 = vld [vmem:[%s4698_s4 + $0x18] sm:$0xff] }
 0x20c   : > { %v891_v50 = vmul.f32 %v3697_v2, %v882_v41 }
 0x20e   : > { %v767_v55 = vpop.permute.xlu0 %766  ;;  %v871_v56 = vpop.permute.xlu1 %870 }
 0x212   : > { %v869_v58 = vpop.permute.xlu0 %868  ;;  %v777_v59 = vpop.permute.xlu1 %776 }
 0x213   : > { %v786_v13 = vsel %vm778_vm7, %v777_v59, %v769_v51  ;;  %v782_v62 = vsel %vm778_vm7, %v769_v51, %v777_v59  ;;  %v885_v51 = vsel %vm880_vm10, %v873_v46, %v3674_v40  ;;  %v790_v40 = vmul.f32 %v3687_v61, %v780_v30 }
 0x214   : > { %v793_v0 = vmul.f32 %v3684_v60, %v786_v13  ;;  %v794_v1 = vmul.f32 %v3687_v61, %v782_v62  ;;  %v890_v46 = vmul.f32 %v3700_v3, %v885_v51  ;;  %v892_v13 = vmul.f32 %v3700_v3, %v886_v48 }
 0x215   : > { %v852_v4 = vadd.f32 %v3678_v45, %v790_v40 }
 0x216   : > { %v860_v6 = vadd.f32 %v859_v57, %v793_v0  ;;  %v862_v7 = vadd.f32 %v861_v63, %v794_v1  ;;  %v775_v9 = vpop.permute.xlu0 %774  ;;  %v879_v10 = vpop.permute.xlu1 %878  ;;  %v789_v57 = vmul.f32 %v3684_v60, %v784_v29 }
 0x217   : > { %v781_v14 = vsel %vm778_vm7, %v767_v55, %v775_v9  ;;  %v785_v15 = vsel %vm778_vm7, %v775_v9, %v767_v55  ;;  %v884_v16 = vsel %vm880_vm10, %v871_v56, %v879_v10  ;;  %v888_v18 = vsel %vm880_vm10, %v879_v10, %v871_v56 }
 0x218   : > { %v791_v19 = vmul.f32 %v3684_v60, %v785_v15  ;;  %v792_v20 = vmul.f32 %v3687_v61, %v781_v14  ;;  %v895_v21 = vmul.f32 %v3697_v2, %v884_v16  ;;  %v896_v22 = vmul.f32 %v3700_v3, %v888_v18 }
 0x219   : > { %v846_v56 = vadd.f32 %v3670_v37, %v787_v23  ;;  %v850_v1 = vadd.f32 %v3676_v42, %v789_v57  ;;  %v900_v14 = vadd.f32 %v892_v13, %v852_v4  ;;  %v1316_v23 = vld [vmem:[%s4698_s4 + $0x10] sm:$0xff] }
 0x21a   : > { %v877_v26 = vpop.permute.xlu0 %876  ;;  %v903_v27 = vadd.f32 %v895_v21, %v860_v6  ;;  %v904_v28 = vadd.f32 %v896_v22, %v862_v7  ;;  %v856_v33 = vadd.f32 %v855_v49, %v791_v19  ;;  %v858_v34 = vadd.f32 %v857_v52, %v792_v20 }
 0x21b   : > { %v883_v31 = vsel %vm880_vm10, %v869_v58, %v877_v26  ;;  %v887_v32 = vsel %vm880_vm10, %v877_v26, %v869_v58  ;;  %v897_v62 = vadd.f32 %v889_v53, %v846_v56  ;;  %v898_v6 = vadd.f32 %v890_v46, %v848_v44 }
 0x21c   : > { %v893_v38 = vmul.f32 %v3697_v2, %v883_v31  ;;  %v894_v43 = vmul.f32 %v3700_v3, %v887_v32  ;;  %v935_v49 = vadd.f32 %v3666_v35, %v903_v27  ;;  %v936_v55 = vadd.f32 %v3666_v35, %v904_v28 }
 0x21d   : > { %v899_v10 = vadd.f32 %v891_v50, %v850_v1 }
 0x21e   : > { %v901_v54 = vadd.f32 %v893_v38, %v856_v33  ;;  %v902_v52 = vadd.f32 %v894_v43, %v858_v34  ;;  %v943_v63 = vmax.f32 %v935_v49, 0.0  ;;  %v944_v0 = vmax.f32 %v936_v55, 0.0 }
 0x220   : > { %v933_v58 = vadd.f32 %v3668_v36, %v901_v54  ;;  %v934_v59 = vadd.f32 %v3668_v36, %v902_v52 }
 0x222   : > { %v941_v35 = vmax.f32 %v933_v58, 0.0  ;;  %v942_v37 = vmax.f32 %v934_v59, 0.0 }
 0x223   : > { %v912_v5 = vpop.permute.xlu1 %911 }
 0x224   : > { %v929_v7 = vadd.f32 %v912_v5, %v897_v62  ;;  %v3754_v9 = vpack.c.bf16 %v944_v0, %v942_v37  ;;  %v3756_v36 = vpack.c.bf16 %v943_v63, %v941_v35  ;;  %v930_v39 = vadd.f32 %v912_v5, %v898_v6 }
 0x226   : > { %v937_v15 = vmax.f32 %v929_v7, 0.0  ;;  %v938_v42 = vmax.f32 %v930_v39, 0.0 }
 0x227   : > { %v917_v16 = vpop.permute.xlu0 %916 }
 0x228   : > { %v931_v18 = vadd.f32 %v917_v16, %v899_v10  ;;  %v932_v19 = vadd.f32 %v917_v16, %v900_v14  ;;  %985 = vrot.lane.b32.xlu1 %v937_v15, %s3335_s30 }
 0x22a   : > { %v939_v20 = vmax.f32 %v931_v18, 0.0  ;;  %v940_v21 = vmax.f32 %v932_v19, 0.0 }
 0x22c   : > { %987 = vrot.lane.b32.xlu0 %v939_v20, %s3335_s30  ;;  %989 = vrot.lane.b32.xlu1 %v941_v35, %s3335_s30  ;;  %v3761_v45 = vpack.c.bf16 %v940_v21, %v938_v42  ;;  %v3763_v22 = vpack.c.bf16 %v939_v20, %v937_v15 }
 0x230   : > { %991 = vrot.lane.b32.xlu0 %v943_v63, %s3335_s30  ;;  %997 = vrot.lane.b32.xlu1 %v942_v37, %s3335_s30 }
 0x234   : > { %999 = vrot.lane.b32.xlu0 %v944_v0, %s3335_s30  ;;  %993 = vrot.lane.b32.xlu1 %v938_v42, %s3335_s30 }
 0x238   : > { %995 = vrot.lane.b32.xlu0 %v940_v21, %s3335_s30  ;;  %949 = vrot.lane.b32.xlu1 %v941_v35, %s3336_s14 }
 0x23c   : > { %947 = vrot.lane.b32.xlu0 %v939_v20, %s3336_s14  ;;  %957 = vrot.lane.b32.xlu1 %v942_v37, %s3336_s14 }
 0x240   : > { %951 = vrot.lane.b32.xlu0 %v943_v63, %s3336_s14  ;;  %945 = vrot.lane.b32.xlu1 %v937_v15, %s3336_s14 }
 0x244   : > { %959 = vrot.lane.b32.xlu0 %v944_v0, %s3336_s14  ;;  %953 = vrot.lane.b32.xlu1 %v938_v42, %s3336_s14 }
 0x248   : > { %955 = vrot.lane.b32.xlu0 %v940_v21, %s3336_s14  ;;  %1330 = vperm.xlu1 %3182, %v1316_v23   ;;  %v3189_v21 = vld [vmem:[%s4697_s3] sm:$0xff]  }
 0x249   : > { %v3190_v23 = vld [vmem:[%s4697_s3 + $0x20] sm:$0xff]  }
 0x24c   : > { %1335 = vperm.xlu0 %3181, %v1317_v24   ;;  %v3191_v24 = vld [vmem:[%s4697_s3 + $0x8] sm:$0xff]  }
 0x29a   : > { %v986_v25 = vpop.permute.xlu1 %985 }
 0x29e   : > { %v988_v26 = vpop.permute.xlu0 %987  ;;  %v990_v27 = vpop.permute.xlu1 %989 }
 0x2a2   : > { %v992_v28 = vpop.permute.xlu0 %991  ;;  %v998_v29 = vpop.permute.xlu1 %997 }
 0x2a3   : > { %v1007_v30 = vsel %vm588_vm1, %v998_v29, %v990_v27  ;;  %v1003_v53 = vsel %vm588_vm1, %v990_v27, %v998_v29 }
 0x2a4   : > { %v1014_v34 = vmul.f32 %v3549_v17, %v1007_v30 }
 0x2a6   : > { %v1000_v31 = vpop.permute.xlu0 %999  ;;  %v994_v32 = vpop.permute.xlu1 %993 }
 0x2a7   : > { %v1008_v33 = vsel %vm588_vm1, %v1000_v31, %v992_v28  ;;  %v1004_v38 = vsel %vm588_vm1, %v992_v28, %v1000_v31  ;;  %v1005_v51 = vsel %vm588_vm1, %v994_v32, %v986_v25  ;;  %v1001_v40 = vsel %vm588_vm1, %v986_v25, %v994_v32  ;;  %v3192_v25 = vld [vmem:[%s4697_s3 + $0x28] sm:$0xff]  }
 0x2a8   : > { %v1016_v43 = vmul.f32 %v3549_v17, %v1008_v33  ;;  %v1019_v49 = vpack.c.bf16 %v1004_v38, %v1003_v53  ;;  %v1010_v55 = vmul.f32 %v3549_v17, %v1005_v51 }
 0x2aa   : > { %v996_v41 = vpop.permute.xlu0 %995  ;;  %v950_v48 = vpop.permute.xlu1 %949  ;;  %v1020_v54 = vpack.c.bf16 %v1016_v43, %v1014_v34 }
 0x2ab   : > { %v1006_v52 = vsel %vm588_vm1, %v996_v41, %v988_v26  ;;  %v1002_v56 = vsel %vm588_vm1, %v988_v26, %v996_v41  ;;  %v1314_v41 = vld [vmem:[%s4698_s4] sm:$0xff] }
 0x2ac   : > { %v1012_v57 = vmul.f32 %v3549_v17, %v1006_v52  ;;  %1045 = vmatprep.subr.bf16.mxu1 %v1020_v54  ;;  %1124 = vmatprep.subr.bf16.mxu0 %v1020_v54  ;;  %v1017_v44 = vpack.c.bf16 %v1002_v56, %v1001_v40  ;;  %v1370_v52 = vld [vmem:[%s4700_s6] sm:$0xff]  ;;  %v1482_v40 = vld [vmem:[%s4702_s8 + $0x10] sm:$0xff] }
 0x2ad   : > { %1046 = vmatpush1.bf16.msra.mxu1 %v1019_v49  ;;  %1125 = vmatpush1.bf16.msra.mxu0 %v1019_v49  ;;  %v1480_v56 = vld [vmem:[%s4702_s8] sm:$0xff] }
 0x2ae   : > { %v948_v46 = vpop.permute.xlu0 %947  ;;  %v958_v58 = vpop.permute.xlu1 %957  ;;  %v1018_v59 = vpack.c.bf16 %v1012_v57, %v1010_v55  ;;  %v1373_v55 = vld [vmem:[%s4700_s6 + $0x18] sm:$0xff]  ;;  %v1371_v57 = vld [vmem:[%s4700_s6 + $0x8] sm:$0xff] }
 0x2af   : > { %v967_v62 = vsel %vm547_vm2, %v958_v58, %v950_v48  ;;  %v963_v37 = vsel %vm547_vm2, %v950_v48, %v958_v58  ;;  %v1483_v58 = vld [vmem:[%s4702_s8 + $0x18] sm:$0xff] }
 0x2b0   : > { %1047 = vmatprep.subr.bf16.mxu1 %v1018_v59  ;;  %1126 = vmatprep.subr.bf16.mxu0 %v1018_v59  ;;  %v973_v4 = vmul.f32 %v3588_v47, %v967_v62 }
 0x2b1   : > { %1048 = vmatpush1.bf16.msra.mxu1 %v1017_v44  ;;  %1127 = vmatpush1.bf16.msra.mxu0 %v1017_v44 }
 0x2b2   : > { %v952_v50 = vpop.permute.xlu0 %951  ;;  %1049 = vmatprep.subr.bf16.mxu1 %v3754_v9  ;;  %1128 = vmatprep.subr.bf16.mxu0 %v3754_v9  ;;  %v946_v13 = vpop.permute.xlu1 %945 }
 0x2b5   : > { %1050 = vmatpush1.bf16.msra.mxu1 %v3756_v36  ;;  %1129 = vmatpush1.bf16.msra.mxu0 %v3756_v36 }
 0x2b6   : > { %v960_v35 = vpop.permute.xlu0 %959  ;;  %1051 = vmatprep.subr.bf16.mxu1 %v3761_v45  ;;  %1130 = vmatprep.subr.bf16.mxu0 %v3761_v45  ;;  %v954_v63 = vpop.permute.xlu1 %953 }
 0x2b7   : > { %v964_v0 = vsel %vm547_vm2, %v952_v50, %v960_v35  ;;  %v968_v1 = vsel %vm547_vm2, %v960_v35, %v952_v50  ;;  %v965_v7 = vsel %vm547_vm2, %v954_v63, %v946_v13  ;;  %v961_v14 = vsel %vm547_vm2, %v946_v13, %v954_v63 }
 0x2b8   : > { %v975_v5 = vmul.f32 %v3588_v47, %v968_v1  ;;  %v980_v6 = vpack.c.bf16 %v964_v0, %v963_v37  ;;  %v969_v18 = vmul.f32 %v3588_v47, %v965_v7 }
 0x2b9   : > { %1052 = vmatpush1.bf16.msra.mxu1 %v3763_v22  ;;  %1131 = vmatpush1.bf16.msra.mxu0 %v3763_v22 }
 0x2ba   : > { %v979_v39 = vpack.c.bf16 %v975_v5, %v973_v4  ;;  %v956_v10 = vpop.permute.xlu0 %955  ;;  %1053 = vmatprep.subr.bf16.mxu1 %v980_v6  ;;  %1132 = vmatprep.subr.bf16.mxu0 %v980_v6 }
 0x2bb   : > { %v962_v15 = vsel %vm547_vm2, %v948_v46, %v956_v10  ;;  %v966_v16 = vsel %vm547_vm2, %v956_v10, %v948_v46  ;;  %v1481_v46 = vld [vmem:[%s4702_s8 + $0x8] sm:$0xff] }
 0x2bc   : > { %v971_v19 = vmul.f32 %v3588_v47, %v966_v16  ;;  %v978_v20 = vpack.c.bf16 %v962_v15, %v961_v14 }
 0x2bd   : > { %1054 = vmatpush1.bf16.msra.mxu1 %v979_v39  ;;  %1133 = vmatpush1.bf16.msra.mxu0 %v979_v39 }
 0x2be   : > { %v977_v42 = vpack.c.bf16 %v971_v19, %v969_v18  ;;  %1055 = vmatprep.subr.bf16.mxu1 %v978_v20  ;;  %1134 = vmatprep.subr.bf16.mxu0 %v978_v20 }
 0x2c1   : > { %1056 = vmatpush1.bf16.msra.mxu1 %v977_v42  ;;  %1135 = vmatpush1.bf16.msra.mxu0 %v977_v42 }
 0x2c2   : > { %1225 = vmatprep.subr.bf16.mxu1 %v1020_v54  ;;  %v1372_v54 = vld [vmem:[%s4700_s6 + $0x10] sm:$0xff] }
 0x2c4   : > { %3029 = vmatmul.mubr.msk.bf16.vlgmr.msra.gmra.mxu1 %vm623_vm4, %v3189_v21  ;;  %3041 = vmatmul.mubr.msk.bf16.vlgmr.msra.gmra.mxu0 %vm623_vm4, %v3190_v23 }
 0x2c5   : > { %1226 = vmatpush1.bf16.msra.mxu1 %v1019_v49  ;;  %1083 = vmatprep.mubr.bf16.mxu1 %v3337_v8  ;;  %v1315_v49 = vld [vmem:[%s4698_s4 + $0x8] sm:$0xff] }
 0x2c6   : > { %1227 = vmatprep.subr.bf16.mxu1 %v1018_v59  ;;  %1162 = vmatprep.mubr.bf16.mxu0 %v3337_v8  ;;  %v1331_v59 = vpop.permute.xlu1 %1330 }
 0x2c9   : > { %1228 = vmatpush1.bf16.msra.mxu1 %v1017_v44  ;;  %v3912_v44 = vpop.permute.xlu0 %1335 }
 0x2ca   : > { %1229 = vmatprep.subr.bf16.mxu1 %v3754_v9  ;;  %v3193_v9 = vld [vmem:[%s4697_s3 + $0x10] sm:$0xff]  }
 0x2cc   : > { %3030 = vmatmul.mubr.msk.bf16.gmra.mxu1 %vm623_vm4, %v3191_v24  ;;  %3042 = vmatmul.mubr.msk.bf16.gmra.mxu0 %vm623_vm4, %v3192_v25 }
 0x2cd   : > { %1230 = vmatpush1.bf16.msra.mxu1 %v3756_v36  ;;  %1253 = vmatprep.mubr.bf16.mxu1 %v3337_v8  ;;  %v3194_v36 = vld [vmem:[%s4697_s3 + $0x18] sm:$0xff]  }
 0x2ce   : > { %1231 = vmatprep.subr.bf16.mxu1 %v3761_v45  ;;  %1443 = vmatprep.mubr.bf16.mxu0 %v3337_v8 }
 0x2d1   : > { %1232 = vmatpush1.bf16.msra.mxu1 %v3763_v22 }
 0x2d2   : > { %1233 = vmatprep.subr.bf16.mxu1 %v980_v6 }
 0x2d5   : > { %1234 = vmatpush1.bf16.msra.mxu1 %v979_v39 }
 0x2d6   : > { %1235 = vmatprep.subr.bf16.mxu1 %v978_v20 }
 0x2d9   : > { %1236 = vmatpush1.bf16.msra.mxu1 %v977_v42 }
 0x2dc   : > { %3045 = vmatmul.mubr.msk.bf16.vlgmr.msra.gmra.mxu1 %vm623_vm4, %v3193_v9 }
 0x2dd   : > { %1263 = vmatprep.mubr.bf16.mxu1 %v3337_v8 }
 0x2e4   : > { %3046 = vmatmul.mubr.msk.bf16.gmra.mxu1 %vm623_vm4, %v3194_v36 }
 0x2e5   : > { %1552 = vmatprep.mubr.bf16.mxu1 %v3337_v8 }
 0x384   : > { %v1075_v45 = vpop.f32.mrf.mxu1  ;;  %v1154_v22 = vpop.f32.mrf.mxu0 }
 0x385   : > { %1173 = vrot.lane.b32.xlu1 %v1075_v45, %s3339_s20 }
 0x386   : > { %v1077_v26 = vpop.f32.mrf.mxu1  ;;  %v1156_v27 = vpop.f32.mrf.mxu0 }
 0x388   : > { %v1079_v28 = vpop.f32.mrf.mxu1  ;;  %v1158_v29 = vpop.f32.mrf.mxu0 }
 0x389   : > { %1274 = vrot.lane.b32.xlu1 %v1154_v22, %s3340_s21  ;;  %1175 = vrot.lane.b32.xlu0 %v1079_v28, %s3339_s20 }
 0x38a   : > { %v1081_v30 = vpop.f32.mrf.mxu1  ;;  %v1160_v32 = vpop.f32.mrf.mxu0 }
 0x38c   : > { %v1085_v31 = vpop.f32.mrf.mxu1  ;;  %v1164_v34 = vpop.f32.mrf.mxu0 }
 0x38d   : > { %1181 = vrot.lane.b32.xlu1 %v1077_v26, %s3339_s20  ;;  %1276 = vrot.lane.b32.xlu0 %v1158_v29, %s3340_s21 }
 0x38e   : > { %v1087_v33 = vpop.f32.mrf.mxu1  ;;  %v1166_v43 = vpop.f32.mrf.mxu0 }
 0x390   : > { %v1089_v38 = vpop.f32.mrf.mxu1  ;;  %v1168_v51 = vpop.f32.mrf.mxu0 }
 0x391   : > { %1282 = vrot.lane.b32.xlu1 %v1156_v27, %s3340_s21  ;;  %1183 = vrot.lane.b32.xlu0 %v1081_v30, %s3339_s20 }
 0x392   : > { %v1091_v53 = vpop.f32.mrf.mxu1  ;;  %v1170_v48 = vpop.f32.mrf.mxu0 }
 0x395   : > { %1284 = vrot.lane.b32.xlu0 %v1160_v32, %s3340_s21  ;;  %1177 = vrot.lane.b32.xlu1 %v1085_v31, %s3339_s20 }
 0x399   : > { %1278 = vrot.lane.b32.xlu1 %v1164_v34, %s3340_s21  ;;  %1179 = vrot.lane.b32.xlu0 %v1089_v38, %s3339_s20 }
 0x39c   : > { %v1255_v13 = vpop.f32.mrf.mxu1 }
 0x39d   : > { %1185 = vrot.lane.b32.xlu1 %v1087_v33, %s3339_s20  ;;  %1280 = vrot.lane.b32.xlu0 %v1168_v51, %s3340_s21 }
 0x39e   : > { %v1257_v63 = vpop.f32.mrf.mxu1 }
 0x3a0   : > { %v3914_v1 = vpop.f32.mrf.mxu1 }
 0x3a1   : > { %1286 = vrot.lane.b32.xlu1 %v1166_v43, %s3340_s21  ;;  %1187 = vrot.lane.b32.xlu0 %v1091_v53, %s3339_s20 }
 0x3a2   : > { %v3916_v6 = vpop.f32.mrf.mxu1 }
 0x3a4   : > { %v1265_v10 = vpop.f32.mrf.mxu1 }
 0x3a5   : > { %1320 = vperm.xlu1 %3182, %v1314_v41   ;;  %1288 = vrot.lane.b32.xlu0 %v1170_v48, %s3340_s21 }
 0x3a6   : > { %v1267_v16 = vpop.f32.mrf.mxu1 }
 0x3a8   : > { %v1269_v24 = vpop.f32.mrf.mxu1 }
 0x3a9   : > { %1386 = vperm.xlu1 %3182, %v1372_v54   ;;  %1325 = vperm.xlu0 %3181, %v1315_v49  }
 0x3aa   : > { %v1271_v38 = vpop.f32.mrf.mxu1 }
 0x3ad   : > { %1376 = vperm.xlu1 %3182, %v1370_v52   ;;  %1391 = vperm.xlu0 %3181, %v1373_v55  }
 0x3b1   : > { %1486 = vperm.xlu1 %3182, %v1480_v56   ;;  %1381 = vperm.xlu0 %3181, %v1371_v57  }
 0x3b5   : > { %1496 = vperm.xlu1 %3182, %v1482_v40   ;;  %1491 = vperm.xlu0 %3181, %v1481_v46  }
 0x3b9   : > { %1501 = vperm.xlu0 %3181, %v1483_v58  }
 0x3f7   : > { %v1174_v50 = vpop.permute.xlu1 %1173 }
 0x3fb   : > { %v1275_v62 = vpop.permute.xlu1 %1274  ;;  %v1176_v35 = vpop.permute.xlu0 %1175 }
 0x3ff   : > { %v1182_v37 = vpop.permute.xlu1 %1181  ;;  %v1277_v0 = vpop.permute.xlu0 %1276 }
 0x400   : > { %v1193_v25 = vsel %vm778_vm7, %v1182_v37, %v1174_v50  ;;  %v1189_v9 = vsel %vm778_vm7, %v1174_v50, %v1182_v37 }
 0x401   : > { %v1197_v43 = vmul.f32 %v3684_v60, %v1193_v25  ;;  %v1198_v51 = vmul.f32 %v3687_v61, %v1189_v9 }
 0x403   : > { %v1283_v4 = vpop.permute.xlu1 %1282  ;;  %v1184_v5 = vpop.permute.xlu0 %1183 }
 0x404   : > { %v1290_v53 = vsel %vm880_vm10, %v1275_v62, %v1283_v4  ;;  %v1294_v41 = vsel %vm880_vm10, %v1283_v4, %v1275_v62  ;;  %v1194_v48 = vsel %vm778_vm7, %v1184_v5, %v1176_v35  ;;  %v1190_v54 = vsel %vm778_vm7, %v1176_v35, %v1184_v5 }
 0x405   : > { %v1256_v4 = vadd.f32 %v1255_v13, %v1197_v43  ;;  %v1298_v35 = vmul.f32 %v3697_v2, %v1290_v53  ;;  %v1299_v5 = vmul.f32 %v3700_v3, %v1294_v41 }
 0x407   : > { %v1285_v7 = vpop.permute.xlu0 %1284  ;;  %v1178_v39 = vpop.permute.xlu1 %1177 }
 0x40b   : > { %v1279_v14 = vpop.permute.xlu1 %1278  ;;  %v1180_v15 = vpop.permute.xlu0 %1179 }
 0x40f   : > { %v1186_v18 = vpop.permute.xlu1 %1185  ;;  %v1281_v19 = vpop.permute.xlu0 %1280 }
 0x410   : > { %v1195_v20 = vsel %vm778_vm7, %v1186_v18, %v1178_v39  ;;  %v1191_v42 = vsel %vm778_vm7, %v1178_v39, %v1186_v18  ;;  %v1258_v39 = vadd.f32 %v1257_v63, %v1198_v51  ;;  %v1291_v18 = vsel %vm880_vm10, %v1277_v0, %v1285_v7 }
 0x411   : > { %v1201_v21 = vmul.f32 %v3684_v60, %v1195_v20  ;;  %v1202_v23 = vmul.f32 %v3687_v61, %v1191_v42  ;;  %v1306_v42 = vadd.f32 %v1298_v35, %v1256_v4  ;;  %v3196_v4 = vld [vmem:[#allocation2 + $0x8] sm:$0xff]  }
 0x413   : > { %v1266_v36 = vadd.f32 %v1265_v10, %v1201_v21  ;;  %v1268_v45 = vadd.f32 %v1267_v16, %v1202_v23  ;;  %v1287_v22 = vpop.permute.xlu1 %1286  ;;  %v1188_v26 = vpop.permute.xlu0 %1187  ;;  %v1199_v10 = vmul.f32 %v3684_v60, %v1194_v48  ;;  %v1307_v21 = vadd.f32 %v1299_v5, %v1258_v39 }
 0x414   : > { %v1292_v27 = vsel %vm880_vm10, %v1279_v14, %v1287_v22  ;;  %v1296_v28 = vsel %vm880_vm10, %v1287_v22, %v1279_v14  ;;  %v1196_v29 = vsel %vm778_vm7, %v1188_v26, %v1180_v15  ;;  %v1192_v30 = vsel %vm778_vm7, %v1180_v15, %v1188_v26  ;;  %v3248_v26 = vld [vmem:[%s3472_s29 + $0x20] sm:$0xff] }
 0x415   : > { %v1302_v31 = vmul.f32 %v3697_v2, %v1292_v27  ;;  %v1303_v32 = vmul.f32 %v3700_v3, %v1296_v28  ;;  %v1203_v33 = vmul.f32 %v3684_v60, %v1196_v29  ;;  %v1204_v34 = vmul.f32 %v3687_v61, %v1192_v30  ;;  %v3249_v29 = vld [vmem:[%s3472_s29 + $0x38] sm:$0xff] }
 0x416   : > { %v1200_v14 = vmul.f32 %v3687_v61, %v1190_v54  ;;  %v1300_v23 = vmul.f32 %v3697_v2, %v1291_v18 }
 0x417   : > { %v1310_v49 = vadd.f32 %v1302_v31, %v1266_v36  ;;  %v1311_v52 = vadd.f32 %v1303_v32, %v1268_v45  ;;  %v1289_v55 = vpop.permute.xlu0 %1288  ;;  %v1270_v56 = vadd.f32 %v1269_v24, %v1203_v33  ;;  %v1272_v57 = vadd.f32 %v1271_v38, %v1204_v34  ;;  %v3247_v45 = vld [vmem:[%s3472_s29 + $0x28] sm:$0xff]  ;;  %v3250_v31 = vld [vmem:[%s3472_s29 + $0x30] sm:$0xff] }
 0x418   : > { %v1293_v40 = vsel %vm880_vm10, %v1281_v19, %v1289_v55  ;;  %v1297_v46 = vsel %vm880_vm10, %v1289_v55, %v1281_v19  ;;  %v1295_v19 = vsel %vm880_vm10, %v1285_v7, %v1277_v0  ;;  %v1260_v36 = vadd.f32 %v3914_v1, %v1199_v10  ;;  %v3252_v55 = vld [vmem:[%s3472_s29 + $0x10] sm:$0xff] }
 0x419   : > { %v1342_v58 = vadd.f32 %v1331_v59, %v1310_v49  ;;  %v1304_v50 = vmul.f32 %v3697_v2, %v1293_v40  ;;  %v1305_v62 = vmul.f32 %v3700_v3, %v1297_v46  ;;  %v1343_v37 = vadd.f32 %v1331_v59, %v1311_v52  ;;  %v3251_v49 = vld [vmem:[%s3472_s29] sm:$0xff]  ;;  %v3254_v46 = vld [vmem:[%s3472_s29 + $0x18] sm:$0xff] }
 0x41a   : > { %v1301_v24 = vmul.f32 %v3700_v3, %v1295_v19  ;;  %v1262_v0 = vadd.f32 %v3916_v6, %v1200_v14  ;;  %v1308_v1 = vadd.f32 %v1300_v23, %v1260_v36 }
 0x41b   : > { %v1312_v15 = vadd.f32 %v1304_v50, %v1270_v56  ;;  %v1313_v16 = vadd.f32 %v1305_v62, %v1272_v57  ;;  %v1350_v59 = vmul.f32 0.1, %v1342_v58  ;;  %v1351_v13 = vmul.f32 0.1, %v1343_v37  ;;  %v3253_v57 = vld [vmem:[%s3472_s29 + $0x8] sm:$0xff]  ;;  %v3195_v37 = vld [vmem:[#allocation2] sm:$0xff]  }
 0x41c   : > { %v1309_v33 = vadd.f32 %v1301_v24, %v1262_v0 }
 0x41d   : > { %v1344_v63 = vadd.f32 %v3912_v44, %v1312_v15  ;;  %v1345_v20 = vadd.f32 %v3912_v44, %v1313_v16  ;;  %v3971_v22 = vadd.f32 %v3247_v45, %v1351_v13  ;;  %v3974_v44 = vadd.f32 %v3248_v26, %v1350_v59 }
 0x41f   : > { %v1352_v25 = vmul.f32 0.1, %v1344_v63  ;;  %v1353_v9 = vmul.f32 0.1, %v1345_v20 }
 0x420   : > { %v1321_v7 = vpop.permute.xlu1 %1320 }
 0x421   : > { %v1338_v27 = vadd.f32 %v1321_v7, %v1306_v42  ;;  %v1339_v28 = vadd.f32 %v1321_v7, %v1307_v21  ;;  %v3977_v30 = vadd.f32 %v3249_v29, %v1353_v9  ;;  %v3980_v32 = vadd.f32 %v3250_v31, %v1352_v25 }
 0x423   : > { %v1369_v6 = vpack.c.bf16 %v3977_v30, %v3971_v22  ;;  %v1368_v34 = vpack.c.bf16 %v3980_v32, %v3974_v44  ;;  %v1346_v43 = vmul.f32 0.1, %v1338_v27  ;;  %v1347_v51 = vmul.f32 0.1, %v1339_v28 }
 0x424   : > { %v1326_v38 = vpop.permute.xlu0 %1325  ;;  %v1387_v15 = vpop.permute.xlu1 %1386 }
 0x425   : > { %v1340_v53 = vadd.f32 %v1326_v38, %v1308_v1  ;;  %v1341_v41 = vadd.f32 %v1326_v38, %v1309_v33  ;;  %1423 = vmatprep.subr.bf16.mxu0 %v1369_v6  ;;  %v3987_v52 = vadd.f32 %v3251_v49, %v1346_v43  ;;  %v3993_v40 = vadd.f32 %v3253_v57, %v1347_v51  ;;  %v3197_v38 = vld [vmem:[#allocation4] sm:$0xff]   ;;  %v3198_v43 = vld [vmem:[#allocation4 + $0x8] sm:$0xff]  }
 0x426   : > { %1424 = vmatpush1.bf16.msra.mxu0 %v1368_v34 }
 0x427   : > { %v1348_v48 = vmul.f32 0.1, %v1340_v53  ;;  %v1349_v54 = vmul.f32 0.1, %v1341_v41 }
 0x428   : > { %v1392_v10 = vpop.permute.xlu0 %1391  ;;  %v1377_v42 = vpop.permute.xlu1 %1376 }
 0x429   : > { %v3990_v56 = vadd.f32 %v3252_v55, %v1348_v48  ;;  %v3996_v58 = vadd.f32 %v3254_v46, %v1349_v54 }
 0x42b   : > { %v1367_v50 = vpack.c.bf16 %v3996_v58, %v3993_v40  ;;  %v1366_v62 = vpack.c.bf16 %v3990_v56, %v3987_v52 }
 0x42c   : > { %v1382_v19 = vpop.permute.xlu0 %1381  ;;  %v1487_v53 = vpop.permute.xlu1 %1486 }
 0x42d   : > { %1425 = vmatprep.subr.bf16.mxu0 %v1367_v50 }
 0x42e   : > { %1426 = vmatpush1.bf16.msra.mxu0 %v1366_v62 }
 0x430   : > { %v1492_v57 = vpop.permute.xlu0 %1491 }
 0x431   : > { %3049 = vmatmul.mubr.msk.bf16.vlgmr.msra.gmra.mxu0 %vm1404_vm11, %v3195_v37 }
 0x432   : > { %1453 = vmatprep.mubr.bf16.mxu0 %v3337_v8 }
 0x439   : > { %3050 = vmatmul.mubr.msk.bf16.gmra.mxu0 %vm1404_vm11, %v3196_v4 }
 0x43a   : > { %1840 = vmatprep.mubr.bf16.mxu0 %v3337_v8 }
 0x4f1   : > { %v1445_v39 = vpop.f32.mrf.mxu0 }
 0x4f2   : > { %v1446_v26 = vadd.f32 %v1445_v39, %v1377_v42  ;;  %v1497_v39 = vpop.permute.xlu1 %1496 }
 0x4f3   : > { %v1447_v35 = vpop.f32.mrf.mxu0 }
 0x4f4   : > { %v1448_v24 = vadd.f32 %v1447_v35, %v1377_v42  ;;  %v1464_v6 = vmax.f32 %v1446_v26, 0.0 }
 0x4f5   : > { %v1449_v5 = vpop.f32.mrf.mxu0 }
 0x4f6   : > { %v1450_v9 = vadd.f32 %v1449_v5, %v1382_v19  ;;  %v1465_v28 = vmax.f32 %v1448_v24, 0.0  ;;  %v1590_v24 = vld [vmem:[%s4703_s9] sm:$0xff] }
 0x4f7   : > { %v1451_v14 = vpop.f32.mrf.mxu0 }
 0x4f8   : > { %v1452_v13 = vadd.f32 %v1451_v14, %v1382_v19  ;;  %v1466_v31 = vmax.f32 %v1450_v9, 0.0  ;;  %v1592_v9 = vld [vmem:[%s4703_s9 + $0x10] sm:$0xff] }
 0x4f9   : > { %v1455_v16 = vpop.f32.mrf.mxu0 }
 0x4fa   : > { %v1456_v21 = vadd.f32 %v1455_v16, %v1387_v15  ;;  %v1467_v0 = vmax.f32 %v1452_v13, 0.0  ;;  %v1476_v34 = vpack.c.bf16 %v1466_v31, %v1464_v6  ;;  %v1502_v16 = vpop.permute.xlu0 %1501 }
 0x4fb   : > { %v1457_v18 = vpop.f32.mrf.mxu0 }
 0x4fc   : > { %v1458_v63 = vadd.f32 %v1457_v18, %v1387_v15  ;;  %v1468_v27 = vmax.f32 %v1456_v21, 0.0  ;;  %v1477_v33 = vpack.c.bf16 %v1467_v0, %v1465_v28 }
 0x4fd   : > { %v1459_v59 = vpop.f32.mrf.mxu0 }
 0x4fe   : > { %v1460_v20 = vadd.f32 %v1459_v59, %v1392_v10  ;;  %v1469_v7 = vmax.f32 %v1458_v63, 0.0 }
 0x4ff   : > { %v1461_v23 = vpop.f32.mrf.mxu0 }
 0x500   : > { %v1462_v25 = vadd.f32 %v1461_v23, %v1392_v10  ;;  %v1470_v36 = vmax.f32 %v1460_v20, 0.0  ;;  %v1591_v20 = vld [vmem:[%s4703_s9 + $0x8] sm:$0xff] }
 0x502   : > { %v1471_v45 = vmax.f32 %v1462_v25, 0.0  ;;  %v1478_v1 = vpack.c.bf16 %v1470_v36, %v1468_v27  ;;  %v1593_v27 = vld [vmem:[%s4703_s9 + $0x18] sm:$0xff] }
 0x504   : > { %v1479_v29 = vpack.c.bf16 %v1471_v45, %v1469_v7 }
 0x506   : > { %1532 = vmatprep.subr.bf16.mxu1 %v1479_v29 }
 0x507   : > { %1533 = vmatpush1.bf16.msra.mxu1 %v1478_v1 }
 0x508   : > { %1534 = vmatprep.subr.bf16.mxu1 %v1477_v33 }
 0x50b   : > { %1535 = vmatpush1.bf16.msra.mxu1 %v1476_v34 }
 0x50e   : > { %3053 = vmatmul.mubr.msk.bf16.vlgmr.msra.gmra.mxu1 %vm1404_vm11, %v3197_v38 }
 0x50f   : > { %1562 = vmatprep.mubr.bf16.mxu1 %v3337_v8 }
 0x516   : > { %3054 = vmatmul.mubr.msk.bf16.gmra.mxu1 %vm1404_vm11, %v3198_v43 }
 0x517   : > { %1919 = vmatprep.mubr.bf16.mxu1 %v3337_v8 }
 0x5ce   : > { %v1554_v51 = vpop.f32.mrf.mxu1 }
 0x5cf   : > { %v4010_v48 = vadd.f32 %v1554_v51, %v1487_v53 }
 0x5d0   : > { %v1556_v41 = vpop.f32.mrf.mxu1 }
 0x5d1   : > { %v4012_v54 = vadd.f32 %v1556_v41, %v1487_v53 }
 0x5d2   : > { %v1558_v49 = vpop.f32.mrf.mxu1 }
 0x5d3   : > { %v1573_v55 = vadd.f32 %v4012_v54, %v4010_v48  ;;  %v4016_v50 = vadd.f32 %v1558_v49, %v1492_v57 }
 0x5d4   : > { %v1560_v46 = vpop.f32.mrf.mxu1 }
 0x5d5   : > { %v4018_v62 = vadd.f32 %v1560_v46, %v1492_v57  ;;  %1574 = vadd.xlane.f32.xlu1 %v1573_v55  ;;  %v4051_v57 = vshrl.u32 %v472_v11, 7  ;;  %v1612_v46 = vld [vmem:[%s4704_s10] sm:$0x1] }
 0x5d6   : > { %v1564_v37 = vpop.f32.mrf.mxu1 }
 0x5d7   : > { %v1576_v4 = vadd.f32 %v4018_v62, %v4016_v50  ;;  %v4022_v5 = vadd.f32 %v1564_v37, %v1497_v39 }
 0x5d8   : > { %v1566_v35 = vpop.f32.mrf.mxu1 }
 0x5d9   : > { %v4024_v10 = vadd.f32 %v1566_v35, %v1497_v39  ;;  %1577 = vadd.xlane.f32.xlu0 %v1576_v4  ;;  %v1621_v39 = vsub.s32 0, %v4051_v57 }
 0x5da   : > { %v1568_v14 = vpop.f32.mrf.mxu1 }
 0x5db   : > { %v1579_v15 = vadd.f32 %v4024_v10, %v4022_v5  ;;  %v4028_v19 = vadd.f32 %v1568_v14, %v1502_v16  ;;  %v1618_v14 = vld [vmem:[%s4705_s11 + $0x18] sm:$0xff] }
 0x5dc   : > { %v1570_v18 = vpop.f32.mrf.mxu1 }
 0x5dd   : > { %v4030_v59 = vadd.f32 %v1570_v18, %v1502_v16  ;;  %1580 = vadd.xlane.f32.xlu0 %v1579_v15  ;;  %v1617_v15 = vld [vmem:[%s4705_s11 + $0x10] sm:$0xff]  ;;  %v1616_v16 = vld [vmem:[%s4705_s11 + $0x8] sm:$0xff]  ;;  %v1615_v18 = vld [vmem:[%s4705_s11] sm:$0xff] }
 0x5df   : > { %v1582_v13 = vadd.f32 %v4030_v59, %v4028_v19 }
 0x5e1   : > { %1583 = vadd.xlane.f32.xlu1 %v1582_v13 }
 0x65e   : > { %v1575_v63 = vpop.xlane.xlu1 %1574 }
 0x65f   : > { %v1586_v21 = vmul.f32 0.00390625, %v1575_v63 }
 0x661   : > { %v1594_v0 = vmul.f32 %v1590_v24, %v1586_v21 }
 0x662   : > { %v1578_v42 = vpop.xlane.xlu0 %1577 }
 0x663   : > { %v1587_v23 = vmul.f32 0.00390625, %v1578_v42  ;;  %v1599_v29 = vsel %vm1598_vm12, %v1594_v0, 0.0 }
 0x665   : > { %v1595_v25 = vmul.f32 %v1591_v20, %v1587_v23 }
 0x666   : > { %v1581_v36 = vpop.xlane.xlu0 %1580 }
 0x667   : > { %v1588_v7 = vmul.f32 0.00390625, %v1581_v36  ;;  %v1600_v45 = vsel %vm1598_vm12, %v1595_v25, 0.0  ;;  %v1641_v36 = vld [vmem:[%s4706_s12 + $0x10] sm:$0xff] }
 0x668   : > { %v1601_v33 = vadd.f32 %v1600_v45, %v1599_v29 }
 0x669   : > { %v1596_v26 = vmul.f32 %v1592_v9, %v1588_v7  ;;  %v1642_v9 = vld [vmem:[%s4706_s12 + $0x18] sm:$0xff] }
 0x66a   : > { %v1584_v28 = vpop.xlane.xlu1 %1583 }
 0x66b   : > { %v1602_v31 = vsel %vm1598_vm12, %v1596_v26, 0.0  ;;  %v1589_v1 = vmul.f32 0.00390625, %v1584_v28  ;;  %v1639_v28 = vld [vmem:[%s4706_s12] sm:$0xff] }
 0x66c   : > { %v1603_v34 = vadd.f32 %v1602_v31, %v1601_v33 }
 0x66d   : > { %v1597_v6 = vmul.f32 %v1593_v27, %v1589_v1  ;;  %v1640_v27 = vld [vmem:[%s4706_s12 + $0x8] sm:$0xff] }
 0x66f   : > { %v1604_v38 = vsel %vm1598_vm12, %v1597_v6, 0.0 }
 0x670   : > { %v1605_v43 = vadd.f32 %v1604_v38, %v1603_v34 }
 0x672   : > { %v1606_v51 = vrot.slane %v1605_v43, 4 }
 0x674   : > { %v1607_v53 = vadd.f32 %v1606_v51, %v1605_v43 }
 0x676   : > { %v1608_v41 = vrot.slane %v1607_v53, 2 }
 0x678   : > { %v1609_v49 = vadd.f32 %v1608_v41, %v1607_v53 }
 0x67a   : > { %v1610_v55 = vrot.slane %v1609_v49, 1 }
 0x67c   : > { %v1611_v37 = vadd.f32 %v1610_v55, %v1609_v49 }
 0x67e   : > { %v1613_v4 = vadd.f32 %v1612_v46, %v1611_v37 }
 0x680   : > { %v1614_v35 = vmax.f32 %v1613_v4, 0.0 }
 0x682   : > { %v1622_v11 = vrot.slane %v1614_v35, %v1621_v39 }
 0x684   : > { %v1626_v13 = vmul.f32 %v1622_v11, %v1618_v14  ;;  %v1625_v63 = vmul.f32 %v1622_v11, %v1617_v15  ;;  %v1624_v21 = vmul.f32 %v1622_v11, %v1616_v16  ;;  %v1623_v23 = vmul.f32 %v1622_v11, %v1615_v18 }
 0x686   : > { %v1636_v20 = vsel %vm1598_vm12, %v1626_v13, 0.0  ;;  %v1633_v42 = vsel %vm1598_vm12, %v1625_v63, 0.0  ;;  %v1630_v24 = vsel %vm1598_vm12, %v1624_v21, 0.0  ;;  %v1627_v25 = vsel %vm1598_vm12, %v1623_v23, 0.0 }
 0x687   : > { %1637 = vadd.xlane.f32.xlu1 %v1636_v20  ;;  %1634 = vadd.xlane.f32.xlu0 %v1633_v42 }
 0x68b   : > { %1631 = vadd.xlane.f32.xlu1 %v1630_v24  ;;  %1628 = vadd.xlane.f32.xlu0 %v1627_v25 }
 0x710   : > { %v1638_v0 = vpop.xlane.xlu1 %1637  ;;  %v1635_v7 = vpop.xlane.xlu0 %1634 }
 0x711   : > { %v1646_v45 = vadd.f32 %v1642_v9, %v1638_v0  ;;  %v1645_v26 = vadd.f32 %v1641_v36, %v1635_v7 }
 0x713   : > { %v1650_v29 = vsub.f32 0.0, %v1646_v45  ;;  %v1649_v31 = vsub.f32 0.0, %v1645_v26 }
 0x714   : > { %v1632_v1 = vpop.xlane.xlu1 %1631  ;;  %v1629_v33 = vpop.xlane.xlu0 %1628 }
 0x715   : > { %v1657_v6 = vmul.f32 1.442695, %v1650_v29  ;;  %v1655_v34 = vmul.f32 1.442695, %v1649_v31  ;;  %v1644_v38 = vadd.f32 %v1640_v27, %v1632_v1  ;;  %v1643_v43 = vadd.f32 %v1639_v28, %v1629_v33 }
 0x717   : > { %3215 = vpow2.f32 %v1657_v6  ;;  %v1648_v51 = vsub.f32 0.0, %v1644_v38  ;;  %v1647_v53 = vsub.f32 0.0, %v1643_v43 }
 0x718   : > { %3217 = vpow2.f32 %v1655_v34 }
 0x719   : > { %v1653_v41 = vmul.f32 1.442695, %v1648_v51  ;;  %v1651_v49 = vmul.f32 1.442695, %v1647_v53 }
 0x71b   : > { %3219 = vpow2.f32 %v1653_v41 }
 0x71c   : > { %3221 = vpow2.f32 %v1651_v49 }
 0x724   : > { %v3216_v55 = vpop.eup %3215 }
 0x725   : > { %v3218_v46 = vpop.eup %3217  ;;  %v1662_v37 = vadd.f32 1.0, %v3216_v55 }
 0x726   : > { %v1661_v4 = vadd.f32 1.0, %v3218_v46 }
 0x727   : > { %3223 = vrcp.f32 %v1662_v37 }
 0x728   : > { %v3220_v35 = vpop.eup %3219  ;;  %3225 = vrcp.f32 %v1661_v4 }
 0x729   : > { %v3222_v14 = vpop.eup %3221  ;;  %v1660_v15 = vadd.f32 1.0, %v3220_v35 }
 0x72a   : > { %v1659_v11 = vadd.f32 1.0, %v3222_v14 }
 0x72b   : > { %3227 = vrcp.f32 %v1660_v15 }
 0x72c   : > { %3229 = vrcp.f32 %v1659_v11 }
 0x734   : > { %v3224_v16 = vpop.eup %3223 }
 0x735   : > { %v3226_v18 = vpop.eup %3225  ;;  %1684 = vperm.xlu1 %3182, %v3224_v16  }
 0x736   : > { %1679 = vperm.xlu0 %3181, %v3226_v18  }
 0x738   : > { %v3228_v13 = vpop.eup %3227 }
 0x739   : > { %v3230_v63 = vpop.eup %3229 }
 0x73a   : > { %1674 = vperm.xlu0 %3181, %v3228_v13   ;;  %1669 = vperm.xlu1 %3182, %v3230_v63  }
 0x7b0   : > { %v1685_v20 = vpop.permute.xlu1 %1684 }
 0x7b1   : > { %v1693_v42 = vmul.f32 %v1685_v20, %v4028_v19  ;;  %v1694_v21 = vmul.f32 %v1685_v20, %v4030_v59  ;;  %v1680_v23 = vpop.permute.xlu0 %1679 }
 0x7b2   : > { %v1691_v24 = vmul.f32 %v1680_v23, %v4022_v5  ;;  %v1692_v25 = vmul.f32 %v1680_v23, %v4024_v10 }
 0x7b3   : > { %v1701_v9 = vmul.f32 0.1, %v1693_v42  ;;  %v1702_v0 = vmul.f32 0.1, %v1694_v21 }
 0x7b4   : > { %v1699_v36 = vmul.f32 0.1, %v1691_v24  ;;  %v1700_v27 = vmul.f32 0.1, %v1692_v25 }
 0x7b5   : > { %v4092_v7 = vadd.f32 %v1701_v9, %v3980_v32  ;;  %v1670_v45 = vpop.permute.xlu1 %1669  ;;  %v1675_v26 = vpop.permute.xlu0 %1674  ;;  %v4104_v5 = vadd.f32 %v1702_v0, %v3977_v30 }
 0x7b6   : > { %v4095_v28 = vadd.f32 %v1699_v36, %v3974_v44  ;;  %v1687_v19 = vmul.f32 %v1670_v45, %v4010_v48  ;;  %v1689_v59 = vmul.f32 %v1675_v26, %v4016_v50  ;;  %v1690_v32 = vmul.f32 %v1675_v26, %v4018_v62 }
 0x7b7   : > { %1757 = vrot.lane.b32.xlu0 %v4092_v7, %s3335_s30  ;;  %v4108_v29 = vadd.f32 %v1700_v27, %v3971_v22  ;;  %v1688_v44 = vmul.f32 %v1670_v45, %v4012_v54 }
 0x7b8   : > { %1755 = vrot.lane.b32.xlu1 %v4095_v28, %s3335_s30  ;;  %v1697_v10 = vmul.f32 0.1, %v1689_v59  ;;  %v1695_v48 = vmul.f32 0.1, %v1687_v19  ;;  %v1698_v50 = vmul.f32 0.1, %v1690_v32  ;;  %v1749_v25 = vpack.c.bf16 %v4092_v7, %v4095_v28 }
 0x7b9   : > { %v1696_v30 = vmul.f32 0.1, %v1688_v44  ;;  %v1750_v21 = vpack.c.bf16 %v4104_v5, %v4108_v29 }
 0x7ba   : > { %v4116_v31 = vadd.f32 %v1697_v10, %v3990_v56  ;;  %v4119_v62 = vadd.f32 %v1695_v48, %v3987_v52  ;;  %v4126_v22 = vadd.f32 %v1698_v50, %v3996_v58  ;;  %v3082_v52 = vld [vmem:[%s4696_s2 + $0x38] sm:$0xff]  ;;  %v3081_v56 = vld [vmem:[%s4696_s2 + $0x30] sm:$0xff] }
 0x7bb   : > { %1765 = vrot.lane.b32.xlu0 %v4104_v5, %s3335_s30  ;;  %v4129_v54 = vadd.f32 %v1696_v30, %v3993_v40 }
 0x7bc   : > { %1763 = vrot.lane.b32.xlu1 %v4108_v29, %s3335_s30  ;;  %v1747_v10 = vpack.c.bf16 %v4116_v31, %v4119_v62 }
 0x7bd   : > { %v1748_v0 = vpack.c.bf16 %v4126_v22, %v4129_v54 }
 0x7bf   : > { %1753 = vrot.lane.b32.xlu0 %v4116_v31, %s3335_s30 }
 0x7c0   : > { %1751 = vrot.lane.b32.xlu1 %v4119_v62, %s3335_s30 }
 0x7c3   : > { %1761 = vrot.lane.b32.xlu0 %v4126_v22, %s3335_s30 }
 0x7c4   : > { %1759 = vrot.lane.b32.xlu1 %v4129_v54, %s3335_s30 }
 0x7c7   : > { %1717 = vrot.lane.b32.xlu0 %v4092_v7, %s3336_s14 }
 0x7c8   : > { %1715 = vrot.lane.b32.xlu1 %v4095_v28, %s3336_s14 }
 0x7cb   : > { %1725 = vrot.lane.b32.xlu0 %v4104_v5, %s3336_s14 }
 0x7cc   : > { %1723 = vrot.lane.b32.xlu1 %v4108_v29, %s3336_s14 }
 0x7cf   : > { %1713 = vrot.lane.b32.xlu0 %v4116_v31, %s3336_s14 }
 0x7d0   : > { %1711 = vrot.lane.b32.xlu1 %v4119_v62, %s3336_s14 }
 0x7d3   : > { %1721 = vrot.lane.b32.xlu0 %v4126_v22, %s3336_s14 }
 0x7d4   : > { %1719 = vrot.lane.b32.xlu1 %v4129_v54, %s3336_s14 }
 0x7d7   : > { %2103 = vperm.xlu0 %3181, %v3082_v52  }
 0x7d8   : > { %2098 = vperm.xlu1 %3182, %v3081_v56  }
 0x829   : > { %v1758_v40 = vpop.permute.xlu0 %1757 }
 0x82a   : > { %v1756_v58 = vpop.permute.xlu1 %1755 }
 0x82d   : > { %v1766_v1 = vpop.permute.xlu0 %1765 }
 0x82e   : > { %v1764_v33 = vpop.permute.xlu1 %1763  ;;  %v1774_v6 = vsel %vm588_vm1, %v1766_v1, %v1758_v40  ;;  %v1770_v53 = vsel %vm588_vm1, %v1758_v40, %v1766_v1 }
 0x82f   : > { %v1773_v34 = vsel %vm588_vm1, %v1764_v33, %v1756_v58  ;;  %v1782_v38 = vmul.f32 %v3549_v17, %v1774_v6  ;;  %v1769_v43 = vsel %vm588_vm1, %v1756_v58, %v1764_v33 }
 0x830   : > { %v1780_v51 = vmul.f32 %v3549_v17, %v1773_v34  ;;  %v4169_v46 = vpack.c.bf16 %v1770_v53, %v1769_v43  ;;  %v3200_v43 = vld [vmem:[%s4695_s1 + $0x50] sm:$0xff]   ;;  %v3202_v53 = vld [vmem:[%s4695_s1 + $0x58] sm:$0xff]  }
 0x831   : > { %v1754_v41 = vpop.permute.xlu0 %1753 }
 0x832   : > { %v1752_v49 = vpop.permute.xlu1 %1751  ;;  %v4167_v55 = vpack.c.bf16 %v1782_v38, %v1780_v51  ;;  %v3199_v38 = vld [vmem:[%s4695_s1 + $0x30] sm:$0xff]   ;;  %v3201_v51 = vld [vmem:[%s4695_s1 + $0x38] sm:$0xff]  }
 0x834   : > { %1812 = vmatprep.subr.bf16.mxu0 %v4167_v55  ;;  %1891 = vmatprep.subr.bf16.mxu1 %v4167_v55 }
 0x835   : > { %1813 = vmatpush1.bf16.msra.mxu0 %v4169_v46  ;;  %1892 = vmatpush1.bf16.msra.mxu1 %v4169_v46  ;;  %v1762_v37 = vpop.permute.xlu0 %1761 }
 0x836   : > { %v1760_v4 = vpop.permute.xlu1 %1759  ;;  %v1772_v35 = vsel %vm588_vm1, %v1762_v37, %v1754_v41  ;;  %v1768_v18 = vsel %vm588_vm1, %v1754_v41, %v1762_v37  ;;  %v3203_v41 = vld [vmem:[%s4695_s1 + $0x40] sm:$0xff]  }
 0x837   : > { %v1771_v14 = vsel %vm588_vm1, %v1760_v4, %v1752_v49  ;;  %v1778_v15 = vmul.f32 %v3549_v17, %v1772_v35  ;;  %v1767_v11 = vsel %vm588_vm1, %v1752_v49, %v1760_v4  ;;  %v3204_v49 = vld [vmem:[%s4695_s1 + $0x48] sm:$0xff]  }
 0x838   : > { %v1776_v16 = vmul.f32 %v3549_v17, %v1771_v14  ;;  %v1783_v42 = vpack.c.bf16 %v1768_v18, %v1767_v11 }
 0x839   : > { %v1718_v13 = vpop.permute.xlu0 %1717 }
 0x83a   : > { %v1716_v63 = vpop.permute.xlu1 %1715  ;;  %v1784_v20 = vpack.c.bf16 %v1778_v15, %v1776_v16 }
 0x83c   : > { %1814 = vmatprep.subr.bf16.mxu0 %v1784_v20  ;;  %1893 = vmatprep.subr.bf16.mxu1 %v1784_v20 }
 0x83d   : > { %1815 = vmatpush1.bf16.msra.mxu0 %v1783_v42  ;;  %1894 = vmatpush1.bf16.msra.mxu1 %v1783_v42  ;;  %v1726_v23 = vpop.permute.xlu0 %1725 }
 0x83e   : > { %v1724_v24 = vpop.permute.xlu1 %1723  ;;  %1816 = vmatprep.subr.bf16.mxu0 %v1750_v21  ;;  %1895 = vmatprep.subr.bf16.mxu1 %v1750_v21  ;;  %v1734_v36 = vsel %vm547_vm2, %v1726_v23, %v1718_v13  ;;  %v1730_v26 = vsel %vm547_vm2, %v1718_v13, %v1726_v23  ;;  %v3079_v23 = vld [vmem:[%s4696_s2 + $0x20] sm:$0xff] }
 0x83f   : > { %v1733_v9 = vsel %vm547_vm2, %v1724_v24, %v1716_v63  ;;  %v1729_v45 = vsel %vm547_vm2, %v1716_v63, %v1724_v24  ;;  %v1741_v32 = vmul.f32 %v3588_v47, %v1734_v36 }
 0x840   : > { %v1739_v59 = vmul.f32 %v3588_v47, %v1733_v9  ;;  %v1746_v44 = vpack.c.bf16 %v1730_v26, %v1729_v45 }
 0x841   : > { %1817 = vmatpush1.bf16.msra.mxu0 %v1749_v25  ;;  %1896 = vmatpush1.bf16.msra.mxu1 %v1749_v25  ;;  %v1714_v27 = vpop.permute.xlu0 %1713 }
 0x842   : > { %v1712_v19 = vpop.permute.xlu1 %1711  ;;  %1818 = vmatprep.subr.bf16.mxu0 %v1748_v0  ;;  %1897 = vmatprep.subr.bf16.mxu1 %v1748_v0  ;;  %v1745_v56 = vpack.c.bf16 %v1741_v32, %v1739_v59 }
 0x845   : > { %1819 = vmatpush1.bf16.msra.mxu0 %v1747_v10  ;;  %1898 = vmatpush1.bf16.msra.mxu1 %v1747_v10  ;;  %v1722_v48 = vpop.permute.xlu0 %1721 }
 0x846   : > { %v1720_v50 = vpop.permute.xlu1 %1719  ;;  %1820 = vmatprep.subr.bf16.mxu0 %v1746_v44  ;;  %1899 = vmatprep.subr.bf16.mxu1 %v1746_v44  ;;  %v1728_v30 = vsel %vm547_vm2, %v1714_v27, %v1722_v48  ;;  %v1732_v52 = vsel %vm547_vm2, %v1722_v48, %v1714_v27 }
 0x847   : > { %v1727_v40 = vsel %vm547_vm2, %v1712_v19, %v1720_v50  ;;  %v1731_v58 = vsel %vm547_vm2, %v1720_v50, %v1712_v19  ;;  %v1737_v1 = vmul.f32 %v3588_v47, %v1732_v52 }
 0x848   : > { %v1735_v33 = vmul.f32 %v3588_v47, %v1731_v58  ;;  %v1744_v6 = vpack.c.bf16 %v1728_v30, %v1727_v40 }
 0x849   : > { %1821 = vmatpush1.bf16.msra.mxu0 %v1745_v56  ;;  %1900 = vmatpush1.bf16.msra.mxu1 %v1745_v56 }
 0x84a   : > { %v1743_v34 = vpack.c.bf16 %v1737_v1, %v1735_v33  ;;  %1822 = vmatprep.subr.bf16.mxu0 %v1744_v6  ;;  %1901 = vmatprep.subr.bf16.mxu1 %v1744_v6 }
 0x84d   : > { %1823 = vmatpush1.bf16.msra.mxu0 %v1743_v34  ;;  %1902 = vmatpush1.bf16.msra.mxu1 %v1743_v34 }
 0x84e   : > { %1992 = vmatprep.subr.bf16.mxu0 %v4167_v55 }
 0x850   : > { %3061 = vmatmul.mubr.msk.bf16.vlgmr.msra.gmra.mxu0 %vm623_vm4, %v3199_v38  ;;  %3073 = vmatmul.mubr.msk.bf16.vlgmr.msra.gmra.mxu1 %vm623_vm4, %v3200_v43 }
 0x851   : > { %1993 = vmatpush1.bf16.msra.mxu0 %v4169_v46  ;;  %1850 = vmatprep.mubr.bf16.mxu0 %v3337_v8 }
 0x852   : > { %1994 = vmatprep.subr.bf16.mxu0 %v1784_v20  ;;  %1929 = vmatprep.mubr.bf16.mxu1 %v3337_v8  ;;  %v4267_v36 = vpop.permute.xlu0 %2103 }
 0x853   : > { %v2099_v9 = vpop.permute.xlu1 %2098 }
 0x855   : > { %1995 = vmatpush1.bf16.msra.mxu0 %v1783_v42 }
 0x856   : > { %1996 = vmatprep.subr.bf16.mxu0 %v1750_v21 }
 0x858   : > { %3062 = vmatmul.mubr.msk.bf16.gmra.mxu0 %vm623_vm4, %v3201_v51  ;;  %3074 = vmatmul.mubr.msk.bf16.gmra.mxu1 %vm623_vm4, %v3202_v53 }
 0x859   : > { %1997 = vmatpush1.bf16.msra.mxu0 %v1749_v25  ;;  %2020 = vmatprep.mubr.bf16.mxu0 %v3337_v8  ;;  %v3080_v25 = vld [vmem:[%s4696_s2 + $0x28] sm:$0xff] }
 0x85a   : > { %1998 = vmatprep.subr.bf16.mxu0 %v1748_v0  ;;  %2251 = vmatprep.mubr.bf16.mxu1 %v3337_v8 }
 0x85d   : > { %1999 = vmatpush1.bf16.msra.mxu0 %v1747_v10 }
 0x85e   : > { %2000 = vmatprep.subr.bf16.mxu0 %v1746_v44 }
 0x861   : > { %2001 = vmatpush1.bf16.msra.mxu0 %v1745_v56 }
 0x862   : > { %2002 = vmatprep.subr.bf16.mxu0 %v1744_v6 }
 0x865   : > { %2003 = vmatpush1.bf16.msra.mxu0 %v1743_v34 }
 0x868   : > { %3077 = vmatmul.mubr.msk.bf16.vlgmr.msra.gmra.mxu0 %vm623_vm4, %v3203_v41 }
 0x869   : > { %2030 = vmatprep.mubr.bf16.mxu0 %v3337_v8 }
 0x870   : > { %3078 = vmatmul.mubr.msk.bf16.gmra.mxu0 %vm623_vm4, %v3204_v49 }
 0x871   : > { %2330 = vmatprep.mubr.bf16.mxu0 %v3337_v8 }
 0x910   : > { %v1842_v55 = vpop.f32.mrf.mxu0  ;;  %v1921_v46 = vpop.f32.mrf.mxu1 }
 0x911   : > { %1940 = vrot.lane.b32.xlu1 %v1842_v55, %s3339_s20 }
 0x912   : > { %v1844_v37 = vpop.f32.mrf.mxu0  ;;  %v1923_v4 = vpop.f32.mrf.mxu1 }
 0x914   : > { %v1846_v35 = vpop.f32.mrf.mxu0  ;;  %v1925_v14 = vpop.f32.mrf.mxu1 }
 0x915   : > { %2041 = vrot.lane.b32.xlu1 %v1921_v46, %s3340_s21  ;;  %1942 = vrot.lane.b32.xlu0 %v1846_v35, %s3339_s20 }
 0x916   : > { %v1848_v15 = vpop.f32.mrf.mxu0  ;;  %v1927_v16 = vpop.f32.mrf.mxu1 }
 0x918   : > { %v1852_v11 = vpop.f32.mrf.mxu0  ;;  %v1931_v13 = vpop.f32.mrf.mxu1 }
 0x919   : > { %1948 = vrot.lane.b32.xlu1 %v1844_v37, %s3339_s20  ;;  %2043 = vrot.lane.b32.xlu0 %v1925_v14, %s3340_s21 }
 0x91a   : > { %v1854_v18 = vpop.f32.mrf.mxu0  ;;  %v1933_v20 = vpop.f32.mrf.mxu1 }
 0x91c   : > { %v1856_v63 = vpop.f32.mrf.mxu0  ;;  %v1935_v42 = vpop.f32.mrf.mxu1 }
 0x91d   : > { %2049 = vrot.lane.b32.xlu1 %v1923_v4, %s3340_s21  ;;  %1950 = vrot.lane.b32.xlu0 %v1848_v15, %s3339_s20 }
 0x91e   : > { %v1858_v21 = vpop.f32.mrf.mxu0  ;;  %v1937_v24 = vpop.f32.mrf.mxu1 }
 0x921   : > { %2051 = vrot.lane.b32.xlu0 %v1927_v16, %s3340_s21  ;;  %1944 = vrot.lane.b32.xlu1 %v1852_v11, %s3339_s20 }
 0x925   : > { %2045 = vrot.lane.b32.xlu1 %v1931_v13, %s3340_s21  ;;  %1946 = vrot.lane.b32.xlu0 %v1856_v63, %s3339_s20 }
 0x928   : > { %v2022_v27 = vpop.f32.mrf.mxu0 }
 0x929   : > { %1952 = vrot.lane.b32.xlu1 %v1854_v18, %s3339_s20  ;;  %2047 = vrot.lane.b32.xlu0 %v1935_v42, %s3340_s21 }
 0x92a   : > { %v2024_v32 = vpop.f32.mrf.mxu0 }
 0x92c   : > { %v4269_v48 = vpop.f32.mrf.mxu0 }
 0x92d   : > { %2053 = vrot.lane.b32.xlu1 %v1933_v20, %s3340_s21  ;;  %1954 = vrot.lane.b32.xlu0 %v1858_v21, %s3339_s20 }
 0x92e   : > { %v4271_v52 = vpop.f32.mrf.mxu0 }
 0x930   : > { %v2032_v56 = vpop.f32.mrf.mxu0 }
 0x931   : > { %2088 = vperm.xlu1 %3182, %v3079_v23   ;;  %2055 = vrot.lane.b32.xlu0 %v1937_v24, %s3340_s21 }
 0x932   : > { %v2034_v1 = vpop.f32.mrf.mxu0 }
 0x934   : > { %v2036_v53 = vpop.f32.mrf.mxu0 }
 0x935   : > { %2093 = vperm.xlu0 %3181, %v3080_v25  }
 0x936   : > { %v2038_v42 = vpop.f32.mrf.mxu0 }
 0x983   : > { %v1941_v0 = vpop.permute.xlu1 %1940 }
 0x987   : > { %v2042_v45 = vpop.permute.xlu1 %2041  ;;  %v1943_v26 = vpop.permute.xlu0 %1942 }
 0x98b   : > { %v1949_v19 = vpop.permute.xlu1 %1948  ;;  %v2044_v59 = vpop.permute.xlu0 %2043 }
 0x98c   : > { %v1956_v41 = vsel %vm778_vm7, %v1941_v0, %v1949_v19  ;;  %v1960_v49 = vsel %vm778_vm7, %v1949_v19, %v1941_v0 }
 0x98d   : > { %v1964_v20 = vmul.f32 %v3684_v60, %v1960_v49  ;;  %v1965_v21 = vmul.f32 %v3687_v61, %v1956_v41 }
 0x98f   : > { %v2050_v10 = vpop.permute.xlu1 %2049  ;;  %v1951_v44 = vpop.permute.xlu0 %1950  ;;  %v2023_v49 = vadd.f32 %v2022_v27, %v1964_v20 }
 0x990   : > { %v2057_v23 = vsel %vm880_vm10, %v2042_v45, %v2050_v10  ;;  %v1957_v19 = vsel %vm778_vm7, %v1943_v26, %v1951_v44 }
 0x993   : > { %v1945_v50 = vpop.permute.xlu1 %1944  ;;  %v2052_v30 = vpop.permute.xlu0 %2051 }
 0x997   : > { %v2046_v40 = vpop.permute.xlu1 %2045  ;;  %v1947_v58 = vpop.permute.xlu0 %1946 }
 0x99b   : > { %v1953_v33 = vpop.permute.xlu1 %1952  ;;  %v2048_v6 = vpop.permute.xlu0 %2047 }
 0x99c   : > { %v1958_v34 = vsel %vm778_vm7, %v1945_v50, %v1953_v33  ;;  %v1962_v38 = vsel %vm778_vm7, %v1953_v33, %v1945_v50  ;;  %v1961_v50 = vsel %vm778_vm7, %v1951_v44, %v1943_v26  ;;  %v2058_v26 = vsel %vm880_vm10, %v2044_v59, %v2052_v30 }
 0x99d   : > { %v1968_v43 = vmul.f32 %v3684_v60, %v1962_v38  ;;  %v1969_v51 = vmul.f32 %v3687_v61, %v1958_v34  ;;  %v2061_v38 = vsel %vm880_vm10, %v2050_v10, %v2042_v45  ;;  %v2062_v44 = vsel %vm880_vm10, %v2052_v30, %v2044_v59 }
 0x99e   : > { %v2068_v59 = vmul.f32 %v3700_v3, %v2062_v44 }
 0x99f   : > { %v2033_v55 = vadd.f32 %v2032_v56, %v1968_v43  ;;  %v2035_v46 = vadd.f32 %v2034_v1, %v1969_v51  ;;  %v2054_v37 = vpop.permute.xlu1 %2053  ;;  %v1955_v4 = vpop.permute.xlu0 %1954  ;;  %v2065_v43 = vmul.f32 %v3697_v2, %v2057_v23 }
 0x9a0   : > { %v2059_v35 = vsel %vm880_vm10, %v2046_v40, %v2054_v37  ;;  %v2063_v14 = vsel %vm880_vm10, %v2054_v37, %v2046_v40  ;;  %v1959_v15 = vsel %vm778_vm7, %v1947_v58, %v1955_v4  ;;  %v1963_v11 = vsel %vm778_vm7, %v1955_v4, %v1947_v58 }
 0x9a1   : > { %v2069_v16 = vmul.f32 %v3697_v2, %v2059_v35  ;;  %v2070_v18 = vmul.f32 %v3700_v3, %v2063_v14  ;;  %v1970_v13 = vmul.f32 %v3684_v60, %v1963_v11  ;;  %v1971_v63 = vmul.f32 %v3687_v61, %v1959_v15 }
 0x9a2   : > { %v2066_v37 = vmul.f32 %v3700_v3, %v2061_v38  ;;  %v2025_v4 = vadd.f32 %v2024_v32, %v1965_v21  ;;  %v2067_v35 = vmul.f32 %v3697_v2, %v2058_v26  ;;  %v2073_v30 = vadd.f32 %v2065_v43, %v2023_v49 }
 0x9a3   : > { %v2077_v24 = vadd.f32 %v2069_v16, %v2033_v55  ;;  %v2078_v25 = vadd.f32 %v2070_v18, %v2035_v46  ;;  %v2056_v0 = vpop.permute.xlu0 %2055  ;;  %v2037_v58 = vadd.f32 %v2036_v53, %v1970_v13  ;;  %v2039_v1 = vadd.f32 %v2038_v42, %v1971_v63 }
 0x9a4   : > { %v2060_v56 = vsel %vm880_vm10, %v2048_v6, %v2056_v0  ;;  %v2064_v40 = vsel %vm880_vm10, %v2056_v0, %v2048_v6  ;;  %v1966_v55 = vmul.f32 %v3684_v60, %v1961_v50  ;;  %v1967_v46 = vmul.f32 %v3687_v61, %v1957_v19 }
 0x9a5   : > { %v2071_v33 = vmul.f32 %v3697_v2, %v2060_v56  ;;  %v2072_v34 = vmul.f32 %v3700_v3, %v2064_v40  ;;  %v2110_v51 = vadd.f32 %v2099_v9, %v2077_v24  ;;  %v2111_v41 = vadd.f32 %v2099_v9, %v2078_v25  ;;  %v3109_v40 = vld [vmem:[%s4698_s4 + $0x30] sm:$0xff] }
 0x9a6   : > { %v2027_v11 = vadd.f32 %v4269_v48, %v1966_v55  ;;  %v2029_v16 = vadd.f32 %v4271_v52, %v1967_v46  ;;  %v2074_v13 = vadd.f32 %v2066_v37, %v2025_v4 }
 0x9a7   : > { %v2079_v6 = vadd.f32 %v2071_v33, %v2037_v58  ;;  %v2080_v53 = vadd.f32 %v2072_v34, %v2039_v1  ;;  %v2118_v9 = vmax.f32 %v2110_v51, 0.0  ;;  %v2119_v14 = vmax.f32 %v2111_v41, 0.0  ;;  %v3110_v58 = vld [vmem:[%s4698_s4 + $0x38] sm:$0xff] }
 0x9a8   : > { %v2075_v21 = vadd.f32 %v2067_v35, %v2027_v11  ;;  %v2076_v23 = vadd.f32 %v2068_v59, %v2029_v16 }
 0x9a9   : > { %v2112_v45 = vadd.f32 %v4267_v36, %v2079_v6  ;;  %v2113_v10 = vadd.f32 %v4267_v36, %v2080_v53 }
 0x9ab   : > { %v2120_v15 = vmax.f32 %v2112_v45, 0.0  ;;  %v2121_v27 = vmax.f32 %v2113_v10, 0.0 }
 0x9ac   : > { %v2089_v18 = vpop.permute.xlu1 %2088 }
 0x9ad   : > { %v2106_v63 = vadd.f32 %v2089_v18, %v2073_v30  ;;  %v4325_v20 = vpack.c.bf16 %v2121_v27, %v2119_v14  ;;  %v4327_v36 = vpack.c.bf16 %v2120_v15, %v2118_v9  ;;  %v2107_v32 = vadd.f32 %v2089_v18, %v2074_v13 }
 0x9af   : > { %v2114_v42 = vmax.f32 %v2106_v63, 0.0  ;;  %v2115_v19 = vmax.f32 %v2107_v32, 0.0 }
 0x9b0   : > { %v2094_v24 = vpop.permute.xlu0 %2093 }
 0x9b1   : > { %v2108_v25 = vadd.f32 %v2094_v24, %v2075_v21  ;;  %v2109_v0 = vadd.f32 %v2094_v24, %v2076_v23  ;;  %2162 = vrot.lane.b32.xlu1 %v2114_v42, %s3335_s30 }
 0x9b3   : > { %v2116_v48 = vmax.f32 %v2108_v25, 0.0  ;;  %v2117_v50 = vmax.f32 %v2109_v0, 0.0 }
 0x9b5   : > { %v4330_v52 = vpack.c.bf16 %v2116_v48, %v2114_v42  ;;  %2166 = vrot.lane.b32.xlu1 %v2118_v9, %s3335_s30  ;;  %2164 = vrot.lane.b32.xlu0 %v2116_v48, %s3335_s30  ;;  %v4334_v56 = vpack.c.bf16 %v2117_v50, %v2115_v19 }
 0x9b9   : > { %2174 = vrot.lane.b32.xlu1 %v2119_v14, %s3335_s30  ;;  %2168 = vrot.lane.b32.xlu0 %v2120_v15, %s3335_s30 }
 0x9bd   : > { %2170 = vrot.lane.b32.xlu1 %v2115_v19, %s3335_s30  ;;  %2176 = vrot.lane.b32.xlu0 %v2121_v27, %s3335_s30 }
 0x9c1   : > { %2126 = vrot.lane.b32.xlu1 %v2118_v9, %s3336_s14  ;;  %2172 = vrot.lane.b32.xlu0 %v2117_v50, %s3335_s30 }
 0x9c5   : > { %2134 = vrot.lane.b32.xlu1 %v2119_v14, %s3336_s14  ;;  %2124 = vrot.lane.b32.xlu0 %v2116_v48, %s3336_s14 }
 0x9c9   : > { %2122 = vrot.lane.b32.xlu1 %v2114_v42, %s3336_s14  ;;  %2128 = vrot.lane.b32.xlu0 %v2120_v15, %s3336_s14 }
 0x9cd   : > { %2130 = vrot.lane.b32.xlu1 %v2115_v19, %s3336_s14  ;;  %2136 = vrot.lane.b32.xlu0 %v2121_v27, %s3336_s14 }
 0x9d1   : > { %2509 = vperm.xlu1 %3182, %v3109_v40   ;;  %2132 = vrot.lane.b32.xlu0 %v2117_v50, %s3336_s14 }
 0x9d5   : > { %2514 = vperm.xlu0 %3181, %v3110_v58  }
 0xa23   : > { %v2163_v1 = vpop.permute.xlu1 %2162 }
 0xa27   : > { %v2167_v33 = vpop.permute.xlu1 %2166  ;;  %v2165_v34 = vpop.permute.xlu0 %2164 }
 0xa2b   : > { %v2175_v38 = vpop.permute.xlu1 %2174  ;;  %v2169_v43 = vpop.permute.xlu0 %2168 }
 0xa2c   : > { %v2184_v26 = vsel %vm588_vm1, %v2175_v38, %v2167_v33  ;;  %v2180_v46 = vsel %vm588_vm1, %v2167_v33, %v2175_v38 }
 0xa2d   : > { %v2191_v6 = vmul.f32 %v3549_v17, %v2184_v26  ;;  %v3205_v26 = vld [vmem:[%s4697_s3 + $0x30] sm:$0xff]  }
 0xa2f   : > { %v2171_v44 = vpop.permute.xlu1 %2170  ;;  %v2177_v51 = vpop.permute.xlu0 %2176 }
 0xa30   : > { %v2185_v41 = vsel %vm588_vm1, %v2177_v51, %v2169_v43  ;;  %v2181_v53 = vsel %vm588_vm1, %v2169_v43, %v2177_v51  ;;  %v2182_v55 = vsel %vm588_vm1, %v2171_v44, %v2163_v1  ;;  %v2178_v14 = vsel %vm588_vm1, %v2163_v1, %v2171_v44  ;;  %v3206_v44 = vld [vmem:[%s4697_s3 + $0x50] sm:$0xff]   ;;  %v3208_v51 = vld [vmem:[%s4697_s3 + $0x58] sm:$0xff]  }
 0xa31   : > { %v2193_v49 = vmul.f32 %v3549_v17, %v2185_v41  ;;  %v2196_v4 = vpack.c.bf16 %v2181_v53, %v2180_v46  ;;  %v2187_v59 = vmul.f32 %v3549_v17, %v2182_v55 }
 0xa33   : > { %v2127_v37 = vpop.permute.xlu1 %2126  ;;  %v2173_v45 = vpop.permute.xlu0 %2172  ;;  %v2197_v10 = vpack.c.bf16 %v2193_v49, %v2191_v6 }
 0xa34   : > { %v2183_v35 = vsel %vm588_vm1, %v2173_v45, %v2165_v34  ;;  %v2179_v30 = vsel %vm588_vm1, %v2165_v34, %v2173_v45 }
 0xa35   : > { %v2189_v9 = vmul.f32 %v3549_v17, %v2183_v35  ;;  %2223 = vmatprep.subr.bf16.mxu1 %v2197_v10  ;;  %2302 = vmatprep.subr.bf16.mxu0 %v2197_v10  ;;  %v2194_v16 = vpack.c.bf16 %v2179_v30, %v2178_v14 }
 0xa36   : > { %2224 = vmatpush1.bf16.msra.mxu1 %v2196_v4  ;;  %2303 = vmatpush1.bf16.msra.mxu0 %v2196_v4 }
 0xa37   : > { %v2135_v15 = vpop.permute.xlu1 %2134  ;;  %v2125_v27 = vpop.permute.xlu0 %2124  ;;  %v2195_v11 = vpack.c.bf16 %v2189_v9, %v2187_v59  ;;  %v3107_v9 = vld [vmem:[%s4698_s4 + $0x20] sm:$0xff] }
 0xa38   : > { %v2144_v13 = vsel %vm547_vm2, %v2135_v15, %v2127_v37  ;;  %v2140_v42 = vsel %vm547_vm2, %v2127_v37, %v2135_v15  ;;  %v3113_v15 = vld [vmem:[%s4700_s6 + $0x30] sm:$0xff] }
 0xa39   : > { %2225 = vmatprep.subr.bf16.mxu1 %v2195_v11  ;;  %2304 = vmatprep.subr.bf16.mxu0 %v2195_v11  ;;  %v2150_v24 = vmul.f32 %v3588_v47, %v2144_v13  ;;  %v3121_v13 = vld [vmem:[%s4702_s8 + $0x30] sm:$0xff] }
 0xa3a   : > { %2226 = vmatpush1.bf16.msra.mxu1 %v2194_v16  ;;  %2305 = vmatpush1.bf16.msra.mxu0 %v2194_v16 }
 0xa3b   : > { %v2123_v18 = vpop.permute.xlu1 %2122  ;;  %2227 = vmatprep.subr.bf16.mxu1 %v4325_v20  ;;  %2306 = vmatprep.subr.bf16.mxu0 %v4325_v20  ;;  %v2129_v17 = vpop.permute.xlu0 %2128 }
 0xa3e   : > { %2228 = vmatpush1.bf16.msra.mxu1 %v4327_v36  ;;  %2307 = vmatpush1.bf16.msra.mxu0 %v4327_v36 }
 0xa3f   : > { %v2131_v63 = vpop.permute.xlu1 %2130  ;;  %2229 = vmatprep.subr.bf16.mxu1 %v4334_v56  ;;  %2308 = vmatprep.subr.bf16.mxu0 %v4334_v56  ;;  %v2137_v32 = vpop.permute.xlu0 %2136 }
 0xa40   : > { %v2141_v21 = vsel %vm547_vm2, %v2129_v17, %v2137_v32  ;;  %v2145_v23 = vsel %vm547_vm2, %v2137_v32, %v2129_v17  ;;  %v2142_v19 = vsel %vm547_vm2, %v2131_v63, %v2123_v18  ;;  %v2138_v40 = vsel %vm547_vm2, %v2123_v18, %v2131_v63  ;;  %v3119_v18 = vld [vmem:[%s4702_s8 + $0x20] sm:$0xff]  ;;  %v3112_v17 = vld [vmem:[%s4700_s6 + $0x28] sm:$0xff]  ;;  %v3122_v32 = vld [vmem:[%s4702_s8 + $0x38] sm:$0xff] }
 0xa41   : > { %v2152_v25 = vmul.f32 %v3588_v47, %v2145_v23  ;;  %v2157_v0 = vpack.c.bf16 %v2141_v21, %v2140_v42  ;;  %v2146_v33 = vmul.f32 %v3588_v47, %v2142_v19  ;;  %v3120_v63 = vld [vmem:[%s4702_s8 + $0x28] sm:$0xff] }
 0xa42   : > { %2230 = vmatpush1.bf16.msra.mxu1 %v4330_v52  ;;  %2309 = vmatpush1.bf16.msra.mxu0 %v4330_v52 }
 0xa43   : > { %v2156_v48 = vpack.c.bf16 %v2152_v25, %v2150_v24  ;;  %v2133_v50 = vpop.permute.xlu0 %2132  ;;  %2231 = vmatprep.subr.bf16.mxu1 %v2157_v0  ;;  %2310 = vmatprep.subr.bf16.mxu0 %v2157_v0 }
 0xa44   : > { %v2139_v58 = vsel %vm547_vm2, %v2125_v27, %v2133_v50  ;;  %v2143_v1 = vsel %vm547_vm2, %v2133_v50, %v2125_v27  ;;  %v3108_v27 = vld [vmem:[%s4698_s4 + $0x28] sm:$0xff] }
 0xa45   : > { %v2148_v34 = vmul.f32 %v3588_v47, %v2143_v1  ;;  %v2155_v38 = vpack.c.bf16 %v2139_v58, %v2138_v40  ;;  %v3207_v47 = vld [vmem:[%s4697_s3 + $0x38] sm:$0xff]  }
 0xa46   : > { %2232 = vmatpush1.bf16.msra.mxu1 %v2156_v48  ;;  %2311 = vmatpush1.bf16.msra.mxu0 %v2156_v48 }
 0xa47   : > { %v2154_v43 = vpack.c.bf16 %v2148_v34, %v2146_v33  ;;  %2233 = vmatprep.subr.bf16.mxu1 %v2155_v38  ;;  %2312 = vmatprep.subr.bf16.mxu0 %v2155_v38 }
 0xa4a   : > { %2234 = vmatpush1.bf16.msra.mxu1 %v2154_v43  ;;  %2313 = vmatpush1.bf16.msra.mxu0 %v2154_v43 }
 0xa4b   : > { %2403 = vmatprep.subr.bf16.mxu1 %v2197_v10 }
 0xa4c   : > { %v2510_v42 = vpop.permute.xlu1 %2509 }
 0xa4d   : > { %3089 = vmatmul.mubr.msk.bf16.vlgmr.msra.gmra.mxu1 %vm623_vm4, %v3205_v26  ;;  %3101 = vmatmul.mubr.msk.bf16.vlgmr.msra.gmra.mxu0 %vm623_vm4, %v3206_v44 }
 0xa4e   : > { %2404 = vmatpush1.bf16.msra.mxu1 %v2196_v4  ;;  %2261 = vmatprep.mubr.bf16.mxu1 %v3337_v8 }
 0xa4f   : > { %2405 = vmatprep.subr.bf16.mxu1 %v2195_v11  ;;  %2340 = vmatprep.mubr.bf16.mxu0 %v3337_v8  ;;  %v3111_v11 = vld [vmem:[%s4700_s6 + $0x20] sm:$0xff] }
 0xa50   : > { %v4483_v21 = vpop.permute.xlu0 %2514 }
 0xa52   : > { %2406 = vmatpush1.bf16.msra.mxu1 %v2194_v16  ;;  %v3114_v16 = vld [vmem:[%s4700_s6 + $0x38] sm:$0xff] }
 0xa53   : > { %2407 = vmatprep.subr.bf16.mxu1 %v4325_v20  ;;  %v3209_v20 = vld [vmem:[%s4697_s3 + $0x40] sm:$0xff]  }
 0xa55   : > { %3090 = vmatmul.mubr.msk.bf16.gmra.mxu1 %vm623_vm4, %v3207_v47  ;;  %3102 = vmatmul.mubr.msk.bf16.gmra.mxu0 %vm623_vm4, %v3208_v51 }
 0xa56   : > { %2408 = vmatpush1.bf16.msra.mxu1 %v4327_v36  ;;  %2431 = vmatprep.mubr.bf16.mxu1 %v3337_v8  ;;  %v3210_v36 = vld [vmem:[%s4697_s3 + $0x48] sm:$0xff]  }
 0xa57   : > { %2409 = vmatprep.subr.bf16.mxu1 %v4334_v56  ;;  %2623 = vmatprep.mubr.bf16.mxu0 %v3337_v8 }
 0xa5a   : > { %2410 = vmatpush1.bf16.msra.mxu1 %v4330_v52 }
 0xa5b   : > { %2411 = vmatprep.subr.bf16.mxu1 %v2157_v0 }
 0xa5e   : > { %2412 = vmatpush1.bf16.msra.mxu1 %v2156_v48 }
 0xa5f   : > { %2413 = vmatprep.subr.bf16.mxu1 %v2155_v38 }
 0xa62   : > { %2414 = vmatpush1.bf16.msra.mxu1 %v2154_v43 }
 0xa65   : > { %3105 = vmatmul.mubr.msk.bf16.vlgmr.msra.gmra.mxu1 %vm623_vm4, %v3209_v20 }
 0xa66   : > { %2441 = vmatprep.mubr.bf16.mxu1 %v3337_v8 }
 0xa6d   : > { %3106 = vmatmul.mubr.msk.bf16.gmra.mxu1 %vm623_vm4, %v3210_v36 }
 0xa6e   : > { %2734 = vmatprep.mubr.bf16.mxu1 %v3337_v8 }
 0xb0d   : > { %v2253_v52 = vpop.f32.mrf.mxu1  ;;  %v2332_v56 = vpop.f32.mrf.mxu0 }
 0xb0e   : > { %2351 = vrot.lane.b32.xlu1 %v2253_v52, %s3339_s20 }
 0xb0f   : > { %v2255_v41 = vpop.f32.mrf.mxu1  ;;  %v2334_v6 = vpop.f32.mrf.mxu0 }
 0xb11   : > { %v2257_v53 = vpop.f32.mrf.mxu1  ;;  %v2336_v49 = vpop.f32.mrf.mxu0 }
 0xb12   : > { %2452 = vrot.lane.b32.xlu1 %v2332_v56, %s3340_s21  ;;  %2353 = vrot.lane.b32.xlu0 %v2257_v53, %s3339_s20 }
 0xb13   : > { %v2259_v55 = vpop.f32.mrf.mxu1  ;;  %v2338_v37 = vpop.f32.mrf.mxu0 }
 0xb15   : > { %v2263_v46 = vpop.f32.mrf.mxu1  ;;  %v2342_v10 = vpop.f32.mrf.mxu0 }
 0xb16   : > { %2359 = vrot.lane.b32.xlu1 %v2255_v41, %s3339_s20  ;;  %2454 = vrot.lane.b32.xlu0 %v2336_v49, %s3340_s21 }
 0xb17   : > { %v2265_v45 = vpop.f32.mrf.mxu1  ;;  %v2344_v35 = vpop.f32.mrf.mxu0 }
 0xb19   : > { %v2267_v4 = vpop.f32.mrf.mxu1  ;;  %v2346_v59 = vpop.f32.mrf.mxu0 }
 0xb1a   : > { %2460 = vrot.lane.b32.xlu1 %v2334_v6, %s3340_s21  ;;  %2361 = vrot.lane.b32.xlu0 %v2259_v55, %s3339_s20 }
 0xb1b   : > { %v2269_v30 = vpop.f32.mrf.mxu1  ;;  %v2348_v14 = vpop.f32.mrf.mxu0 }
 0xb1e   : > { %2462 = vrot.lane.b32.xlu0 %v2338_v37, %s3340_s21  ;;  %2355 = vrot.lane.b32.xlu1 %v2263_v46, %s3339_s20 }
 0xb22   : > { %2456 = vrot.lane.b32.xlu1 %v2342_v10, %s3340_s21  ;;  %2357 = vrot.lane.b32.xlu0 %v2267_v4, %s3339_s20 }
 0xb25   : > { %v2433_v24 = vpop.f32.mrf.mxu1 }
 0xb26   : > { %2363 = vrot.lane.b32.xlu1 %v2265_v45, %s3339_s20  ;;  %2458 = vrot.lane.b32.xlu0 %v2346_v59, %s3340_s21 }
 0xb27   : > { %v2435_v19 = vpop.f32.mrf.mxu1 }
 0xb29   : > { %v4485_v40 = vpop.f32.mrf.mxu1 }
 0xb2a   : > { %2464 = vrot.lane.b32.xlu1 %v2344_v35, %s3340_s21  ;;  %2365 = vrot.lane.b32.xlu0 %v2269_v30, %s3339_s20  ;;  %s4663_s20 = scalar_lea.vmem %s4707_s13, %s4711_s15 }
 0xb2b   : > { %v4487_v33 = vpop.f32.mrf.mxu1 }
 0xb2d   : > { %v2443_v43 = vpop.f32.mrf.mxu1 }
 0xb2e   : > { %2499 = vperm.xlu1 %3182, %v3107_v9   ;;  %2466 = vrot.lane.b32.xlu0 %v2348_v14, %s3340_s21 }
 0xb2f   : > { %v2445_v47 = vpop.f32.mrf.mxu1 }
 0xb31   : > { %v2447_v6 = vpop.f32.mrf.mxu1 }
 0xb32   : > { %2567 = vperm.xlu1 %3182, %v3113_v15   ;;  %2504 = vperm.xlu0 %3181, %v3108_v27  }
 0xb33   : > { %v2449_v27 = vpop.f32.mrf.mxu1 }
 0xb36   : > { %2557 = vperm.xlu1 %3182, %v3111_v11   ;;  %2572 = vperm.xlu0 %3181, %v3114_v16  }
 0xb3a   : > { %2668 = vperm.xlu1 %3182, %v3119_v18   ;;  %2562 = vperm.xlu0 %3181, %v3112_v17  }
 0xb3e   : > { %2678 = vperm.xlu1 %3182, %v3121_v13   ;;  %2673 = vperm.xlu0 %3181, %v3120_v63  }
 0xb42   : > { %2683 = vperm.xlu0 %3181, %v3122_v32  }
 0xb80   : > { %v2352_v23 = vpop.permute.xlu1 %2351 }
 0xb84   : > { %v2453_v25 = vpop.permute.xlu1 %2452  ;;  %v2354_v0 = vpop.permute.xlu0 %2353 }
 0xb88   : > { %v2360_v48 = vpop.permute.xlu1 %2359  ;;  %v2455_v50 = vpop.permute.xlu0 %2454 }
 0xb89   : > { %v2367_v53 = vsel %vm778_vm7, %v2352_v23, %v2360_v48  ;;  %v2371_v49 = vsel %vm778_vm7, %v2360_v48, %v2352_v23 }
 0xb8a   : > { %v2375_v11 = vmul.f32 %v3684_v60, %v2371_v49  ;;  %v2376_v16 = vmul.f32 %v3687_v61, %v2367_v53 }
 0xb8c   : > { %v2461_v58 = vpop.permute.xlu1 %2460  ;;  %v2362_v1 = vpop.permute.xlu0 %2361 }
 0xb8d   : > { %v2468_v18 = vsel %vm880_vm10, %v2453_v25, %v2461_v58  ;;  %v2472_v17 = vsel %vm880_vm10, %v2461_v58, %v2453_v25  ;;  %v2368_v13 = vsel %vm778_vm7, %v2354_v0, %v2362_v1  ;;  %v2372_v63 = vsel %vm778_vm7, %v2362_v1, %v2354_v0 }
 0xb8e   : > { %v2476_v0 = vmul.f32 %v3697_v2, %v2468_v18  ;;  %v2477_v1 = vmul.f32 %v3700_v3, %v2472_v17 }
 0xb90   : > { %v2463_v34 = vpop.permute.xlu0 %2462  ;;  %v2356_v38 = vpop.permute.xlu1 %2355 }
 0xb94   : > { %v2457_v26 = vpop.permute.xlu1 %2456  ;;  %v2358_v44 = vpop.permute.xlu0 %2357 }
 0xb98   : > { %v2364_v51 = vpop.permute.xlu1 %2363  ;;  %v2459_v20 = vpop.permute.xlu0 %2458 }
 0xb99   : > { %v2369_v36 = vsel %vm778_vm7, %v2356_v38, %v2364_v51  ;;  %v2373_v52 = vsel %vm778_vm7, %v2364_v51, %v2356_v38 }
 0xb9a   : > { %v2379_v56 = vmul.f32 %v3684_v60, %v2373_v52  ;;  %v2380_v41 = vmul.f32 %v3687_v61, %v2369_v36  ;;  %v2434_v36 = vadd.f32 %v2433_v24, %v2375_v11  ;;  %v2436_v52 = vadd.f32 %v2435_v19, %v2376_v16 }
 0xb9c   : > { %v2444_v55 = vadd.f32 %v2443_v43, %v2379_v56  ;;  %v2446_v46 = vadd.f32 %v2445_v47, %v2380_v41  ;;  %v2465_v37 = vpop.permute.xlu1 %2464  ;;  %v2366_v45 = vpop.permute.xlu0 %2365  ;;  %v2377_v56 = vmul.f32 %v3684_v60, %v2372_v63  ;;  %v2378_v41 = vmul.f32 %v3687_v61, %v2368_v13 }
 0xb9d   : > { %v2470_v10 = vsel %vm880_vm10, %v2457_v26, %v2465_v37  ;;  %v2474_v4 = vsel %vm880_vm10, %v2465_v37, %v2457_v26  ;;  %v2370_v35 = vsel %vm778_vm7, %v2358_v44, %v2366_v45  ;;  %v2374_v59 = vsel %vm778_vm7, %v2366_v45, %v2358_v44 }
 0xb9e   : > { %v2480_v30 = vmul.f32 %v3697_v2, %v2470_v10  ;;  %v2481_v9 = vmul.f32 %v3700_v3, %v2474_v4  ;;  %v2381_v14 = vmul.f32 %v3684_v60, %v2374_v59  ;;  %v2382_v15 = vmul.f32 %v3687_v61, %v2370_v35 }
 0xb9f   : > { %v2485_v37 = vadd.f32 %v2477_v1, %v2436_v52  ;;  %v2438_v4 = vadd.f32 %v4485_v40, %v2377_v56  ;;  %v2440_v35 = vadd.f32 %v4487_v33, %v2378_v41 }
 0xba0   : > { %v2488_v32 = vadd.f32 %v2480_v30, %v2444_v55  ;;  %v2489_v23 = vadd.f32 %v2481_v9, %v2446_v46  ;;  %v2467_v48 = vpop.permute.xlu0 %2466  ;;  %v2448_v38 = vadd.f32 %v2447_v6, %v2381_v14  ;;  %v2450_v43 = vadd.f32 %v2449_v27, %v2382_v15 }
 0xba1   : > { %v2471_v26 = vsel %vm880_vm10, %v2459_v20, %v2467_v48  ;;  %v2475_v44 = vsel %vm880_vm10, %v2467_v48, %v2459_v20  ;;  %v2469_v20 = vsel %vm880_vm10, %v2455_v50, %v2463_v34  ;;  %v2484_v46 = vadd.f32 %v2476_v0, %v2434_v36 }
 0xba2   : > { %v2521_v47 = vadd.f32 %v2510_v42, %v2488_v32  ;;  %v2522_v51 = vadd.f32 %v2510_v42, %v2489_v23  ;;  %v2482_v25 = vmul.f32 %v3697_v2, %v2471_v26  ;;  %v2483_v58 = vmul.f32 %v3700_v3, %v2475_v44  ;;  %v3211_v32 = vld [vmem:[#allocation2 + $0x10] sm:$0xff]  }
 0xba3   : > { %v2473_v42 = vsel %vm880_vm10, %v2463_v34, %v2455_v50  ;;  %v2478_v60 = vmul.f32 %v3697_v2, %v2469_v20 }
 0xba4   : > { %v2490_v6 = vadd.f32 %v2482_v25, %v2448_v38  ;;  %v2491_v53 = vadd.f32 %v2483_v58, %v2450_v43  ;;  %v2529_v49 = vmul.f32 0.1, %v2521_v47  ;;  %v2530_v55 = vmul.f32 0.1, %v2522_v51 }
 0xba5   : > { %v2479_v61 = vmul.f32 %v3700_v3, %v2473_v42  ;;  %v2486_v30 = vadd.f32 %v2478_v60, %v2438_v4  ;;  %v3214_v4 = vld [vmem:[#allocation4 + $0x18] sm:$0xff]  }
 0xba6   : > { %v2523_v24 = vadd.f32 %v4483_v21, %v2490_v6  ;;  %v2524_v19 = vadd.f32 %v4483_v21, %v2491_v53  ;;  %v4542_v12 = vadd.f32 %v2529_v49, %v4095_v28  ;;  %v4545_v34 = vadd.f32 %v2530_v55, %v4108_v29 }
 0xba7   : > { %v2487_v9 = vadd.f32 %v2479_v61, %v2440_v35 }
 0xba8   : > { %v2531_v45 = vmul.f32 0.1, %v2523_v24  ;;  %v2532_v10 = vmul.f32 0.1, %v2524_v19 }
 0xba9   : > { %v2500_v50 = vpop.permute.xlu1 %2499 }
 0xbaa   : > { %v4548_v21 = vadd.f32 %v2531_v45, %v4092_v7  ;;  %v2517_v59 = vadd.f32 %v2500_v50, %v2484_v46  ;;  %v2518_v2 = vadd.f32 %v2500_v50, %v2485_v37  ;;  %v4551_v3 = vadd.f32 %v2532_v10, %v4104_v5  ;;  %v3213_v10 = vld [vmem:[#allocation4 + $0x10] sm:$0xff]  }
 0xbac   : > { %v2549_v40 = vpack.c.bf16 %v4551_v3, %v4545_v34  ;;  %v2548_v28 = vpack.c.bf16 %v4548_v21, %v4542_v12  ;;  %v2525_v14 = vmul.f32 0.1, %v2517_v59  ;;  %v2526_v29 = vmul.f32 0.1, %v2518_v2 }
 0xbad   : > { %v2505_v33 = vpop.permute.xlu0 %2504  ;;  %v2568_v38 = vpop.permute.xlu1 %2567 }
 0xbae   : > { %v2519_v15 = vadd.f32 %v2505_v33, %v2486_v30  ;;  %v2520_v27 = vadd.f32 %v2505_v33, %v2487_v9  ;;  %2603 = vmatprep.subr.bf16.mxu0 %v2549_v40  ;;  %v4558_v5 = vadd.f32 %v2525_v14, %v4119_v62  ;;  %v4561_v16 = vadd.f32 %v2526_v29, %v4129_v54  ;;  %v3212_v62 = vld [vmem:[#allocation2 + $0x18] sm:$0xff]  }
 0xbaf   : > { %2604 = vmatpush1.bf16.msra.mxu0 %v2548_v28 }
 0xbb0   : > { %v2527_v7 = vmul.f32 0.1, %v2519_v15  ;;  %v2528_v11 = vmul.f32 0.1, %v2520_v27 }
 0xbb1   : > { %v2573_v23 = vpop.permute.xlu0 %2572  ;;  %v2558_v36 = vpop.permute.xlu1 %2557 }
 0xbb2   : > { %v4564_v18 = vadd.f32 %v2527_v7, %v4116_v31  ;;  %v4567_v17 = vadd.f32 %v2528_v11, %v4126_v22 }
 0xbb4   : > { %v2546_v13 = vpack.c.bf16 %v4564_v18, %v4558_v5  ;;  %v2547_v63 = vpack.c.bf16 %v4567_v17, %v4561_v16 }
 0xbb5   : > { %v2563_v44 = vpop.permute.xlu0 %2562  ;;  %v2669_v50 = vpop.permute.xlu1 %2668 }
 0xbb6   : > { %2605 = vmatprep.subr.bf16.mxu0 %v2547_v63 }
 0xbb7   : > { %2606 = vmatpush1.bf16.msra.mxu0 %v2546_v13 }
 0xbb9   : > { %v2674_v28 = vpop.permute.xlu0 %2673  ;;  %v2679_v27 = vpop.permute.xlu1 %2678 }
 0xbba   : > { %3117 = vmatmul.mubr.msk.bf16.vlgmr.msra.gmra.mxu0 %vm1404_vm11, %v3211_v32 }
 0xbbb   : > { %2633 = vmatprep.mubr.bf16.mxu0 %v3337_v8 }
 0xbc2   : > { %3118 = vmatmul.mubr.msk.bf16.gmra.mxu0 %vm1404_vm11, %v3212_v62  ;;  %v2684_v62 = vpop.permute.xlu0 %2683 }
 0xc7a   : > { %v2625_v31 = vpop.f32.mrf.mxu0 }
 0xc7b   : > { %v2626_v49 = vadd.f32 %v2625_v31, %v2558_v36 }
 0xc7c   : > { %v2627_v54 = vpop.f32.mrf.mxu0 }
 0xc7d   : > { %v2628_v1 = vadd.f32 %v2627_v54, %v2558_v36  ;;  %v2644_v61 = vmax.f32 %v2626_v49, 0.0 }
 0xc7e   : > { %v2629_v22 = vpop.f32.mrf.mxu0 }
 0xc7f   : > { %v2630_v41 = vadd.f32 %v2629_v22, %v2563_v44  ;;  %v2645_v24 = vmax.f32 %v2628_v1, 0.0 }
 0xc80   : > { %v2631_v48 = vpop.f32.mrf.mxu0 }
 0xc81   : > { %v2632_v51 = vadd.f32 %v2631_v48, %v2563_v44  ;;  %v2646_v46 = vmax.f32 %v2630_v41, 0.0 }
 0xc82   : > { %v2635_v43 = vpop.f32.mrf.mxu0 }
 0xc83   : > { %v2636_v52 = vadd.f32 %v2635_v43, %v2568_v38  ;;  %v2647_v53 = vmax.f32 %v2632_v51, 0.0  ;;  %v2657_v45 = vpack.c.bf16 %v2646_v46, %v2644_v61 }
 0xc84   : > { %v2637_v26 = vpop.f32.mrf.mxu0 }
 0xc85   : > { %v2638_v25 = vadd.f32 %v2637_v26, %v2568_v38  ;;  %v2648_v55 = vmax.f32 %v2636_v52, 0.0  ;;  %v2658_v60 = vpack.c.bf16 %v2647_v53, %v2645_v24  ;;  %v3128_v38 = vld [vmem:[%s4703_s9 + $0x28] sm:$0xff] }
 0xc86   : > { %v2639_v47 = vpop.f32.mrf.mxu0 }
 0xc87   : > { %v2640_v58 = vadd.f32 %v2639_v47, %v2573_v23  ;;  %v2649_v20 = vmax.f32 %v2638_v25, 0.0  ;;  %v3127_v47 = vld [vmem:[%s4703_s9 + $0x20] sm:$0xff]  ;;  %v3129_v25 = vld [vmem:[%s4703_s9 + $0x30] sm:$0xff] }
 0xc88   : > { %v2641_v0 = vpop.f32.mrf.mxu0 }
 0xc89   : > { %v2642_v56 = vadd.f32 %v2641_v0, %v2573_v23  ;;  %v2650_v6 = vmax.f32 %v2640_v58, 0.0 }
 0xc8b   : > { %v2651_v42 = vmax.f32 %v2642_v56, 0.0  ;;  %v2659_v37 = vpack.c.bf16 %v2650_v6, %v2648_v55  ;;  %v3130_v56 = vld [vmem:[%s4703_s9 + $0x38] sm:$0xff] }
 0xc8d   : > { %v2660_v19 = vpack.c.bf16 %v2651_v42, %v2649_v20 }
 0xc8f   : > { %2714 = vmatprep.subr.bf16.mxu1 %v2660_v19 }
 0xc90   : > { %2715 = vmatpush1.bf16.msra.mxu1 %v2659_v37 }
 0xc91   : > { %2716 = vmatprep.subr.bf16.mxu1 %v2658_v60 }
 0xc94   : > { %2717 = vmatpush1.bf16.msra.mxu1 %v2657_v45 }
 0xc97   : > { %3125 = vmatmul.mubr.msk.bf16.vlgmr.msra.gmra.mxu1 %vm1404_vm11, %v3213_v10  ;;  %v3131_v10 = vld [vmem:[%s4704_s10 + $0x1] sm:$0x1] }
 0xc98   : > { %2744 = vmatprep.mubr.bf16.mxu1 %v3337_v8 }
 0xc9f   : > { %3126 = vmatmul.mubr.msk.bf16.gmra.mxu1 %vm1404_vm11, %v3214_v4 }
 0xd57   : > { %v2736_v35 = vpop.f32.mrf.mxu1 }
 0xd58   : > { %v4579_v2 = vadd.f32 %v2736_v35, %v2669_v50 }
 0xd59   : > { %v2738_v59 = vpop.f32.mrf.mxu1 }
 0xd5a   : > { %v4581_v30 = vadd.f32 %v2738_v59, %v2669_v50  ;;  %v3133_v59 = vld [vmem:[%s4705_s11 + $0x28] sm:$0xff] }
 0xd5b   : > { %v2740_v9 = vpop.f32.mrf.mxu1 }
 0xd5c   : > { %v2755_v40 = vadd.f32 %v4581_v30, %v4579_v2  ;;  %v4585_v14 = vadd.f32 %v2740_v9, %v2674_v28  ;;  %v3132_v9 = vld [vmem:[%s4705_s11 + $0x20] sm:$0xff] }
 0xd5d   : > { %v2742_v33 = vpop.f32.mrf.mxu1 }
 0xd5e   : > { %v4587_v29 = vadd.f32 %v2742_v33, %v2674_v28  ;;  %2756 = vadd.xlane.f32.xlu1 %v2755_v40  ;;  %v3135_v28 = vld [vmem:[%s4705_s11 + $0x38] sm:$0xff]  ;;  %v3134_v33 = vld [vmem:[%s4705_s11 + $0x30] sm:$0xff] }
 0xd5f   : > { %v2746_v8 = vpop.f32.mrf.mxu1 }
 0xd60   : > { %v2758_v15 = vadd.f32 %v4587_v29, %v4585_v14  ;;  %v4591_v11 = vadd.f32 %v2746_v8, %v2679_v27 }
 0xd61   : > { %v2748_v7 = vpop.f32.mrf.mxu1 }
 0xd62   : > { %v4593_v13 = vadd.f32 %v2748_v7, %v2679_v27  ;;  %2759 = vadd.xlane.f32.xlu0 %v2758_v15 }
 0xd63   : > { %v2750_v63 = vpop.f32.mrf.mxu1 }
 0xd64   : > { %v2761_v32 = vadd.f32 %v4593_v13, %v4591_v11  ;;  %v4597_v54 = vadd.f32 %v2750_v63, %v2684_v62 }
 0xd65   : > { %v2752_v31 = vpop.f32.mrf.mxu1 }
 0xd66   : > { %v4599_v22 = vadd.f32 %v2752_v31, %v2684_v62  ;;  %2762 = vadd.xlane.f32.xlu0 %v2761_v32  ;;  %v3137_v62 = vld [vmem:[%s4706_s12 + $0x28] sm:$0xff]  ;;  %v3136_v31 = vld [vmem:[%s4706_s12 + $0x20] sm:$0xff] }
 0xd68   : > { %v2764_v23 = vadd.f32 %v4599_v22, %v4597_v54 }
 0xd6a   : > { %2765 = vadd.xlane.f32.xlu1 %v2764_v23 }
 0xde7   : > { %v2757_v48 = vpop.xlane.xlu1 %2756 }
 0xde8   : > { %v2767_v26 = vmul.f32 0.00390625, %v2757_v48 }
 0xdea   : > { %v2776_v36 = vmul.f32 %v3127_v47, %v2767_v26  ;;  %v3139_v26 = vld [vmem:[%s4706_s12 + $0x38] sm:$0xff] }
 0xdeb   : > { %v2760_v43 = vpop.xlane.xlu0 %2759 }
 0xdec   : > { %v2768_v44 = vmul.f32 0.00390625, %v2760_v43  ;;  %v2780_v6 = vsel %vm1598_vm12, %v2776_v36, 0.0 }
 0xdee   : > { %v2777_v51 = vmul.f32 %v3128_v38, %v2768_v44  ;;  %v3138_v44 = vld [vmem:[%s4706_s12 + $0x30] sm:$0xff] }
 0xdef   : > { %v2763_v58 = vpop.xlane.xlu0 %2762 }
 0xdf0   : > { %v2769_v52 = vmul.f32 0.00390625, %v2763_v58  ;;  %v2781_v0 = vsel %vm1598_vm12, %v2777_v51, 0.0 }
 0xdf1   : > { %v2782_v42 = vadd.f32 %v2781_v0, %v2780_v6 }
 0xdf2   : > { %v2778_v1 = vmul.f32 %v3129_v25, %v2769_v52 }
 0xdf3   : > { %v2766_v41 = vpop.xlane.xlu1 %2765 }
 0xdf4   : > { %v2783_v53 = vsel %vm1598_vm12, %v2778_v1, 0.0  ;;  %v2770_v20 = vmul.f32 0.00390625, %v2766_v41 }
 0xdf5   : > { %v2784_v55 = vadd.f32 %v2783_v53, %v2782_v42 }
 0xdf6   : > { %v2779_v49 = vmul.f32 %v3130_v56, %v2770_v20 }
 0xdf8   : > { %v2785_v24 = vsel %vm1598_vm12, %v2779_v49, 0.0 }
 0xdf9   : > { %v2786_v19 = vadd.f32 %v2785_v24, %v2784_v55 }
 0xdfb   : > { %v2787_v46 = vrot.slane %v2786_v19, 4 }
 0xdfd   : > { %v2788_v37 = vadd.f32 %v2787_v46, %v2786_v19 }
 0xdff   : > { %v2789_v60 = vrot.slane %v2788_v37, 2 }
 0xe01   : > { %v2790_v61 = vadd.f32 %v2789_v60, %v2788_v37 }
 0xe03   : > { %v2791_v45 = vrot.slane %v2790_v61, 1 }
 0xe05   : > { %v2792_v4 = vadd.f32 %v2791_v45, %v2790_v61 }
 0xe07   : > { %v2795_v35 = vadd.f32 %v3131_v10, %v2792_v4 }
 0xe09   : > { %v2796_v50 = vmax.f32 %v2795_v35, 0.0 }
 0xe0b   : > { %v2805_v40 = vrot.slane %v2796_v50, %v1621_v39 }
 0xe0d   : > { %v2807_v8 = vmul.f32 %v3133_v59, %v2805_v40  ;;  %v2806_v15 = vmul.f32 %v3132_v9, %v2805_v40  ;;  %v2809_v63 = vmul.f32 %v3135_v28, %v2805_v40  ;;  %v2808_v32 = vmul.f32 %v3134_v33, %v2805_v40 }
 0xe0f   : > { %v2813_v27 = vsel %vm1598_vm12, %v2807_v8, 0.0  ;;  %v2810_v7 = vsel %vm1598_vm12, %v2806_v15, 0.0  ;;  %v2819_v57 = vsel %vm1598_vm12, %v2809_v63, 0.0  ;;  %v2816_v39 = vsel %vm1598_vm12, %v2808_v32, 0.0 }
 0xe10   : > { %2814 = vadd.xlane.f32.xlu1 %v2813_v27  ;;  %2811 = vadd.xlane.f32.xlu0 %v2810_v7 }
 0xe14   : > { %2820 = vadd.xlane.f32.xlu1 %v2819_v57  ;;  %2817 = vadd.xlane.f32.xlu0 %v2816_v39  ;;  %v3256_v57 = vld [vmem:[%s3472_s29 + $0x18] sm:$0xff] }
 0xe99   : > { %v2815_v23 = vpop.xlane.xlu1 %2814  ;;  %v2812_v48 = vpop.xlane.xlu0 %2811 }
 0xe9a   : > { %v2828_v38 = vadd.f32 %v3137_v62, %v2815_v23  ;;  %v2827_v43 = vadd.f32 %v3136_v31, %v2812_v48  ;;  %v3257_v23 = vld [vmem:[%s3472_s29] sm:$0xff]  ;;  %v3258_v48 = vld [vmem:[%s3472_s29 + $0x8] sm:$0xff] }
 0xe9c   : > { %v2832_v47 = vsub.f32 0.0, %v2828_v38  ;;  %v2831_v51 = vsub.f32 0.0, %v2827_v43 }
 0xe9d   : > { %v2821_v25 = vpop.xlane.xlu1 %2820  ;;  %v2818_v58 = vpop.xlane.xlu0 %2817 }
 0xe9e   : > { %v2837_v36 = vmul.f32 1.442695, %v2832_v47  ;;  %v2835_v52 = vmul.f32 1.442695, %v2831_v51  ;;  %v2830_v0 = vadd.f32 %v3139_v26, %v2821_v25  ;;  %v2829_v1 = vadd.f32 %v3138_v44, %v2818_v58  ;;  %v3259_v47 = vld [vmem:[%s3472_s29 + $0x20] sm:$0xff]  ;;  %v3260_v25 = vld [vmem:[%s3472_s29 + $0x28] sm:$0xff] }
 0xea0   : > { %3231 = vpow2.f32 %v2837_v36  ;;  %v2834_v56 = vsub.f32 0.0, %v2830_v0  ;;  %v2833_v41 = vsub.f32 0.0, %v2829_v1  ;;  %v3261_v36 = vld [vmem:[%s3472_s29 + $0x30] sm:$0xff]  ;;  %v3262_v0 = vld [vmem:[%s3472_s29 + $0x38] sm:$0xff] }
 0xea1   : > { %3233 = vpow2.f32 %v2835_v52 }
 0xea2   : > { %v2841_v6 = vmul.f32 1.442695, %v2834_v56  ;;  %v2839_v53 = vmul.f32 1.442695, %v2833_v41 }
 0xea4   : > { %3235 = vpow2.f32 %v2841_v6 }
 0xea5   : > { %3237 = vpow2.f32 %v2839_v53 }
 0xead   : > { %v3232_v20 = vpop.eup %3231 }
 0xeae   : > { %v3234_v42 = vpop.eup %3233  ;;  %v2844_v49 = vadd.f32 1.0, %v3232_v20 }
 0xeaf   : > { %v2843_v55 = vadd.f32 1.0, %v3234_v42 }
 0xeb0   : > { %3239 = vrcp.f32 %v2844_v49 }
 0xeb1   : > { %v3236_v24 = vpop.eup %3235  ;;  %3241 = vrcp.f32 %v2843_v55 }
 0xeb2   : > { %v3238_v19 = vpop.eup %3237  ;;  %v2846_v46 = vadd.f32 1.0, %v3236_v24 }
 0xeb3   : > { %v2845_v37 = vadd.f32 1.0, %v3238_v19 }
 0xeb4   : > { %3243 = vrcp.f32 %v2846_v46 }
 0xeb5   : > { %3245 = vrcp.f32 %v2845_v37 }
 0xebd   : > { %v3240_v60 = vpop.eup %3239 }
 0xebe   : > { %v3242_v61 = vpop.eup %3241  ;;  %2858 = vperm.xlu1 %3182, %v3240_v60  }
 0xebf   : > { %2853 = vperm.xlu0 %3181, %v3242_v61  }
 0xec1   : > { %v3244_v45 = vpop.eup %3243 }
 0xec2   : > { %v3246_v10 = vpop.eup %3245 }
 0xec3   : > { %2868 = vperm.xlu0 %3181, %v3244_v45   ;;  %2863 = vperm.xlu1 %3182, %v3246_v10  }
 0xf39   : > { %v2859_v4 = vpop.permute.xlu1 %2858 }
 0xf3a   : > { %v2873_v35 = vmul.f32 %v2859_v4, %v4585_v14  ;;  %v2874_v50 = vmul.f32 %v2859_v4, %v4587_v29  ;;  %v2854_v59 = vpop.permute.xlu0 %2853 }
 0xf3b   : > { %v2871_v9 = vmul.f32 %v2854_v59, %v4579_v2  ;;  %v2872_v40 = vmul.f32 %v2854_v59, %v4581_v30 }
 0xf3c   : > { %v2881_v28 = vmul.f32 0.1, %v2873_v35  ;;  %v2882_v33 = vmul.f32 0.1, %v2874_v50 }
 0xf3d   : > { %v2879_v8 = vmul.f32 0.1, %v2871_v9  ;;  %v2880_v15 = vmul.f32 0.1, %v2872_v40 }
 0xf3e   : > { %v2889_v27 = vadd.f32 %v2881_v28, %v4564_v18  ;;  %v2890_v7 = vadd.f32 %v2882_v33, %v4567_v17  ;;  %v2864_v14 = vpop.permute.xlu1 %2863  ;;  %v2869_v63 = vpop.permute.xlu0 %2868  ;;  %v3255_v17 = vld [vmem:[%s3472_s29 + $0x10] sm:$0xff] }
 0xf3f   : > { %v2887_v2 = vadd.f32 %v2879_v8, %v4558_v5  ;;  %v2888_v30 = vadd.f32 %v2880_v15, %v4561_v16  ;;  %v2875_v29 = vmul.f32 %v2864_v14, %v4591_v11  ;;  %v2876_v18 = vmul.f32 %v2864_v14, %v4593_v13 }
 0xf40   : > { %v2897_v32 = vadd.f32 %v3255_v17, %v2889_v27  ;;  %v2898_v39 = vadd.f32 %v3256_v57, %v2890_v7  ;;  %v2877_v62 = vmul.f32 %v2869_v63, %v4597_v54  ;;  %v2878_v31 = vmul.f32 %v2869_v63, %v4599_v22 }
 0xf41   : > { %v2895_v5 = vadd.f32 %v3257_v23, %v2887_v2  ;;  %v2896_v16 = vadd.f32 %v3258_v48, %v2888_v30  ;;  %v2883_v38 = vmul.f32 0.1, %v2875_v29  ;;  %v2884_v11 = vmul.f32 0.1, %v2876_v18 }
 0xf42   : > { %2905 = vst [vmem:[%s4663_s20 + $0x10] sm:$0xff] %v2897_v32  ;;  %2906 = vst [vmem:[%s4663_s20 + $0x18] sm:$0xff] %v2898_v39  ;;  %v2885_v13 = vmul.f32 0.1, %v2877_v62  ;;  %v2886_v43 = vmul.f32 0.1, %v2878_v31 }
 0xf43   : > { %2903 = vst [vmem:[%s4663_s20] sm:$0xff] %v2895_v5  ;;  %2904 = vst [vmem:[%s4663_s20 + $0x8] sm:$0xff] %v2896_v16  ;;  %v2891_v54 = vadd.f32 %v2883_v38, %v4542_v12  ;;  %v2892_v22 = vadd.f32 %v2884_v11, %v4545_v34 }
 0xf44   : > { %v2893_v26 = vadd.f32 %v2885_v13, %v4548_v21  ;;  %v2894_v44 = vadd.f32 %v2886_v43, %v4551_v3 }
 0xf45   : > { %v2899_v51 = vadd.f32 %v3259_v47, %v2891_v54  ;;  %v2900_v58 = vadd.f32 %v3260_v25, %v2892_v22 }
 0xf46   : > { %v2901_v52 = vadd.f32 %v3261_v36, %v2893_v26  ;;  %v2902_v1 = vadd.f32 %v3262_v0, %v2894_v44 }
 0xf47   : > { %2907 = vst [vmem:[%s4663_s20 + $0x20] sm:$0xff] %v2899_v51  ;;  %2908 = vst [vmem:[%s4663_s20 + $0x28] sm:$0xff] %v2900_v58 }
 0xf48   : > { %2909 = vst [vmem:[%s4663_s20 + $0x30] sm:$0xff] %v2901_v52  ;;  %2910 = vst [vmem:[%s4663_s20 + $0x38] sm:$0xff] %v2902_v1 }
 0xf49 PF: > { %s25_s25 = sadd.s32 1, %s3329_s25  }
 0xf4a   : > { %p22_p2 = scmp.ge.s32.totalorder %s25_s25, 4  }
 0xf4c   :  { %24 = sbr.rel (!%p22_p2) target bundleno = 2 (0x2), region = 131 }
 0xf51   :  { %2932 = vsyncpa [#allocation3], 1 }
 0xf52   :  { %2934 = vsyncpa [#allocation3 + $0x1], 1 }
 0xf53   :  { %2935 = vsyncpa [#allocation5], 1 }

</bundles_post_ra>
